<compile_context>
chip_gen: v6e
topology: v6e:2x2x1
jax: 0.10.0
libtpu: 0.0.40
codegen_flags: <defaults>
</compile_context>

<pallas_src>
import functools
import math

import jax
import jax.numpy as jnp
from jax.experimental import pallas as pl
from jax.experimental.pallas import tpu as pltpu


def _make_student_wavenet_kernel(iaf_layer_size, dilations, n_t_tiles, t_tile,
                                 halo, window, c_res, c_gate, ksize, n_params):
    """Builds the Pallas kernel body (static structure closed over)."""
    n_flows = len(iaf_layer_size)
    g = c_gate // 2
    SQRT_HALF = math.sqrt(0.5)  # Python float -> jaxpr literal
    max_shift = max((ksize - 1) * d for flow in dilations for d in flow)

    def kernel(*refs):
        # refs = [z_slab, <flat flow params...>, mu_out, scale_out, tap_scratch]
        z_ref = refs[0]
        param_refs = refs[1:1 + n_params]
        mu_ref = refs[1 + n_params]
        scale_ref = refs[2 + n_params]
        tap_ref = refs[3 + n_params]          # VMEM scratch (ksize*c_res, window) bf16

        # ---- parse the flat (static) parameter list ----------------------
        idx = 0
        flows = []
        for f in range(n_flows):
            first_w, first_b = param_refs[idx], param_refs[idx + 1]
            idx += 2
            layers = []
            for _ in range(iaf_layer_size[f]):
                # cw: (2g, K*c_res) bf16  (rows [0:g] tanh half, [g:2g] sigmoid
                #      half; column block k = tap k paired with shift (K-1-k)*d)
                # cb: (2g, 1) f32 ; ow: (c_res, g) bf16 ; ob: (c_res, 1) f32
                layers.append(tuple(param_refs[idx + i] for i in range(4)))
                idx += 4
            last_w, last_b = param_refs[idx], param_refs[idx + 1]   # (8,c_res)/(8,1)
            idx += 2
            flows.append((first_w, first_b, layers, last_w, last_b))

        # ---- hoisted per-tile constants ----------------------------------
        # window position of absolute time 0 for this tile (positive only for
        # the first tile(s) whose halo still covers pre-sequence samples).
        t_idx = pl.program_id(0) % n_t_tiles
        seq_start = jnp.maximum(halo - t_idx * t_tile, 0)
        lane = jax.lax.broadcasted_iota(jnp.int32, (1, window), 1)
        valid_in = lane >= seq_start          # True where absolute time >= 0

        z = z_ref[0]                          # (1, window) f32

        m_list, s_list = [], []
        for f in range(n_flows):
            first_w, first_b, layers, last_w, last_b = flows[f]

            # Conv1d1x1(1 -> c_res): outer-product broadcast, no matmul needed.
            x = first_w[...] * z + first_b[...]        # (c_res, window) f32

            for li, (cw, cb, ow, ob) in enumerate(layers):
                d = dilations[f][li]
                residual = x
                # Reference zero-pads each causal conv's input on the left; we
                # zero positions whose absolute time is < 0 (only affects the
                # first tile's halo region) and cast once for the MXU.
                xb = jnp.where(valid_in, x, 0.0).astype(jnp.bfloat16)

                # Stage the K shifted taps into the persistent VMEM scratch at
                # fixed sublane offsets: tap k row-block holds x shifted right
                # by (K-1-k)*d with zeros filling the window's left edge.
                if max_shift > 0:
                    tap_ref[:, 0:max_shift] = jnp.zeros(
                        (ksize * c_res, max_shift), jnp.bfloat16)
                for k in range(ksize):
                    s = (ksize - 1 - k) * d
                    r0 = k * c_res
                    if s == 0:
                        tap_ref[r0:r0 + c_res, :] = xb
                    else:
                        tap_ref[r0:r0 + c_res, s:] = xb[:, :window - s]

                # all K taps + both GLU halves in ONE MXU matmul:
                #   (2g, K*c_res) @ (K*c_res, window), f32 accumulation
                y = jnp.dot(cw[...], tap_ref[...],
                            preferred_element_type=jnp.float32) + cb[...]
                t_half = jnp.tanh(y[:g, :])
                # sigmoid via tanh: one EUP op instead of exp + reciprocal
                s_half = 0.5 * jnp.tanh(0.5 * y[g:, :]) + 0.5
                gated = (t_half * s_half).astype(jnp.bfloat16)      # (g, window)

                # 1x1 residual conv (conv1x1_skip output is unused -> skipped)
                xo = jnp.dot(ow[...], gated,
                             preferred_element_type=jnp.float32) + ob[...]
                x = (xo + residual) * SQRT_HALF                     # (c_res, window)

            # last layers: ReLU + fused Conv1d1x1(c_res -> 2), head padded to 8 rows
            xr = jnp.maximum(x, 0.0).astype(jnp.bfloat16)
            heads = jnp.dot(last_w[...], xr,
                            preferred_element_type=jnp.float32) + last_b[...]
            mu_f = heads[0:1, :]                                    # (1, window)
            scale_f = jnp.exp(heads[1:2, :])                        # (1, window)
            m_list.append(mu_f)
            s_list.append(scale_f)
            z = z * scale_f + mu_f

        # mu_tot = sum_i m_i * prod_{j>i} s_j ; scale_tot = prod_i s_i
        mu_tot = m_list[n_flows - 1]
        suffix = s_list[n_flows - 1]
        for i in range(n_flows - 2, -1, -1):
            mu_tot = mu_tot + m_list[i] * suffix
            suffix = suffix * s_list[i]

        # write only the valid (non-halo) region; lane-dense stores
        mu_ref[0] = mu_tot[:, halo:]
        scale_ref[0] = suffix[:, halo:]

    return kernel


def init_student_wavenet_params(key, iaf_layer_size, c_res, c_gate, ksize, out_channels):
    """Deterministic synthetic parameters, pre-packed in kernel parse order."""
    assert out_channels == 2
    g = c_gate // 2
    params = []

    def nrm(k, shape, scale, dtype=jnp.float32):
        return (jax.random.normal(k, shape, jnp.float32) * scale).astype(dtype)

    for layer_size in iaf_layer_size:
        key, k1, k2 = jax.random.split(key, 3)
        params.append(nrm(k1, (c_res, 1), 0.5))                          # first_w
        params.append(nrm(k2, (c_res, 1), 0.05))                         # first_b
        for _ in range(layer_size):
            key, k1, k2, k3, k4 = jax.random.split(key, 5)
            wscale = 1.0 / math.sqrt(ksize * c_res)
            # packed dilated conv weight: tanh+sigmoid halves x all K taps
            params.append(nrm(k1, (2 * g, ksize * c_res), wscale, jnp.bfloat16))
            params.append(nrm(k2, (2 * g, 1), 0.05))                     # packed bias
            params.append(nrm(k3, (c_res, g), 1.0 / math.sqrt(g), jnp.bfloat16))
            params.append(nrm(k4, (c_res, 1), 0.05))                     # conv1x1_out b
        key, k1, k2 = jax.random.split(key, 3)
        # fused last conv (row 0 = mu head, row 1 = log-scale head), padded to 8 rows
        lw = nrm(k1, (2, c_res), 0.5 / math.sqrt(c_res))
        lb = nrm(k2, (2, 1), 0.05)
        params.append(jnp.pad(lw, ((0, 6), (0, 0))).astype(jnp.bfloat16))
        params.append(jnp.pad(lb, ((0, 6), (0, 0))))
    return params


def student_wavenet_forward(z_nct, params, *, iaf_layer_size, layers, stacks,
                            c_res, c_gate, ksize, time_tile=512):
    """z_nct: (B, 1, T) float32 (scalar_input).  Returns (mu_tot, scale_tot),
    each (B, 1, T), matching the PyTorch module."""
    B, cin, T = z_nct.shape
    assert cin == 1, "scalar_input=True expects a single input channel"
    assert layers % stacks == 0
    layers_per_stack = layers // stacks
    dilations = [[2 ** (l % layers_per_stack) for l in range(n)]
                 for n in iaf_layer_size]

    t_tile = min(time_tile, T)
    assert T % t_tile == 0, "T must be divisible by the time tile"
    n_t = T // t_tile
    n_blocks = B * n_t

    # total receptive field over all flows; round the halo up so the processing
    # window (t_tile + halo) is a multiple of 128 lanes (padding is free: the
    # vregs would be padded to the same lane-group count anyway).
    rf = sum((ksize - 1) * d for flow in dilations for d in flow)
    halo = rf + (-(t_tile + rf)) % 128
    window = t_tile + halo

    # Build the per-tile overlapping windows in the wrapper (recompute-the-halo
    # strategy): tile t of batch b covers absolute time [t*t_tile - halo,
    # t*t_tile + t_tile), with true zeros before the start of the sequence.
    z_flat = z_nct.astype(jnp.float32).reshape(B, T)
    z_ext = jnp.concatenate([jnp.zeros((B, halo), jnp.float32), z_flat], axis=1)
    slabs = jnp.stack([z_ext[:, t * t_tile:t * t_tile + window] for t in range(n_t)],
                      axis=1)                                   # (B, n_t, window)
    slabs = slabs.reshape(n_blocks, 1, window)

    n_params = len(params)
    kernel = _make_student_wavenet_kernel(
        iaf_layer_size, dilations, n_t, t_tile, halo, window,
        c_res, c_gate, ksize, n_params)

    z_spec = pl.BlockSpec((1, 1, window), lambda i: (i, 0, 0))
    # constant block index -> weights are DMA'd once and stay VMEM-resident
    w_specs = [pl.BlockSpec(p.shape, lambda i: (0, 0)) for p in params]
    out_spec = pl.BlockSpec((1, 1, t_tile), lambda i: (i, 0, 0))

    mu, scale = pl.pallas_call(
        kernel,
        out_shape=(jax.ShapeDtypeStruct((n_blocks, 1, t_tile), jnp.float32),
                   jax.ShapeDtypeStruct((n_blocks, 1, t_tile), jnp.float32)),
        grid=(n_blocks,),
        in_specs=[z_spec] + w_specs,
        out_specs=(out_spec, out_spec),
        scratch_shapes=[pltpu.VMEM((ksize * c_res, window), jnp.bfloat16)],
        compiler_params=pltpu.CompilerParams(
            dimension_semantics=("parallel",),      # v7x: tiles split across TCs
            vmem_limit_bytes=32 * 1024 * 1024),     # actual usage ~1 MiB
    )(slabs, *params)

    # (B*n_t, 1, t_tile) -> (B, 1, T): blocks are batch-major, tile-major.
    return mu.reshape(B, 1, T), scale.reshape(B, 1, T)


if __name__ == "__main__":
    # Small config consistent with the module's constructor
    B, T = 2, 256
    OUT_CHANNELS = 2
    LAYERS, STACKS = 4, 2                    # layers_per_stack = 2 -> dilations 1,2,...
    IAF_LAYER_SIZE = [2, 2, 2, 4]
    C_RES, C_GATE, KSIZE = 32, 32, 3

    key = jax.random.PRNGKey(0)
    kz, kp = jax.random.split(key)
    # scalar input in [-1, 1], shape (B, 1, T) like the PyTorch module
    z = jax.random.uniform(kz, (B, 1, T), jnp.float32, minval=-1.0, maxval=1.0)
    params = init_student_wavenet_params(
        kp, IAF_LAYER_SIZE, C_RES, C_GATE, KSIZE, OUT_CHANNELS)

    fwd = functools.partial(
        student_wavenet_forward, iaf_layer_size=IAF_LAYER_SIZE, layers=LAYERS,
        stacks=STACKS, c_res=C_RES, c_gate=C_GATE, ksize=KSIZE)

    # Tiled run (2 time tiles per batch element -> exercises the halo path).
    mu_tot, scale_tot = fwd(z, params, time_tile=128)
    # Single-tile run for a tiling-independence cross-check.
    mu_one, scale_one = fwd(z, params, time_tile=T)
    jax.block_until_ready((mu_tot, scale_tot, mu_one, scale_one))

    assert mu_tot.shape == (B, 1, T) and scale_tot.shape == (B, 1, T)
    assert mu_tot.dtype == jnp.float32 and scale_tot.dtype == jnp.float32
    assert bool(jnp.all(jnp.isfinite(mu_tot))) and bool(jnp.all(jnp.isfinite(scale_tot)))
    # Time-tiling with a receptive-field halo must not change the result.
    assert bool(jnp.allclose(mu_tot, mu_one, rtol=1e-4, atol=1e-4))
    assert bool(jnp.allclose(scale_tot, scale_one, rtol=1e-4, atol=1e-4))
    print("KERNEL_OK")
</pallas_src>

<mosaic_0001>
module attributes {stable_mosaic.version = 11 : i64} {
  func.func @kernel(%arg0: i32, %arg1: memref<1x1x256xf32, #tpu.memory_space<vmem>>, %arg2: memref<32x1xf32, #tpu.memory_space<vmem>>, %arg3: memref<32x1xf32, #tpu.memory_space<vmem>>, %arg4: memref<32x96xbf16, #tpu.memory_space<vmem>>, %arg5: memref<32x1xf32, #tpu.memory_space<vmem>>, %arg6: memref<32x16xbf16, #tpu.memory_space<vmem>>, %arg7: memref<32x1xf32, #tpu.memory_space<vmem>>, %arg8: memref<32x96xbf16, #tpu.memory_space<vmem>>, %arg9: memref<32x1xf32, #tpu.memory_space<vmem>>, %arg10: memref<32x16xbf16, #tpu.memory_space<vmem>>, %arg11: memref<32x1xf32, #tpu.memory_space<vmem>>, %arg12: memref<8x32xbf16, #tpu.memory_space<vmem>>, %arg13: memref<8x1xf32, #tpu.memory_space<vmem>>, %arg14: memref<32x1xf32, #tpu.memory_space<vmem>>, %arg15: memref<32x1xf32, #tpu.memory_space<vmem>>, %arg16: memref<32x96xbf16, #tpu.memory_space<vmem>>, %arg17: memref<32x1xf32, #tpu.memory_space<vmem>>, %arg18: memref<32x16xbf16, #tpu.memory_space<vmem>>, %arg19: memref<32x1xf32, #tpu.memory_space<vmem>>, %arg20: memref<32x96xbf16, #tpu.memory_space<vmem>>, %arg21: memref<32x1xf32, #tpu.memory_space<vmem>>, %arg22: memref<32x16xbf16, #tpu.memory_space<vmem>>, %arg23: memref<32x1xf32, #tpu.memory_space<vmem>>, %arg24: memref<8x32xbf16, #tpu.memory_space<vmem>>, %arg25: memref<8x1xf32, #tpu.memory_space<vmem>>, %arg26: memref<32x1xf32, #tpu.memory_space<vmem>>, %arg27: memref<32x1xf32, #tpu.memory_space<vmem>>, %arg28: memref<32x96xbf16, #tpu.memory_space<vmem>>, %arg29: memref<32x1xf32, #tpu.memory_space<vmem>>, %arg30: memref<32x16xbf16, #tpu.memory_space<vmem>>, %arg31: memref<32x1xf32, #tpu.memory_space<vmem>>, %arg32: memref<32x96xbf16, #tpu.memory_space<vmem>>, %arg33: memref<32x1xf32, #tpu.memory_space<vmem>>, %arg34: memref<32x16xbf16, #tpu.memory_space<vmem>>, %arg35: memref<32x1xf32, #tpu.memory_space<vmem>>, %arg36: memref<8x32xbf16, #tpu.memory_space<vmem>>, %arg37: memref<8x1xf32, #tpu.memory_space<vmem>>, %arg38: memref<32x1xf32, #tpu.memory_space<vmem>>, %arg39: memref<32x1xf32, #tpu.memory_space<vmem>>, %arg40: memref<32x96xbf16, #tpu.memory_space<vmem>>, %arg41: memref<32x1xf32, #tpu.memory_space<vmem>>, %arg42: memref<32x16xbf16, #tpu.memory_space<vmem>>, %arg43: memref<32x1xf32, #tpu.memory_space<vmem>>, %arg44: memref<32x96xbf16, #tpu.memory_space<vmem>>, %arg45: memref<32x1xf32, #tpu.memory_space<vmem>>, %arg46: memref<32x16xbf16, #tpu.memory_space<vmem>>, %arg47: memref<32x1xf32, #tpu.memory_space<vmem>>, %arg48: memref<32x96xbf16, #tpu.memory_space<vmem>>, %arg49: memref<32x1xf32, #tpu.memory_space<vmem>>, %arg50: memref<32x16xbf16, #tpu.memory_space<vmem>>, %arg51: memref<32x1xf32, #tpu.memory_space<vmem>>, %arg52: memref<32x96xbf16, #tpu.memory_space<vmem>>, %arg53: memref<32x1xf32, #tpu.memory_space<vmem>>, %arg54: memref<32x16xbf16, #tpu.memory_space<vmem>>, %arg55: memref<32x1xf32, #tpu.memory_space<vmem>>, %arg56: memref<8x32xbf16, #tpu.memory_space<vmem>>, %arg57: memref<8x1xf32, #tpu.memory_space<vmem>>, %arg58: memref<1x1x128xf32, #tpu.memory_space<vmem>>, %arg59: memref<1x1x128xf32, #tpu.memory_space<vmem>>, %arg60: memref<96x256xbf16, #tpu.memory_space<vmem>>) attributes {dimension_semantics = [#tpu.dimension_semantics<parallel>], iteration_bounds = array<i64: 4>, scalar_prefetch = 0 : i64, scratch_operands = 1 : i64, tpu.core_type = #tpu.core_type<tc>, window_params = [{transform_indices = @transform_0, window_bounds = array<i64: 1, 1, 256>}, {pipeline_mode = #tpu.pipeline_mode<synchronous>, transform_indices = @transform_1, window_bounds = array<i64: 32, 1>}, {pipeline_mode = #tpu.pipeline_mode<synchronous>, transform_indices = @transform_2, window_bounds = array<i64: 32, 1>}, {pipeline_mode = #tpu.pipeline_mode<synchronous>, transform_indices = @transform_3, window_bounds = array<i64: 32, 96>}, {pipeline_mode = #tpu.pipeline_mode<synchronous>, transform_indices = @transform_4, window_bounds = array<i64: 32, 1>}, {pipeline_mode = #tpu.pipeline_mode<synchronous>, transform_indices = @transform_5, window_bounds = array<i64: 32, 16>}, {pipeline_mode = #tpu.pipeline_mode<synchronous>, transform_indices = @transform_6, window_bounds = array<i64: 32, 1>}, {pipeline_mode = #tpu.pipeline_mode<synchronous>, transform_indices = @transform_7, window_bounds = array<i64: 32, 96>}, {pipeline_mode = #tpu.pipeline_mode<synchronous>, transform_indices = @transform_8, window_bounds = array<i64: 32, 1>}, {pipeline_mode = #tpu.pipeline_mode<synchronous>, transform_indices = @transform_9, window_bounds = array<i64: 32, 16>}, {pipeline_mode = #tpu.pipeline_mode<synchronous>, transform_indices = @transform_10, window_bounds = array<i64: 32, 1>}, {pipeline_mode = #tpu.pipeline_mode<synchronous>, transform_indices = @transform_11, window_bounds = array<i64: 8, 32>}, {pipeline_mode = #tpu.pipeline_mode<synchronous>, transform_indices = @transform_12, window_bounds = array<i64: 8, 1>}, {pipeline_mode = #tpu.pipeline_mode<synchronous>, transform_indices = @transform_13, window_bounds = array<i64: 32, 1>}, {pipeline_mode = #tpu.pipeline_mode<synchronous>, transform_indices = @transform_14, window_bounds = array<i64: 32, 1>}, {pipeline_mode = #tpu.pipeline_mode<synchronous>, transform_indices = @transform_15, window_bounds = array<i64: 32, 96>}, {pipeline_mode = #tpu.pipeline_mode<synchronous>, transform_indices = @transform_16, window_bounds = array<i64: 32, 1>}, {pipeline_mode = #tpu.pipeline_mode<synchronous>, transform_indices = @transform_17, window_bounds = array<i64: 32, 16>}, {pipeline_mode = #tpu.pipeline_mode<synchronous>, transform_indices = @transform_18, window_bounds = array<i64: 32, 1>}, {pipeline_mode = #tpu.pipeline_mode<synchronous>, transform_indices = @transform_19, window_bounds = array<i64: 32, 96>}, {pipeline_mode = #tpu.pipeline_mode<synchronous>, transform_indices = @transform_20, window_bounds = array<i64: 32, 1>}, {pipeline_mode = #tpu.pipeline_mode<synchronous>, transform_indices = @transform_21, window_bounds = array<i64: 32, 16>}, {pipeline_mode = #tpu.pipeline_mode<synchronous>, transform_indices = @transform_22, window_bounds = array<i64: 32, 1>}, {pipeline_mode = #tpu.pipeline_mode<synchronous>, transform_indices = @transform_23, window_bounds = array<i64: 8, 32>}, {pipeline_mode = #tpu.pipeline_mode<synchronous>, transform_indices = @transform_24, window_bounds = array<i64: 8, 1>}, {pipeline_mode = #tpu.pipeline_mode<synchronous>, transform_indices = @transform_25, window_bounds = array<i64: 32, 1>}, {pipeline_mode = #tpu.pipeline_mode<synchronous>, transform_indices = @transform_26, window_bounds = array<i64: 32, 1>}, {pipeline_mode = #tpu.pipeline_mode<synchronous>, transform_indices = @transform_27, window_bounds = array<i64: 32, 96>}, {pipeline_mode = #tpu.pipeline_mode<synchronous>, transform_indices = @transform_28, window_bounds = array<i64: 32, 1>}, {pipeline_mode = #tpu.pipeline_mode<synchronous>, transform_indices = @transform_29, window_bounds = array<i64: 32, 16>}, {pipeline_mode = #tpu.pipeline_mode<synchronous>, transform_indices = @transform_30, window_bounds = array<i64: 32, 1>}, {pipeline_mode = #tpu.pipeline_mode<synchronous>, transform_indices = @transform_31, window_bounds = array<i64: 32, 96>}, {pipeline_mode = #tpu.pipeline_mode<synchronous>, transform_indices = @transform_32, window_bounds = array<i64: 32, 1>}, {pipeline_mode = #tpu.pipeline_mode<synchronous>, transform_indices = @transform_33, window_bounds = array<i64: 32, 16>}, {pipeline_mode = #tpu.pipeline_mode<synchronous>, transform_indices = @transform_34, window_bounds = array<i64: 32, 1>}, {pipeline_mode = #tpu.pipeline_mode<synchronous>, transform_indices = @transform_35, window_bounds = array<i64: 8, 32>}, {pipeline_mode = #tpu.pipeline_mode<synchronous>, transform_indices = @transform_36, window_bounds = array<i64: 8, 1>}, {pipeline_mode = #tpu.pipeline_mode<synchronous>, transform_indices = @transform_37, window_bounds = array<i64: 32, 1>}, {pipeline_mode = #tpu.pipeline_mode<synchronous>, transform_indices = @transform_38, window_bounds = array<i64: 32, 1>}, {pipeline_mode = #tpu.pipeline_mode<synchronous>, transform_indices = @transform_39, window_bounds = array<i64: 32, 96>}, {pipeline_mode = #tpu.pipeline_mode<synchronous>, transform_indices = @transform_40, window_bounds = array<i64: 32, 1>}, {pipeline_mode = #tpu.pipeline_mode<synchronous>, transform_indices = @transform_41, window_bounds = array<i64: 32, 16>}, {pipeline_mode = #tpu.pipeline_mode<synchronous>, transform_indices = @transform_42, window_bounds = array<i64: 32, 1>}, {pipeline_mode = #tpu.pipeline_mode<synchronous>, transform_indices = @transform_43, window_bounds = array<i64: 32, 96>}, {pipeline_mode = #tpu.pipeline_mode<synchronous>, transform_indices = @transform_44, window_bounds = array<i64: 32, 1>}, {pipeline_mode = #tpu.pipeline_mode<synchronous>, transform_indices = @transform_45, window_bounds = array<i64: 32, 16>}, {pipeline_mode = #tpu.pipeline_mode<synchronous>, transform_indices = @transform_46, window_bounds = array<i64: 32, 1>}, {pipeline_mode = #tpu.pipeline_mode<synchronous>, transform_indices = @transform_47, window_bounds = array<i64: 32, 96>}, {pipeline_mode = #tpu.pipeline_mode<synchronous>, transform_indices = @transform_48, window_bounds = array<i64: 32, 1>}, {pipeline_mode = #tpu.pipeline_mode<synchronous>, transform_indices = @transform_49, window_bounds = array<i64: 32, 16>}, {pipeline_mode = #tpu.pipeline_mode<synchronous>, transform_indices = @transform_50, window_bounds = array<i64: 32, 1>}, {pipeline_mode = #tpu.pipeline_mode<synchronous>, transform_indices = @transform_51, window_bounds = array<i64: 32, 96>}, {pipeline_mode = #tpu.pipeline_mode<synchronous>, transform_indices = @transform_52, window_bounds = array<i64: 32, 1>}, {pipeline_mode = #tpu.pipeline_mode<synchronous>, transform_indices = @transform_53, window_bounds = array<i64: 32, 16>}, {pipeline_mode = #tpu.pipeline_mode<synchronous>, transform_indices = @transform_54, window_bounds = array<i64: 32, 1>}, {pipeline_mode = #tpu.pipeline_mode<synchronous>, transform_indices = @transform_55, window_bounds = array<i64: 8, 32>}, {pipeline_mode = #tpu.pipeline_mode<synchronous>, transform_indices = @transform_56, window_bounds = array<i64: 8, 1>}, {transform_indices = @transform_57, window_bounds = array<i64: 1, 1, 128>}, {transform_indices = @transform_58, window_bounds = array<i64: 1, 1, 128>}]} {
    %c2_i32 = arith.constant 2 : i32
    %c0_i32 = arith.constant 0 : i32
    %0 = arith.cmpi eq, %c2_i32, %c0_i32 : i32
    %c1_i32 = arith.constant 1 : i32
    %1 = arith.select %0, %c1_i32, %c2_i32 : i32
    %2 = arith.remsi %arg0, %1 : i32
    %c0_i32_0 = arith.constant 0 : i32
    %3 = arith.cmpi ne, %2, %c0_i32_0 : i32
    %c0_i32_1 = arith.constant 0 : i32
    %4 = arith.cmpi slt, %2, %c0_i32_1 : i32
    %c0_i32_2 = arith.constant 0 : i32
    %5 = arith.cmpi slt, %1, %c0_i32_2 : i32
    %6 = arith.xori %4, %5 : i1
    %7 = arith.andi %6, %3 : i1
    %8 = arith.addi %2, %1 : i32
    %9 = arith.select %7, %8, %2 : i32
    %c128_i32 = arith.constant 128 : i32
    %10 = arith.muli %9, %c128_i32 : i32
    %c128_i32_3 = arith.constant 128 : i32
    %11 = arith.subi %c128_i32_3, %10 : i32
    %c0_i32_4 = arith.constant 0 : i32
    %12 = arith.maxsi %11, %c0_i32_4 : i32
    %13 = tpu.iota {dimensions = array<i32: 1>} : vector<1x256xi32>
    %14 = vector.broadcast %12 : i32 to vector<1x256xi32>
    %15 = arith.cmpi sge, %13, %14 : vector<1x256xi32>
    %c0 = arith.constant 0 : index
    %c0_5 = arith.constant 0 : index
    %c0_6 = arith.constant 0 : index
    %16 = vector.load %arg1[%c0, %c0_5, %c0_6] : memref<1x1x256xf32, #tpu.memory_space<vmem>>, vector<1x1x256xf32>
    %17 = vector.shape_cast %16 : vector<1x1x256xf32> to vector<1x256xf32>
    %c0_7 = arith.constant 0 : index
    %c0_8 = arith.constant 0 : index
    %18 = vector.load %arg2[%c0_7, %c0_8] : memref<32x1xf32, #tpu.memory_space<vmem>>, vector<32x1xf32>
    %19 = vector.broadcast %18 : vector<32x1xf32> to vector<32x256xf32>
    %20 = vector.broadcast %17 : vector<1x256xf32> to vector<32x256xf32>
    %21 = arith.mulf %19, %20 : vector<32x256xf32>
    %c0_9 = arith.constant 0 : index
    %c0_10 = arith.constant 0 : index
    %22 = vector.load %arg3[%c0_9, %c0_10] : memref<32x1xf32, #tpu.memory_space<vmem>>, vector<32x1xf32>
    %23 = vector.broadcast %22 : vector<32x1xf32> to vector<32x256xf32>
    %24 = arith.addf %21, %23 : vector<32x256xf32>
    %cst = arith.constant 0.000000e+00 : f32
    %25 = vector.shape_cast %15 : vector<1x256xi1> to vector<1x256xi1>
    %26 = vector.broadcast %25 : vector<1x256xi1> to vector<32x256xi1>
    %27 = vector.broadcast %cst : f32 to vector<32x256xf32>
    %28 = arith.select %26, %24, %27 : vector<32x256xi1>, vector<32x256xf32>
    %29 = arith.truncf %28 : vector<32x256xf32> to vector<32x256xbf16>
    %cst_11 = arith.constant 0.000000e+00 : bf16
    %30 = vector.broadcast %cst_11 : bf16 to vector<96x4xbf16>
    %c0_12 = arith.constant 0 : index
    %c0_13 = arith.constant 0 : index
    %31 = vector.load %arg60[%c0_12, %c0_13] : memref<96x256xbf16, #tpu.memory_space<vmem>>, vector<96x4xbf16>
    tpu.vector_store %arg60[%c0_12, %c0_13], %30 {strides = array<i32>} : memref<96x256xbf16, #tpu.memory_space<vmem>>, vector<96x4xbf16>,
    %32 = vector.extract_strided_slice %29 {offsets = [0, 0], sizes = [32, 254], strides = [1, 1]} : vector<32x256xbf16> to vector<32x254xbf16>
    %c0_14 = arith.constant 0 : index
    %c2 = arith.constant 2 : index
    %33 = vector.load %arg60[%c0_14, %c2] : memref<96x256xbf16, #tpu.memory_space<vmem>>, vector<32x254xbf16>
    tpu.vector_store %arg60[%c0_14, %c2], %32 {strides = array<i32>} : memref<96x256xbf16, #tpu.memory_space<vmem>>, vector<32x254xbf16>,
    %34 = vector.extract_strided_slice %29 {offsets = [0, 0], sizes = [32, 255], strides = [1, 1]} : vector<32x256xbf16> to vector<32x255xbf16>
    %c32 = arith.constant 32 : index
    %c1 = arith.constant 1 : index
    %35 = vector.load %arg60[%c32, %c1] : memref<96x256xbf16, #tpu.memory_space<vmem>>, vector<32x255xbf16>
    tpu.vector_store %arg60[%c32, %c1], %34 {strides = array<i32>} : memref<96x256xbf16, #tpu.memory_space<vmem>>, vector<32x255xbf16>,
    %c64 = arith.constant 64 : index
    %c0_15 = arith.constant 0 : index
    %36 = vector.load %arg60[%c64, %c0_15] : memref<96x256xbf16, #tpu.memory_space<vmem>>, vector<32x256xbf16>
    tpu.vector_store %arg60[%c64, %c0_15], %29 {strides = array<i32>} : memref<96x256xbf16, #tpu.memory_space<vmem>>, vector<32x256xbf16>,
    %c0_16 = arith.constant 0 : index
    %c0_17 = arith.constant 0 : index
    %37 = vector.load %arg4[%c0_16, %c0_17] : memref<32x96xbf16, #tpu.memory_space<vmem>>, vector<32x96xbf16>
    %c0_18 = arith.constant 0 : index
    %c0_19 = arith.constant 0 : index
    %38 = vector.load %arg60[%c0_18, %c0_19] : memref<96x256xbf16, #tpu.memory_space<vmem>>, vector<96x256xbf16>
    %cst_20 = arith.constant dense<0.000000e+00> : vector<32x256xf32>
    %39 = tpu.matmul %37, %38, %cst_20 {dimension_numbers = #tpu.dot_dimension_numbers<[1], [0], [0], [1], [0, 0, 1, 1], [], []>} : vector<32x96xbf16>, vector<96x256xbf16>, vector<32x256xf32> -> vector<32x256xf32>
    %c0_21 = arith.constant 0 : index
    %c0_22 = arith.constant 0 : index
    %40 = vector.load %arg5[%c0_21, %c0_22] : memref<32x1xf32, #tpu.memory_space<vmem>>, vector<32x1xf32>
    %41 = vector.broadcast %40 : vector<32x1xf32> to vector<32x256xf32>
    %42 = arith.addf %39, %41 : vector<32x256xf32>
    %43 = vector.extract_strided_slice %42 {offsets = [0, 0], sizes = [16, 256], strides = [1, 1]} : vector<32x256xf32> to vector<16x256xf32>
    %44 = math.tanh %43 : vector<16x256xf32>
    %45 = vector.extract_strided_slice %42 {offsets = [16, 0], sizes = [16, 256], strides = [1, 1]} : vector<32x256xf32> to vector<16x256xf32>
    %cst_23 = arith.constant 5.000000e-01 : f32
    %46 = vector.broadcast %cst_23 : f32 to vector<16x256xf32>
    %47 = arith.mulf %46, %45 : vector<16x256xf32>
    %48 = math.tanh %47 : vector<16x256xf32>
    %cst_24 = arith.constant 5.000000e-01 : f32
    %49 = vector.broadcast %cst_24 : f32 to vector<16x256xf32>
    %50 = arith.mulf %49, %48 : vector<16x256xf32>
    %cst_25 = arith.constant 5.000000e-01 : f32
    %51 = vector.broadcast %cst_25 : f32 to vector<16x256xf32>
    %52 = arith.addf %50, %51 : vector<16x256xf32>
    %53 = arith.mulf %44, %52 : vector<16x256xf32>
    %54 = arith.truncf %53 : vector<16x256xf32> to vector<16x256xbf16>
    %c0_26 = arith.constant 0 : index
    %c0_27 = arith.constant 0 : index
    %55 = vector.load %arg6[%c0_26, %c0_27] : memref<32x16xbf16, #tpu.memory_space<vmem>>, vector<32x16xbf16>
    %cst_28 = arith.constant dense<0.000000e+00> : vector<32x256xf32>
    %56 = tpu.matmul %55, %54, %cst_28 {dimension_numbers = #tpu.dot_dimension_numbers<[1], [0], [0], [1], [0, 0, 1, 1], [], []>} : vector<32x16xbf16>, vector<16x256xbf16>, vector<32x256xf32> -> vector<32x256xf32>
    %c0_29 = arith.constant 0 : index
    %c0_30 = arith.constant 0 : index
    %57 = vector.load %arg7[%c0_29, %c0_30] : memref<32x1xf32, #tpu.memory_space<vmem>>, vector<32x1xf32>
    %58 = vector.broadcast %57 : vector<32x1xf32> to vector<32x256xf32>
    %59 = arith.addf %56, %58 : vector<32x256xf32>
    %60 = arith.addf %59, %24 : vector<32x256xf32>
    %cst_31 = arith.constant 0.707106769 : f32
    %61 = vector.broadcast %cst_31 : f32 to vector<32x256xf32>
    %62 = arith.mulf %60, %61 : vector<32x256xf32>
    %cst_32 = arith.constant 0.000000e+00 : f32
    %63 = vector.shape_cast %15 : vector<1x256xi1> to vector<1x256xi1>
    %64 = vector.broadcast %63 : vector<1x256xi1> to vector<32x256xi1>
    %65 = vector.broadcast %cst_32 : f32 to vector<32x256xf32>
    %66 = arith.select %64, %62, %65 : vector<32x256xi1>, vector<32x256xf32>
    %67 = arith.truncf %66 : vector<32x256xf32> to vector<32x256xbf16>
    %cst_33 = arith.constant 0.000000e+00 : bf16
    %68 = vector.broadcast %cst_33 : bf16 to vector<96x4xbf16>
    %c0_34 = arith.constant 0 : index
    %c0_35 = arith.constant 0 : index
    %69 = vector.load %arg60[%c0_34, %c0_35] : memref<96x256xbf16, #tpu.memory_space<vmem>>, vector<96x4xbf16>
    tpu.vector_store %arg60[%c0_34, %c0_35], %68 {strides = array<i32>} : memref<96x256xbf16, #tpu.memory_space<vmem>>, vector<96x4xbf16>,
    %70 = vector.extract_strided_slice %67 {offsets = [0, 0], sizes = [32, 252], strides = [1, 1]} : vector<32x256xbf16> to vector<32x252xbf16>
    %c0_36 = arith.constant 0 : index
    %c4 = arith.constant 4 : index
    %71 = vector.load %arg60[%c0_36, %c4] : memref<96x256xbf16, #tpu.memory_space<vmem>>, vector<32x252xbf16>
    tpu.vector_store %arg60[%c0_36, %c4], %70 {strides = array<i32>} : memref<96x256xbf16, #tpu.memory_space<vmem>>, vector<32x252xbf16>,
    %72 = vector.extract_strided_slice %67 {offsets = [0, 0], sizes = [32, 254], strides = [1, 1]} : vector<32x256xbf16> to vector<32x254xbf16>
    %c32_37 = arith.constant 32 : index
    %c2_38 = arith.constant 2 : index
    %73 = vector.load %arg60[%c32_37, %c2_38] : memref<96x256xbf16, #tpu.memory_space<vmem>>, vector<32x254xbf16>
    tpu.vector_store %arg60[%c32_37, %c2_38], %72 {strides = array<i32>} : memref<96x256xbf16, #tpu.memory_space<vmem>>, vector<32x254xbf16>,
    %c64_39 = arith.constant 64 : index
    %c0_40 = arith.constant 0 : index
    %74 = vector.load %arg60[%c64_39, %c0_40] : memref<96x256xbf16, #tpu.memory_space<vmem>>, vector<32x256xbf16>
    tpu.vector_store %arg60[%c64_39, %c0_40], %67 {strides = array<i32>} : memref<96x256xbf16, #tpu.memory_space<vmem>>, vector<32x256xbf16>,
    %c0_41 = arith.constant 0 : index
    %c0_42 = arith.constant 0 : index
    %75 = vector.load %arg8[%c0_41, %c0_42] : memref<32x96xbf16, #tpu.memory_space<vmem>>, vector<32x96xbf16>
    %c0_43 = arith.constant 0 : index
    %c0_44 = arith.constant 0 : index
    %76 = vector.load %arg60[%c0_43, %c0_44] : memref<96x256xbf16, #tpu.memory_space<vmem>>, vector<96x256xbf16>
    %cst_45 = arith.constant dense<0.000000e+00> : vector<32x256xf32>
    %77 = tpu.matmul %75, %76, %cst_45 {dimension_numbers = #tpu.dot_dimension_numbers<[1], [0], [0], [1], [0, 0, 1, 1], [], []>} : vector<32x96xbf16>, vector<96x256xbf16>, vector<32x256xf32> -> vector<32x256xf32>
    %c0_46 = arith.constant 0 : index
    %c0_47 = arith.constant 0 : index
    %78 = vector.load %arg9[%c0_46, %c0_47] : memref<32x1xf32, #tpu.memory_space<vmem>>, vector<32x1xf32>
    %79 = vector.broadcast %78 : vector<32x1xf32> to vector<32x256xf32>
    %80 = arith.addf %77, %79 : vector<32x256xf32>
    %81 = vector.extract_strided_slice %80 {offsets = [0, 0], sizes = [16, 256], strides = [1, 1]} : vector<32x256xf32> to vector<16x256xf32>
    %82 = math.tanh %81 : vector<16x256xf32>
    %83 = vector.extract_strided_slice %80 {offsets = [16, 0], sizes = [16, 256], strides = [1, 1]} : vector<32x256xf32> to vector<16x256xf32>
    %cst_48 = arith.constant 5.000000e-01 : f32
    %84 = vector.broadcast %cst_48 : f32 to vector<16x256xf32>
    %85 = arith.mulf %84, %83 : vector<16x256xf32>
    %86 = math.tanh %85 : vector<16x256xf32>
    %cst_49 = arith.constant 5.000000e-01 : f32
    %87 = vector.broadcast %cst_49 : f32 to vector<16x256xf32>
    %88 = arith.mulf %87, %86 : vector<16x256xf32>
    %cst_50 = arith.constant 5.000000e-01 : f32
    %89 = vector.broadcast %cst_50 : f32 to vector<16x256xf32>
    %90 = arith.addf %88, %89 : vector<16x256xf32>
    %91 = arith.mulf %82, %90 : vector<16x256xf32>
    %92 = arith.truncf %91 : vector<16x256xf32> to vector<16x256xbf16>
    %c0_51 = arith.constant 0 : index
    %c0_52 = arith.constant 0 : index
    %93 = vector.load %arg10[%c0_51, %c0_52] : memref<32x16xbf16, #tpu.memory_space<vmem>>, vector<32x16xbf16>
    %cst_53 = arith.constant dense<0.000000e+00> : vector<32x256xf32>
    %94 = tpu.matmul %93, %92, %cst_53 {dimension_numbers = #tpu.dot_dimension_numbers<[1], [0], [0], [1], [0, 0, 1, 1], [], []>} : vector<32x16xbf16>, vector<16x256xbf16>, vector<32x256xf32> -> vector<32x256xf32>
    %c0_54 = arith.constant 0 : index
    %c0_55 = arith.constant 0 : index
    %95 = vector.load %arg11[%c0_54, %c0_55] : memref<32x1xf32, #tpu.memory_space<vmem>>, vector<32x1xf32>
    %96 = vector.broadcast %95 : vector<32x1xf32> to vector<32x256xf32>
    %97 = arith.addf %94, %96 : vector<32x256xf32>
    %98 = arith.addf %97, %62 : vector<32x256xf32>
    %cst_56 = arith.constant 0.707106769 : f32
    %99 = vector.broadcast %cst_56 : f32 to vector<32x256xf32>
    %100 = arith.mulf %98, %99 : vector<32x256xf32>
    %cst_57 = arith.constant 0.000000e+00 : f32
    %101 = vector.broadcast %cst_57 : f32 to vector<32x256xf32>
    %102 = arith.maximumf %100, %101 : vector<32x256xf32>
    %103 = arith.truncf %102 : vector<32x256xf32> to vector<32x256xbf16>
    %c0_58 = arith.constant 0 : index
    %c0_59 = arith.constant 0 : index
    %104 = vector.load %arg12[%c0_58, %c0_59] : memref<8x32xbf16, #tpu.memory_space<vmem>>, vector<8x32xbf16>
    %cst_60 = arith.constant dense<0.000000e+00> : vector<8x256xf32>
    %105 = tpu.matmul %104, %103, %cst_60 {dimension_numbers = #tpu.dot_dimension_numbers<[1], [0], [0], [1], [0, 0, 1, 1], [], []>} : vector<8x32xbf16>, vector<32x256xbf16>, vector<8x256xf32> -> vector<8x256xf32>
    %c0_61 = arith.constant 0 : index
    %c0_62 = arith.constant 0 : index
    %106 = vector.load %arg13[%c0_61, %c0_62] : memref<8x1xf32, #tpu.memory_space<vmem>>, vector<8x1xf32>
    %107 = vector.broadcast %106 : vector<8x1xf32> to vector<8x256xf32>
    %108 = arith.addf %105, %107 : vector<8x256xf32>
    %109 = vector.extract_strided_slice %108 {offsets = [0, 0], sizes = [1, 256], strides = [1, 1]} : vector<8x256xf32> to vector<1x256xf32>
    %110 = vector.extract_strided_slice %108 {offsets = [1, 0], sizes = [1, 256], strides = [1, 1]} : vector<8x256xf32> to vector<1x256xf32>
    %111 = math.exp %110 : vector<1x256xf32>
    %112 = arith.mulf %17, %111 : vector<1x256xf32>
    %113 = arith.addf %112, %109 : vector<1x256xf32>
    %c0_63 = arith.constant 0 : index
    %c0_64 = arith.constant 0 : index
    %114 = vector.load %arg14[%c0_63, %c0_64] : memref<32x1xf32, #tpu.memory_space<vmem>>, vector<32x1xf32>
    %115 = vector.broadcast %114 : vector<32x1xf32> to vector<32x256xf32>
    %116 = vector.broadcast %113 : vector<1x256xf32> to vector<32x256xf32>
    %117 = arith.mulf %115, %116 : vector<32x256xf32>
    %c0_65 = arith.constant 0 : index
    %c0_66 = arith.constant 0 : index
    %118 = vector.load %arg15[%c0_65, %c0_66] : memref<32x1xf32, #tpu.memory_space<vmem>>, vector<32x1xf32>
    %119 = vector.broadcast %118 : vector<32x1xf32> to vector<32x256xf32>
    %120 = arith.addf %117, %119 : vector<32x256xf32>
    %cst_67 = arith.constant 0.000000e+00 : f32
    %121 = vector.shape_cast %15 : vector<1x256xi1> to vector<1x256xi1>
    %122 = vector.broadcast %121 : vector<1x256xi1> to vector<32x256xi1>
    %123 = vector.broadcast %cst_67 : f32 to vector<32x256xf32>
    %124 = arith.select %122, %120, %123 : vector<32x256xi1>, vector<32x256xf32>
    %125 = arith.truncf %124 : vector<32x256xf32> to vector<32x256xbf16>
    %cst_68 = arith.constant 0.000000e+00 : bf16
    %126 = vector.broadcast %cst_68 : bf16 to vector<96x4xbf16>
    %c0_69 = arith.constant 0 : index
    %c0_70 = arith.constant 0 : index
    %127 = vector.load %arg60[%c0_69, %c0_70] : memref<96x256xbf16, #tpu.memory_space<vmem>>, vector<96x4xbf16>
    tpu.vector_store %arg60[%c0_69, %c0_70], %126 {strides = array<i32>} : memref<96x256xbf16, #tpu.memory_space<vmem>>, vector<96x4xbf16>,
    %128 = vector.extract_strided_slice %125 {offsets = [0, 0], sizes = [32, 254], strides = [1, 1]} : vector<32x256xbf16> to vector<32x254xbf16>
    %c0_71 = arith.constant 0 : index
    %c2_72 = arith.constant 2 : index
    %129 = vector.load %arg60[%c0_71, %c2_72] : memref<96x256xbf16, #tpu.memory_space<vmem>>, vector<32x254xbf16>
    tpu.vector_store %arg60[%c0_71, %c2_72], %128 {strides = array<i32>} : memref<96x256xbf16, #tpu.memory_space<vmem>>, vector<32x254xbf16>,
    %130 = vector.extract_strided_slice %125 {offsets = [0, 0], sizes = [32, 255], strides = [1, 1]} : vector<32x256xbf16> to vector<32x255xbf16>
    %c32_73 = arith.constant 32 : index
    %c1_74 = arith.constant 1 : index
    %131 = vector.load %arg60[%c32_73, %c1_74] : memref<96x256xbf16, #tpu.memory_space<vmem>>, vector<32x255xbf16>
    tpu.vector_store %arg60[%c32_73, %c1_74], %130 {strides = array<i32>} : memref<96x256xbf16, #tpu.memory_space<vmem>>, vector<32x255xbf16>,
    %c64_75 = arith.constant 64 : index
    %c0_76 = arith.constant 0 : index
    %132 = vector.load %arg60[%c64_75, %c0_76] : memref<96x256xbf16, #tpu.memory_space<vmem>>, vector<32x256xbf16>
    tpu.vector_store %arg60[%c64_75, %c0_76], %125 {strides = array<i32>} : memref<96x256xbf16, #tpu.memory_space<vmem>>, vector<32x256xbf16>,
    %c0_77 = arith.constant 0 : index
    %c0_78 = arith.constant 0 : index
    %133 = vector.load %arg16[%c0_77, %c0_78] : memref<32x96xbf16, #tpu.memory_space<vmem>>, vector<32x96xbf16>
    %c0_79 = arith.constant 0 : index
    %c0_80 = arith.constant 0 : index
    %134 = vector.load %arg60[%c0_79, %c0_80] : memref<96x256xbf16, #tpu.memory_space<vmem>>, vector<96x256xbf16>
    %cst_81 = arith.constant dense<0.000000e+00> : vector<32x256xf32>
    %135 = tpu.matmul %133, %134, %cst_81 {dimension_numbers = #tpu.dot_dimension_numbers<[1], [0], [0], [1], [0, 0, 1, 1], [], []>} : vector<32x96xbf16>, vector<96x256xbf16>, vector<32x256xf32> -> vector<32x256xf32>
    %c0_82 = arith.constant 0 : index
    %c0_83 = arith.constant 0 : index
    %136 = vector.load %arg17[%c0_82, %c0_83] : memref<32x1xf32, #tpu.memory_space<vmem>>, vector<32x1xf32>
    %137 = vector.broadcast %136 : vector<32x1xf32> to vector<32x256xf32>
    %138 = arith.addf %135, %137 : vector<32x256xf32>
    %139 = vector.extract_strided_slice %138 {offsets = [0, 0], sizes = [16, 256], strides = [1, 1]} : vector<32x256xf32> to vector<16x256xf32>
    %140 = math.tanh %139 : vector<16x256xf32>
    %141 = vector.extract_strided_slice %138 {offsets = [16, 0], sizes = [16, 256], strides = [1, 1]} : vector<32x256xf32> to vector<16x256xf32>
    %cst_84 = arith.constant 5.000000e-01 : f32
    %142 = vector.broadcast %cst_84 : f32 to vector<16x256xf32>
    %143 = arith.mulf %142, %141 : vector<16x256xf32>
    %144 = math.tanh %143 : vector<16x256xf32>
    %cst_85 = arith.constant 5.000000e-01 : f32
    %145 = vector.broadcast %cst_85 : f32 to vector<16x256xf32>
    %146 = arith.mulf %145, %144 : vector<16x256xf32>
    %cst_86 = arith.constant 5.000000e-01 : f32
    %147 = vector.broadcast %cst_86 : f32 to vector<16x256xf32>
    %148 = arith.addf %146, %147 : vector<16x256xf32>
    %149 = arith.mulf %140, %148 : vector<16x256xf32>
    %150 = arith.truncf %149 : vector<16x256xf32> to vector<16x256xbf16>
    %c0_87 = arith.constant 0 : index
    %c0_88 = arith.constant 0 : index
    %151 = vector.load %arg18[%c0_87, %c0_88] : memref<32x16xbf16, #tpu.memory_space<vmem>>, vector<32x16xbf16>
    %cst_89 = arith.constant dense<0.000000e+00> : vector<32x256xf32>
    %152 = tpu.matmul %151, %150, %cst_89 {dimension_numbers = #tpu.dot_dimension_numbers<[1], [0], [0], [1], [0, 0, 1, 1], [], []>} : vector<32x16xbf16>, vector<16x256xbf16>, vector<32x256xf32> -> vector<32x256xf32>
    %c0_90 = arith.constant 0 : index
    %c0_91 = arith.constant 0 : index
    %153 = vector.load %arg19[%c0_90, %c0_91] : memref<32x1xf32, #tpu.memory_space<vmem>>, vector<32x1xf32>
    %154 = vector.broadcast %153 : vector<32x1xf32> to vector<32x256xf32>
    %155 = arith.addf %152, %154 : vector<32x256xf32>
    %156 = arith.addf %155, %120 : vector<32x256xf32>
    %cst_92 = arith.constant 0.707106769 : f32
    %157 = vector.broadcast %cst_92 : f32 to vector<32x256xf32>
    %158 = arith.mulf %156, %157 : vector<32x256xf32>
    %cst_93 = arith.constant 0.000000e+00 : f32
    %159 = vector.shape_cast %15 : vector<1x256xi1> to vector<1x256xi1>
    %160 = vector.broadcast %159 : vector<1x256xi1> to vector<32x256xi1>
    %161 = vector.broadcast %cst_93 : f32 to vector<32x256xf32>
    %162 = arith.select %160, %158, %161 : vector<32x256xi1>, vector<32x256xf32>
    %163 = arith.truncf %162 : vector<32x256xf32> to vector<32x256xbf16>
    %cst_94 = arith.constant 0.000000e+00 : bf16
    %164 = vector.broadcast %cst_94 : bf16 to vector<96x4xbf16>
    %c0_95 = arith.constant 0 : index
    %c0_96 = arith.constant 0 : index
    %165 = vector.load %arg60[%c0_95, %c0_96] : memref<96x256xbf16, #tpu.memory_space<vmem>>, vector<96x4xbf16>
    tpu.vector_store %arg60[%c0_95, %c0_96], %164 {strides = array<i32>} : memref<96x256xbf16, #tpu.memory_space<vmem>>, vector<96x4xbf16>,
    %166 = vector.extract_strided_slice %163 {offsets = [0, 0], sizes = [32, 252], strides = [1, 1]} : vector<32x256xbf16> to vector<32x252xbf16>
    %c0_97 = arith.constant 0 : index
    %c4_98 = arith.constant 4 : index
    %167 = vector.load %arg60[%c0_97, %c4_98] : memref<96x256xbf16, #tpu.memory_space<vmem>>, vector<32x252xbf16>
    tpu.vector_store %arg60[%c0_97, %c4_98], %166 {strides = array<i32>} : memref<96x256xbf16, #tpu.memory_space<vmem>>, vector<32x252xbf16>,
    %168 = vector.extract_strided_slice %163 {offsets = [0, 0], sizes = [32, 254], strides = [1, 1]} : vector<32x256xbf16> to vector<32x254xbf16>
    %c32_99 = arith.constant 32 : index
    %c2_100 = arith.constant 2 : index
    %169 = vector.load %arg60[%c32_99, %c2_100] : memref<96x256xbf16, #tpu.memory_space<vmem>>, vector<32x254xbf16>
    tpu.vector_store %arg60[%c32_99, %c2_100], %168 {strides = array<i32>} : memref<96x256xbf16, #tpu.memory_space<vmem>>, vector<32x254xbf16>,
    %c64_101 = arith.constant 64 : index
    %c0_102 = arith.constant 0 : index
    %170 = vector.load %arg60[%c64_101, %c0_102] : memref<96x256xbf16, #tpu.memory_space<vmem>>, vector<32x256xbf16>
    tpu.vector_store %arg60[%c64_101, %c0_102], %163 {strides = array<i32>} : memref<96x256xbf16, #tpu.memory_space<vmem>>, vector<32x256xbf16>,
    %c0_103 = arith.constant 0 : index
    %c0_104 = arith.constant 0 : index
    %171 = vector.load %arg20[%c0_103, %c0_104] : memref<32x96xbf16, #tpu.memory_space<vmem>>, vector<32x96xbf16>
    %c0_105 = arith.constant 0 : index
    %c0_106 = arith.constant 0 : index
    %172 = vector.load %arg60[%c0_105, %c0_106] : memref<96x256xbf16, #tpu.memory_space<vmem>>, vector<96x256xbf16>
    %cst_107 = arith.constant dense<0.000000e+00> : vector<32x256xf32>
    %173 = tpu.matmul %171, %172, %cst_107 {dimension_numbers = #tpu.dot_dimension_numbers<[1], [0], [0], [1], [0, 0, 1, 1], [], []>} : vector<32x96xbf16>, vector<96x256xbf16>, vector<32x256xf32> -> vector<32x256xf32>
    %c0_108 = arith.constant 0 : index
    %c0_109 = arith.constant 0 : index
    %174 = vector.load %arg21[%c0_108, %c0_109] : memref<32x1xf32, #tpu.memory_space<vmem>>, vector<32x1xf32>
    %175 = vector.broadcast %174 : vector<32x1xf32> to vector<32x256xf32>
    %176 = arith.addf %173, %175 : vector<32x256xf32>
    %177 = vector.extract_strided_slice %176 {offsets = [0, 0], sizes = [16, 256], strides = [1, 1]} : vector<32x256xf32> to vector<16x256xf32>
    %178 = math.tanh %177 : vector<16x256xf32>
    %179 = vector.extract_strided_slice %176 {offsets = [16, 0], sizes = [16, 256], strides = [1, 1]} : vector<32x256xf32> to vector<16x256xf32>
    %cst_110 = arith.constant 5.000000e-01 : f32
    %180 = vector.broadcast %cst_110 : f32 to vector<16x256xf32>
    %181 = arith.mulf %180, %179 : vector<16x256xf32>
    %182 = math.tanh %181 : vector<16x256xf32>
    %cst_111 = arith.constant 5.000000e-01 : f32
    %183 = vector.broadcast %cst_111 : f32 to vector<16x256xf32>
    %184 = arith.mulf %183, %182 : vector<16x256xf32>
    %cst_112 = arith.constant 5.000000e-01 : f32
    %185 = vector.broadcast %cst_112 : f32 to vector<16x256xf32>
    %186 = arith.addf %184, %185 : vector<16x256xf32>
    %187 = arith.mulf %178, %186 : vector<16x256xf32>
    %188 = arith.truncf %187 : vector<16x256xf32> to vector<16x256xbf16>
    %c0_113 = arith.constant 0 : index
    %c0_114 = arith.constant 0 : index
    %189 = vector.load %arg22[%c0_113, %c0_114] : memref<32x16xbf16, #tpu.memory_space<vmem>>, vector<32x16xbf16>
    %cst_115 = arith.constant dense<0.000000e+00> : vector<32x256xf32>
    %190 = tpu.matmul %189, %188, %cst_115 {dimension_numbers = #tpu.dot_dimension_numbers<[1], [0], [0], [1], [0, 0, 1, 1], [], []>} : vector<32x16xbf16>, vector<16x256xbf16>, vector<32x256xf32> -> vector<32x256xf32>
    %c0_116 = arith.constant 0 : index
    %c0_117 = arith.constant 0 : index
    %191 = vector.load %arg23[%c0_116, %c0_117] : memref<32x1xf32, #tpu.memory_space<vmem>>, vector<32x1xf32>
    %192 = vector.broadcast %191 : vector<32x1xf32> to vector<32x256xf32>
    %193 = arith.addf %190, %192 : vector<32x256xf32>
    %194 = arith.addf %193, %158 : vector<32x256xf32>
    %cst_118 = arith.constant 0.707106769 : f32
    %195 = vector.broadcast %cst_118 : f32 to vector<32x256xf32>
    %196 = arith.mulf %194, %195 : vector<32x256xf32>
    %cst_119 = arith.constant 0.000000e+00 : f32
    %197 = vector.broadcast %cst_119 : f32 to vector<32x256xf32>
    %198 = arith.maximumf %196, %197 : vector<32x256xf32>
    %199 = arith.truncf %198 : vector<32x256xf32> to vector<32x256xbf16>
    %c0_120 = arith.constant 0 : index
    %c0_121 = arith.constant 0 : index
    %200 = vector.load %arg24[%c0_120, %c0_121] : memref<8x32xbf16, #tpu.memory_space<vmem>>, vector<8x32xbf16>
    %cst_122 = arith.constant dense<0.000000e+00> : vector<8x256xf32>
    %201 = tpu.matmul %200, %199, %cst_122 {dimension_numbers = #tpu.dot_dimension_numbers<[1], [0], [0], [1], [0, 0, 1, 1], [], []>} : vector<8x32xbf16>, vector<32x256xbf16>, vector<8x256xf32> -> vector<8x256xf32>
    %c0_123 = arith.constant 0 : index
    %c0_124 = arith.constant 0 : index
    %202 = vector.load %arg25[%c0_123, %c0_124] : memref<8x1xf32, #tpu.memory_space<vmem>>, vector<8x1xf32>
    %203 = vector.broadcast %202 : vector<8x1xf32> to vector<8x256xf32>
    %204 = arith.addf %201, %203 : vector<8x256xf32>
    %205 = vector.extract_strided_slice %204 {offsets = [0, 0], sizes = [1, 256], strides = [1, 1]} : vector<8x256xf32> to vector<1x256xf32>
    %206 = vector.extract_strided_slice %204 {offsets = [1, 0], sizes = [1, 256], strides = [1, 1]} : vector<8x256xf32> to vector<1x256xf32>
    %207 = math.exp %206 : vector<1x256xf32>
    %208 = arith.mulf %113, %207 : vector<1x256xf32>
    %209 = arith.addf %208, %205 : vector<1x256xf32>
    %c0_125 = arith.constant 0 : index
    %c0_126 = arith.constant 0 : index
    %210 = vector.load %arg26[%c0_125, %c0_126] : memref<32x1xf32, #tpu.memory_space<vmem>>, vector<32x1xf32>
    %211 = vector.broadcast %210 : vector<32x1xf32> to vector<32x256xf32>
    %212 = vector.broadcast %209 : vector<1x256xf32> to vector<32x256xf32>
    %213 = arith.mulf %211, %212 : vector<32x256xf32>
    %c0_127 = arith.constant 0 : index
    %c0_128 = arith.constant 0 : index
    %214 = vector.load %arg27[%c0_127, %c0_128] : memref<32x1xf32, #tpu.memory_space<vmem>>, vector<32x1xf32>
    %215 = vector.broadcast %214 : vector<32x1xf32> to vector<32x256xf32>
    %216 = arith.addf %213, %215 : vector<32x256xf32>
    %cst_129 = arith.constant 0.000000e+00 : f32
    %217 = vector.shape_cast %15 : vector<1x256xi1> to vector<1x256xi1>
    %218 = vector.broadcast %217 : vector<1x256xi1> to vector<32x256xi1>
    %219 = vector.broadcast %cst_129 : f32 to vector<32x256xf32>
    %220 = arith.select %218, %216, %219 : vector<32x256xi1>, vector<32x256xf32>
    %221 = arith.truncf %220 : vector<32x256xf32> to vector<32x256xbf16>
    %cst_130 = arith.constant 0.000000e+00 : bf16
    %222 = vector.broadcast %cst_130 : bf16 to vector<96x4xbf16>
    %c0_131 = arith.constant 0 : index
    %c0_132 = arith.constant 0 : index
    %223 = vector.load %arg60[%c0_131, %c0_132] : memref<96x256xbf16, #tpu.memory_space<vmem>>, vector<96x4xbf16>
    tpu.vector_store %arg60[%c0_131, %c0_132], %222 {strides = array<i32>} : memref<96x256xbf16, #tpu.memory_space<vmem>>, vector<96x4xbf16>,
    %224 = vector.extract_strided_slice %221 {offsets = [0, 0], sizes = [32, 254], strides = [1, 1]} : vector<32x256xbf16> to vector<32x254xbf16>
    %c0_133 = arith.constant 0 : index
    %c2_134 = arith.constant 2 : index
    %225 = vector.load %arg60[%c0_133, %c2_134] : memref<96x256xbf16, #tpu.memory_space<vmem>>, vector<32x254xbf16>
    tpu.vector_store %arg60[%c0_133, %c2_134], %224 {strides = array<i32>} : memref<96x256xbf16, #tpu.memory_space<vmem>>, vector<32x254xbf16>,
    %226 = vector.extract_strided_slice %221 {offsets = [0, 0], sizes = [32, 255], strides = [1, 1]} : vector<32x256xbf16> to vector<32x255xbf16>
    %c32_135 = arith.constant 32 : index
    %c1_136 = arith.constant 1 : index
    %227 = vector.load %arg60[%c32_135, %c1_136] : memref<96x256xbf16, #tpu.memory_space<vmem>>, vector<32x255xbf16>
    tpu.vector_store %arg60[%c32_135, %c1_136], %226 {strides = array<i32>} : memref<96x256xbf16, #tpu.memory_space<vmem>>, vector<32x255xbf16>,
    %c64_137 = arith.constant 64 : index
    %c0_138 = arith.constant 0 : index
    %228 = vector.load %arg60[%c64_137, %c0_138] : memref<96x256xbf16, #tpu.memory_space<vmem>>, vector<32x256xbf16>
    tpu.vector_store %arg60[%c64_137, %c0_138], %221 {strides = array<i32>} : memref<96x256xbf16, #tpu.memory_space<vmem>>, vector<32x256xbf16>,
    %c0_139 = arith.constant 0 : index
    %c0_140 = arith.constant 0 : index
    %229 = vector.load %arg28[%c0_139, %c0_140] : memref<32x96xbf16, #tpu.memory_space<vmem>>, vector<32x96xbf16>
    %c0_141 = arith.constant 0 : index
    %c0_142 = arith.constant 0 : index
    %230 = vector.load %arg60[%c0_141, %c0_142] : memref<96x256xbf16, #tpu.memory_space<vmem>>, vector<96x256xbf16>
    %cst_143 = arith.constant dense<0.000000e+00> : vector<32x256xf32>
    %231 = tpu.matmul %229, %230, %cst_143 {dimension_numbers = #tpu.dot_dimension_numbers<[1], [0], [0], [1], [0, 0, 1, 1], [], []>} : vector<32x96xbf16>, vector<96x256xbf16>, vector<32x256xf32> -> vector<32x256xf32>
    %c0_144 = arith.constant 0 : index
    %c0_145 = arith.constant 0 : index
    %232 = vector.load %arg29[%c0_144, %c0_145] : memref<32x1xf32, #tpu.memory_space<vmem>>, vector<32x1xf32>
    %233 = vector.broadcast %232 : vector<32x1xf32> to vector<32x256xf32>
    %234 = arith.addf %231, %233 : vector<32x256xf32>
    %235 = vector.extract_strided_slice %234 {offsets = [0, 0], sizes = [16, 256], strides = [1, 1]} : vector<32x256xf32> to vector<16x256xf32>
    %236 = math.tanh %235 : vector<16x256xf32>
    %237 = vector.extract_strided_slice %234 {offsets = [16, 0], sizes = [16, 256], strides = [1, 1]} : vector<32x256xf32> to vector<16x256xf32>
    %cst_146 = arith.constant 5.000000e-01 : f32
    %238 = vector.broadcast %cst_146 : f32 to vector<16x256xf32>
    %239 = arith.mulf %238, %237 : vector<16x256xf32>
    %240 = math.tanh %239 : vector<16x256xf32>
    %cst_147 = arith.constant 5.000000e-01 : f32
    %241 = vector.broadcast %cst_147 : f32 to vector<16x256xf32>
    %242 = arith.mulf %241, %240 : vector<16x256xf32>
    %cst_148 = arith.constant 5.000000e-01 : f32
    %243 = vector.broadcast %cst_148 : f32 to vector<16x256xf32>
    %244 = arith.addf %242, %243 : vector<16x256xf32>
    %245 = arith.mulf %236, %244 : vector<16x256xf32>
    %246 = arith.truncf %245 : vector<16x256xf32> to vector<16x256xbf16>
    %c0_149 = arith.constant 0 : index
    %c0_150 = arith.constant 0 : index
    %247 = vector.load %arg30[%c0_149, %c0_150] : memref<32x16xbf16, #tpu.memory_space<vmem>>, vector<32x16xbf16>
    %cst_151 = arith.constant dense<0.000000e+00> : vector<32x256xf32>
    %248 = tpu.matmul %247, %246, %cst_151 {dimension_numbers = #tpu.dot_dimension_numbers<[1], [0], [0], [1], [0, 0, 1, 1], [], []>} : vector<32x16xbf16>, vector<16x256xbf16>, vector<32x256xf32> -> vector<32x256xf32>
    %c0_152 = arith.constant 0 : index
    %c0_153 = arith.constant 0 : index
    %249 = vector.load %arg31[%c0_152, %c0_153] : memref<32x1xf32, #tpu.memory_space<vmem>>, vector<32x1xf32>
    %250 = vector.broadcast %249 : vector<32x1xf32> to vector<32x256xf32>
    %251 = arith.addf %248, %250 : vector<32x256xf32>
    %252 = arith.addf %251, %216 : vector<32x256xf32>
    %cst_154 = arith.constant 0.707106769 : f32
    %253 = vector.broadcast %cst_154 : f32 to vector<32x256xf32>
    %254 = arith.mulf %252, %253 : vector<32x256xf32>
    %cst_155 = arith.constant 0.000000e+00 : f32
    %255 = vector.shape_cast %15 : vector<1x256xi1> to vector<1x256xi1>
    %256 = vector.broadcast %255 : vector<1x256xi1> to vector<32x256xi1>
    %257 = vector.broadcast %cst_155 : f32 to vector<32x256xf32>
    %258 = arith.select %256, %254, %257 : vector<32x256xi1>, vector<32x256xf32>
    %259 = arith.truncf %258 : vector<32x256xf32> to vector<32x256xbf16>
    %cst_156 = arith.constant 0.000000e+00 : bf16
    %260 = vector.broadcast %cst_156 : bf16 to vector<96x4xbf16>
    %c0_157 = arith.constant 0 : index
    %c0_158 = arith.constant 0 : index
    %261 = vector.load %arg60[%c0_157, %c0_158] : memref<96x256xbf16, #tpu.memory_space<vmem>>, vector<96x4xbf16>
    tpu.vector_store %arg60[%c0_157, %c0_158], %260 {strides = array<i32>} : memref<96x256xbf16, #tpu.memory_space<vmem>>, vector<96x4xbf16>,
    %262 = vector.extract_strided_slice %259 {offsets = [0, 0], sizes = [32, 252], strides = [1, 1]} : vector<32x256xbf16> to vector<32x252xbf16>
    %c0_159 = arith.constant 0 : index
    %c4_160 = arith.constant 4 : index
    %263 = vector.load %arg60[%c0_159, %c4_160] : memref<96x256xbf16, #tpu.memory_space<vmem>>, vector<32x252xbf16>
    tpu.vector_store %arg60[%c0_159, %c4_160], %262 {strides = array<i32>} : memref<96x256xbf16, #tpu.memory_space<vmem>>, vector<32x252xbf16>,
    %264 = vector.extract_strided_slice %259 {offsets = [0, 0], sizes = [32, 254], strides = [1, 1]} : vector<32x256xbf16> to vector<32x254xbf16>
    %c32_161 = arith.constant 32 : index
    %c2_162 = arith.constant 2 : index
    %265 = vector.load %arg60[%c32_161, %c2_162] : memref<96x256xbf16, #tpu.memory_space<vmem>>, vector<32x254xbf16>
    tpu.vector_store %arg60[%c32_161, %c2_162], %264 {strides = array<i32>} : memref<96x256xbf16, #tpu.memory_space<vmem>>, vector<32x254xbf16>,
    %c64_163 = arith.constant 64 : index
    %c0_164 = arith.constant 0 : index
    %266 = vector.load %arg60[%c64_163, %c0_164] : memref<96x256xbf16, #tpu.memory_space<vmem>>, vector<32x256xbf16>
    tpu.vector_store %arg60[%c64_163, %c0_164], %259 {strides = array<i32>} : memref<96x256xbf16, #tpu.memory_space<vmem>>, vector<32x256xbf16>,
    %c0_165 = arith.constant 0 : index
    %c0_166 = arith.constant 0 : index
    %267 = vector.load %arg32[%c0_165, %c0_166] : memref<32x96xbf16, #tpu.memory_space<vmem>>, vector<32x96xbf16>
    %c0_167 = arith.constant 0 : index
    %c0_168 = arith.constant 0 : index
    %268 = vector.load %arg60[%c0_167, %c0_168] : memref<96x256xbf16, #tpu.memory_space<vmem>>, vector<96x256xbf16>
    %cst_169 = arith.constant dense<0.000000e+00> : vector<32x256xf32>
    %269 = tpu.matmul %267, %268, %cst_169 {dimension_numbers = #tpu.dot_dimension_numbers<[1], [0], [0], [1], [0, 0, 1, 1], [], []>} : vector<32x96xbf16>, vector<96x256xbf16>, vector<32x256xf32> -> vector<32x256xf32>
    %c0_170 = arith.constant 0 : index
    %c0_171 = arith.constant 0 : index
    %270 = vector.load %arg33[%c0_170, %c0_171] : memref<32x1xf32, #tpu.memory_space<vmem>>, vector<32x1xf32>
    %271 = vector.broadcast %270 : vector<32x1xf32> to vector<32x256xf32>
    %272 = arith.addf %269, %271 : vector<32x256xf32>
    %273 = vector.extract_strided_slice %272 {offsets = [0, 0], sizes = [16, 256], strides = [1, 1]} : vector<32x256xf32> to vector<16x256xf32>
    %274 = math.tanh %273 : vector<16x256xf32>
    %275 = vector.extract_strided_slice %272 {offsets = [16, 0], sizes = [16, 256], strides = [1, 1]} : vector<32x256xf32> to vector<16x256xf32>
    %cst_172 = arith.constant 5.000000e-01 : f32
    %276 = vector.broadcast %cst_172 : f32 to vector<16x256xf32>
    %277 = arith.mulf %276, %275 : vector<16x256xf32>
    %278 = math.tanh %277 : vector<16x256xf32>
    %cst_173 = arith.constant 5.000000e-01 : f32
    %279 = vector.broadcast %cst_173 : f32 to vector<16x256xf32>
    %280 = arith.mulf %279, %278 : vector<16x256xf32>
    %cst_174 = arith.constant 5.000000e-01 : f32
    %281 = vector.broadcast %cst_174 : f32 to vector<16x256xf32>
    %282 = arith.addf %280, %281 : vector<16x256xf32>
    %283 = arith.mulf %274, %282 : vector<16x256xf32>
    %284 = arith.truncf %283 : vector<16x256xf32> to vector<16x256xbf16>
    %c0_175 = arith.constant 0 : index
    %c0_176 = arith.constant 0 : index
    %285 = vector.load %arg34[%c0_175, %c0_176] : memref<32x16xbf16, #tpu.memory_space<vmem>>, vector<32x16xbf16>
    %cst_177 = arith.constant dense<0.000000e+00> : vector<32x256xf32>
    %286 = tpu.matmul %285, %284, %cst_177 {dimension_numbers = #tpu.dot_dimension_numbers<[1], [0], [0], [1], [0, 0, 1, 1], [], []>} : vector<32x16xbf16>, vector<16x256xbf16>, vector<32x256xf32> -> vector<32x256xf32>
    %c0_178 = arith.constant 0 : index
    %c0_179 = arith.constant 0 : index
    %287 = vector.load %arg35[%c0_178, %c0_179] : memref<32x1xf32, #tpu.memory_space<vmem>>, vector<32x1xf32>
    %288 = vector.broadcast %287 : vector<32x1xf32> to vector<32x256xf32>
    %289 = arith.addf %286, %288 : vector<32x256xf32>
    %290 = arith.addf %289, %254 : vector<32x256xf32>
    %cst_180 = arith.constant 0.707106769 : f32
    %291 = vector.broadcast %cst_180 : f32 to vector<32x256xf32>
    %292 = arith.mulf %290, %291 : vector<32x256xf32>
    %cst_181 = arith.constant 0.000000e+00 : f32
    %293 = vector.broadcast %cst_181 : f32 to vector<32x256xf32>
    %294 = arith.maximumf %292, %293 : vector<32x256xf32>
    %295 = arith.truncf %294 : vector<32x256xf32> to vector<32x256xbf16>
    %c0_182 = arith.constant 0 : index
    %c0_183 = arith.constant 0 : index
    %296 = vector.load %arg36[%c0_182, %c0_183] : memref<8x32xbf16, #tpu.memory_space<vmem>>, vector<8x32xbf16>
    %cst_184 = arith.constant dense<0.000000e+00> : vector<8x256xf32>
    %297 = tpu.matmul %296, %295, %cst_184 {dimension_numbers = #tpu.dot_dimension_numbers<[1], [0], [0], [1], [0, 0, 1, 1], [], []>} : vector<8x32xbf16>, vector<32x256xbf16>, vector<8x256xf32> -> vector<8x256xf32>
    %c0_185 = arith.constant 0 : index
    %c0_186 = arith.constant 0 : index
    %298 = vector.load %arg37[%c0_185, %c0_186] : memref<8x1xf32, #tpu.memory_space<vmem>>, vector<8x1xf32>
    %299 = vector.broadcast %298 : vector<8x1xf32> to vector<8x256xf32>
    %300 = arith.addf %297, %299 : vector<8x256xf32>
    %301 = vector.extract_strided_slice %300 {offsets = [0, 0], sizes = [1, 256], strides = [1, 1]} : vector<8x256xf32> to vector<1x256xf32>
    %302 = vector.extract_strided_slice %300 {offsets = [1, 0], sizes = [1, 256], strides = [1, 1]} : vector<8x256xf32> to vector<1x256xf32>
    %303 = math.exp %302 : vector<1x256xf32>
    %304 = arith.mulf %209, %303 : vector<1x256xf32>
    %305 = arith.addf %304, %301 : vector<1x256xf32>
    %c0_187 = arith.constant 0 : index
    %c0_188 = arith.constant 0 : index
    %306 = vector.load %arg38[%c0_187, %c0_188] : memref<32x1xf32, #tpu.memory_space<vmem>>, vector<32x1xf32>
    %307 = vector.broadcast %306 : vector<32x1xf32> to vector<32x256xf32>
    %308 = vector.broadcast %305 : vector<1x256xf32> to vector<32x256xf32>
    %309 = arith.mulf %307, %308 : vector<32x256xf32>
    %c0_189 = arith.constant 0 : index
    %c0_190 = arith.constant 0 : index
    %310 = vector.load %arg39[%c0_189, %c0_190] : memref<32x1xf32, #tpu.memory_space<vmem>>, vector<32x1xf32>
    %311 = vector.broadcast %310 : vector<32x1xf32> to vector<32x256xf32>
    %312 = arith.addf %309, %311 : vector<32x256xf32>
    %cst_191 = arith.constant 0.000000e+00 : f32
    %313 = vector.shape_cast %15 : vector<1x256xi1> to vector<1x256xi1>
    %314 = vector.broadcast %313 : vector<1x256xi1> to vector<32x256xi1>
    %315 = vector.broadcast %cst_191 : f32 to vector<32x256xf32>
    %316 = arith.select %314, %312, %315 : vector<32x256xi1>, vector<32x256xf32>
    %317 = arith.truncf %316 : vector<32x256xf32> to vector<32x256xbf16>
    %cst_192 = arith.constant 0.000000e+00 : bf16
    %318 = vector.broadcast %cst_192 : bf16 to vector<96x4xbf16>
    %c0_193 = arith.constant 0 : index
    %c0_194 = arith.constant 0 : index
    %319 = vector.load %arg60[%c0_193, %c0_194] : memref<96x256xbf16, #tpu.memory_space<vmem>>, vector<96x4xbf16>
    tpu.vector_store %arg60[%c0_193, %c0_194], %318 {strides = array<i32>} : memref<96x256xbf16, #tpu.memory_space<vmem>>, vector<96x4xbf16>,
    %320 = vector.extract_strided_slice %317 {offsets = [0, 0], sizes = [32, 254], strides = [1, 1]} : vector<32x256xbf16> to vector<32x254xbf16>
    %c0_195 = arith.constant 0 : index
    %c2_196 = arith.constant 2 : index
    %321 = vector.load %arg60[%c0_195, %c2_196] : memref<96x256xbf16, #tpu.memory_space<vmem>>, vector<32x254xbf16>
    tpu.vector_store %arg60[%c0_195, %c2_196], %320 {strides = array<i32>} : memref<96x256xbf16, #tpu.memory_space<vmem>>, vector<32x254xbf16>,
    %322 = vector.extract_strided_slice %317 {offsets = [0, 0], sizes = [32, 255], strides = [1, 1]} : vector<32x256xbf16> to vector<32x255xbf16>
    %c32_197 = arith.constant 32 : index
    %c1_198 = arith.constant 1 : index
    %323 = vector.load %arg60[%c32_197, %c1_198] : memref<96x256xbf16, #tpu.memory_space<vmem>>, vector<32x255xbf16>
    tpu.vector_store %arg60[%c32_197, %c1_198], %322 {strides = array<i32>} : memref<96x256xbf16, #tpu.memory_space<vmem>>, vector<32x255xbf16>,
    %c64_199 = arith.constant 64 : index
    %c0_200 = arith.constant 0 : index
    %324 = vector.load %arg60[%c64_199, %c0_200] : memref<96x256xbf16, #tpu.memory_space<vmem>>, vector<32x256xbf16>
    tpu.vector_store %arg60[%c64_199, %c0_200], %317 {strides = array<i32>} : memref<96x256xbf16, #tpu.memory_space<vmem>>, vector<32x256xbf16>,
    %c0_201 = arith.constant 0 : index
    %c0_202 = arith.constant 0 : index
    %325 = vector.load %arg40[%c0_201, %c0_202] : memref<32x96xbf16, #tpu.memory_space<vmem>>, vector<32x96xbf16>
    %c0_203 = arith.constant 0 : index
    %c0_204 = arith.constant 0 : index
    %326 = vector.load %arg60[%c0_203, %c0_204] : memref<96x256xbf16, #tpu.memory_space<vmem>>, vector<96x256xbf16>
    %cst_205 = arith.constant dense<0.000000e+00> : vector<32x256xf32>
    %327 = tpu.matmul %325, %326, %cst_205 {dimension_numbers = #tpu.dot_dimension_numbers<[1], [0], [0], [1], [0, 0, 1, 1], [], []>} : vector<32x96xbf16>, vector<96x256xbf16>, vector<32x256xf32> -> vector<32x256xf32>
    %c0_206 = arith.constant 0 : index
    %c0_207 = arith.constant 0 : index
    %328 = vector.load %arg41[%c0_206, %c0_207] : memref<32x1xf32, #tpu.memory_space<vmem>>, vector<32x1xf32>
    %329 = vector.broadcast %328 : vector<32x1xf32> to vector<32x256xf32>
    %330 = arith.addf %327, %329 : vector<32x256xf32>
    %331 = vector.extract_strided_slice %330 {offsets = [0, 0], sizes = [16, 256], strides = [1, 1]} : vector<32x256xf32> to vector<16x256xf32>
    %332 = math.tanh %331 : vector<16x256xf32>
    %333 = vector.extract_strided_slice %330 {offsets = [16, 0], sizes = [16, 256], strides = [1, 1]} : vector<32x256xf32> to vector<16x256xf32>
    %cst_208 = arith.constant 5.000000e-01 : f32
    %334 = vector.broadcast %cst_208 : f32 to vector<16x256xf32>
    %335 = arith.mulf %334, %333 : vector<16x256xf32>
    %336 = math.tanh %335 : vector<16x256xf32>
    %cst_209 = arith.constant 5.000000e-01 : f32
    %337 = vector.broadcast %cst_209 : f32 to vector<16x256xf32>
    %338 = arith.mulf %337, %336 : vector<16x256xf32>
    %cst_210 = arith.constant 5.000000e-01 : f32
    %339 = vector.broadcast %cst_210 : f32 to vector<16x256xf32>
    %340 = arith.addf %338, %339 : vector<16x256xf32>
    %341 = arith.mulf %332, %340 : vector<16x256xf32>
    %342 = arith.truncf %341 : vector<16x256xf32> to vector<16x256xbf16>
    %c0_211 = arith.constant 0 : index
    %c0_212 = arith.constant 0 : index
    %343 = vector.load %arg42[%c0_211, %c0_212] : memref<32x16xbf16, #tpu.memory_space<vmem>>, vector<32x16xbf16>
    %cst_213 = arith.constant dense<0.000000e+00> : vector<32x256xf32>
    %344 = tpu.matmul %343, %342, %cst_213 {dimension_numbers = #tpu.dot_dimension_numbers<[1], [0], [0], [1], [0, 0, 1, 1], [], []>} : vector<32x16xbf16>, vector<16x256xbf16>, vector<32x256xf32> -> vector<32x256xf32>
    %c0_214 = arith.constant 0 : index
    %c0_215 = arith.constant 0 : index
    %345 = vector.load %arg43[%c0_214, %c0_215] : memref<32x1xf32, #tpu.memory_space<vmem>>, vector<32x1xf32>
    %346 = vector.broadcast %345 : vector<32x1xf32> to vector<32x256xf32>
    %347 = arith.addf %344, %346 : vector<32x256xf32>
    %348 = arith.addf %347, %312 : vector<32x256xf32>
    %cst_216 = arith.constant 0.707106769 : f32
    %349 = vector.broadcast %cst_216 : f32 to vector<32x256xf32>
    %350 = arith.mulf %348, %349 : vector<32x256xf32>
    %cst_217 = arith.constant 0.000000e+00 : f32
    %351 = vector.shape_cast %15 : vector<1x256xi1> to vector<1x256xi1>
    %352 = vector.broadcast %351 : vector<1x256xi1> to vector<32x256xi1>
    %353 = vector.broadcast %cst_217 : f32 to vector<32x256xf32>
    %354 = arith.select %352, %350, %353 : vector<32x256xi1>, vector<32x256xf32>
    %355 = arith.truncf %354 : vector<32x256xf32> to vector<32x256xbf16>
    %cst_218 = arith.constant 0.000000e+00 : bf16
    %356 = vector.broadcast %cst_218 : bf16 to vector<96x4xbf16>
    %c0_219 = arith.constant 0 : index
    %c0_220 = arith.constant 0 : index
    %357 = vector.load %arg60[%c0_219, %c0_220] : memref<96x256xbf16, #tpu.memory_space<vmem>>, vector<96x4xbf16>
    tpu.vector_store %arg60[%c0_219, %c0_220], %356 {strides = array<i32>} : memref<96x256xbf16, #tpu.memory_space<vmem>>, vector<96x4xbf16>,
    %358 = vector.extract_strided_slice %355 {offsets = [0, 0], sizes = [32, 252], strides = [1, 1]} : vector<32x256xbf16> to vector<32x252xbf16>
    %c0_221 = arith.constant 0 : index
    %c4_222 = arith.constant 4 : index
    %359 = vector.load %arg60[%c0_221, %c4_222] : memref<96x256xbf16, #tpu.memory_space<vmem>>, vector<32x252xbf16>
    tpu.vector_store %arg60[%c0_221, %c4_222], %358 {strides = array<i32>} : memref<96x256xbf16, #tpu.memory_space<vmem>>, vector<32x252xbf16>,
    %360 = vector.extract_strided_slice %355 {offsets = [0, 0], sizes = [32, 254], strides = [1, 1]} : vector<32x256xbf16> to vector<32x254xbf16>
    %c32_223 = arith.constant 32 : index
    %c2_224 = arith.constant 2 : index
    %361 = vector.load %arg60[%c32_223, %c2_224] : memref<96x256xbf16, #tpu.memory_space<vmem>>, vector<32x254xbf16>
    tpu.vector_store %arg60[%c32_223, %c2_224], %360 {strides = array<i32>} : memref<96x256xbf16, #tpu.memory_space<vmem>>, vector<32x254xbf16>,
    %c64_225 = arith.constant 64 : index
    %c0_226 = arith.constant 0 : index
    %362 = vector.load %arg60[%c64_225, %c0_226] : memref<96x256xbf16, #tpu.memory_space<vmem>>, vector<32x256xbf16>
    tpu.vector_store %arg60[%c64_225, %c0_226], %355 {strides = array<i32>} : memref<96x256xbf16, #tpu.memory_space<vmem>>, vector<32x256xbf16>,
    %c0_227 = arith.constant 0 : index
    %c0_228 = arith.constant 0 : index
    %363 = vector.load %arg44[%c0_227, %c0_228] : memref<32x96xbf16, #tpu.memory_space<vmem>>, vector<32x96xbf16>
    %c0_229 = arith.constant 0 : index
    %c0_230 = arith.constant 0 : index
    %364 = vector.load %arg60[%c0_229, %c0_230] : memref<96x256xbf16, #tpu.memory_space<vmem>>, vector<96x256xbf16>
    %cst_231 = arith.constant dense<0.000000e+00> : vector<32x256xf32>
    %365 = tpu.matmul %363, %364, %cst_231 {dimension_numbers = #tpu.dot_dimension_numbers<[1], [0], [0], [1], [0, 0, 1, 1], [], []>} : vector<32x96xbf16>, vector<96x256xbf16>, vector<32x256xf32> -> vector<32x256xf32>
    %c0_232 = arith.constant 0 : index
    %c0_233 = arith.constant 0 : index
    %366 = vector.load %arg45[%c0_232, %c0_233] : memref<32x1xf32, #tpu.memory_space<vmem>>, vector<32x1xf32>
    %367 = vector.broadcast %366 : vector<32x1xf32> to vector<32x256xf32>
    %368 = arith.addf %365, %367 : vector<32x256xf32>
    %369 = vector.extract_strided_slice %368 {offsets = [0, 0], sizes = [16, 256], strides = [1, 1]} : vector<32x256xf32> to vector<16x256xf32>
    %370 = math.tanh %369 : vector<16x256xf32>
    %371 = vector.extract_strided_slice %368 {offsets = [16, 0], sizes = [16, 256], strides = [1, 1]} : vector<32x256xf32> to vector<16x256xf32>
    %cst_234 = arith.constant 5.000000e-01 : f32
    %372 = vector.broadcast %cst_234 : f32 to vector<16x256xf32>
    %373 = arith.mulf %372, %371 : vector<16x256xf32>
    %374 = math.tanh %373 : vector<16x256xf32>
    %cst_235 = arith.constant 5.000000e-01 : f32
    %375 = vector.broadcast %cst_235 : f32 to vector<16x256xf32>
    %376 = arith.mulf %375, %374 : vector<16x256xf32>
    %cst_236 = arith.constant 5.000000e-01 : f32
    %377 = vector.broadcast %cst_236 : f32 to vector<16x256xf32>
    %378 = arith.addf %376, %377 : vector<16x256xf32>
    %379 = arith.mulf %370, %378 : vector<16x256xf32>
    %380 = arith.truncf %379 : vector<16x256xf32> to vector<16x256xbf16>
    %c0_237 = arith.constant 0 : index
    %c0_238 = arith.constant 0 : index
    %381 = vector.load %arg46[%c0_237, %c0_238] : memref<32x16xbf16, #tpu.memory_space<vmem>>, vector<32x16xbf16>
    %cst_239 = arith.constant dense<0.000000e+00> : vector<32x256xf32>
    %382 = tpu.matmul %381, %380, %cst_239 {dimension_numbers = #tpu.dot_dimension_numbers<[1], [0], [0], [1], [0, 0, 1, 1], [], []>} : vector<32x16xbf16>, vector<16x256xbf16>, vector<32x256xf32> -> vector<32x256xf32>
    %c0_240 = arith.constant 0 : index
    %c0_241 = arith.constant 0 : index
    %383 = vector.load %arg47[%c0_240, %c0_241] : memref<32x1xf32, #tpu.memory_space<vmem>>, vector<32x1xf32>
    %384 = vector.broadcast %383 : vector<32x1xf32> to vector<32x256xf32>
    %385 = arith.addf %382, %384 : vector<32x256xf32>
    %386 = arith.addf %385, %350 : vector<32x256xf32>
    %cst_242 = arith.constant 0.707106769 : f32
    %387 = vector.broadcast %cst_242 : f32 to vector<32x256xf32>
    %388 = arith.mulf %386, %387 : vector<32x256xf32>
    %cst_243 = arith.constant 0.000000e+00 : f32
    %389 = vector.shape_cast %15 : vector<1x256xi1> to vector<1x256xi1>
    %390 = vector.broadcast %389 : vector<1x256xi1> to vector<32x256xi1>
    %391 = vector.broadcast %cst_243 : f32 to vector<32x256xf32>
    %392 = arith.select %390, %388, %391 : vector<32x256xi1>, vector<32x256xf32>
    %393 = arith.truncf %392 : vector<32x256xf32> to vector<32x256xbf16>
    %cst_244 = arith.constant 0.000000e+00 : bf16
    %394 = vector.broadcast %cst_244 : bf16 to vector<96x4xbf16>
    %c0_245 = arith.constant 0 : index
    %c0_246 = arith.constant 0 : index
    %395 = vector.load %arg60[%c0_245, %c0_246] : memref<96x256xbf16, #tpu.memory_space<vmem>>, vector<96x4xbf16>
    tpu.vector_store %arg60[%c0_245, %c0_246], %394 {strides = array<i32>} : memref<96x256xbf16, #tpu.memory_space<vmem>>, vector<96x4xbf16>,
    %396 = vector.extract_strided_slice %393 {offsets = [0, 0], sizes = [32, 254], strides = [1, 1]} : vector<32x256xbf16> to vector<32x254xbf16>
    %c0_247 = arith.constant 0 : index
    %c2_248 = arith.constant 2 : index
    %397 = vector.load %arg60[%c0_247, %c2_248] : memref<96x256xbf16, #tpu.memory_space<vmem>>, vector<32x254xbf16>
    tpu.vector_store %arg60[%c0_247, %c2_248], %396 {strides = array<i32>} : memref<96x256xbf16, #tpu.memory_space<vmem>>, vector<32x254xbf16>,
    %398 = vector.extract_strided_slice %393 {offsets = [0, 0], sizes = [32, 255], strides = [1, 1]} : vector<32x256xbf16> to vector<32x255xbf16>
    %c32_249 = arith.constant 32 : index
    %c1_250 = arith.constant 1 : index
    %399 = vector.load %arg60[%c32_249, %c1_250] : memref<96x256xbf16, #tpu.memory_space<vmem>>, vector<32x255xbf16>
    tpu.vector_store %arg60[%c32_249, %c1_250], %398 {strides = array<i32>} : memref<96x256xbf16, #tpu.memory_space<vmem>>, vector<32x255xbf16>,
    %c64_251 = arith.constant 64 : index
    %c0_252 = arith.constant 0 : index
    %400 = vector.load %arg60[%c64_251, %c0_252] : memref<96x256xbf16, #tpu.memory_space<vmem>>, vector<32x256xbf16>
    tpu.vector_store %arg60[%c64_251, %c0_252], %393 {strides = array<i32>} : memref<96x256xbf16, #tpu.memory_space<vmem>>, vector<32x256xbf16>,
    %c0_253 = arith.constant 0 : index
    %c0_254 = arith.constant 0 : index
    %401 = vector.load %arg48[%c0_253, %c0_254] : memref<32x96xbf16, #tpu.memory_space<vmem>>, vector<32x96xbf16>
    %c0_255 = arith.constant 0 : index
    %c0_256 = arith.constant 0 : index
    %402 = vector.load %arg60[%c0_255, %c0_256] : memref<96x256xbf16, #tpu.memory_space<vmem>>, vector<96x256xbf16>
    %cst_257 = arith.constant dense<0.000000e+00> : vector<32x256xf32>
    %403 = tpu.matmul %401, %402, %cst_257 {dimension_numbers = #tpu.dot_dimension_numbers<[1], [0], [0], [1], [0, 0, 1, 1], [], []>} : vector<32x96xbf16>, vector<96x256xbf16>, vector<32x256xf32> -> vector<32x256xf32>
    %c0_258 = arith.constant 0 : index
    %c0_259 = arith.constant 0 : index
    %404 = vector.load %arg49[%c0_258, %c0_259] : memref<32x1xf32, #tpu.memory_space<vmem>>, vector<32x1xf32>
    %405 = vector.broadcast %404 : vector<32x1xf32> to vector<32x256xf32>
    %406 = arith.addf %403, %405 : vector<32x256xf32>
    %407 = vector.extract_strided_slice %406 {offsets = [0, 0], sizes = [16, 256], strides = [1, 1]} : vector<32x256xf32> to vector<16x256xf32>
    %408 = math.tanh %407 : vector<16x256xf32>
    %409 = vector.extract_strided_slice %406 {offsets = [16, 0], sizes = [16, 256], strides = [1, 1]} : vector<32x256xf32> to vector<16x256xf32>
    %cst_260 = arith.constant 5.000000e-01 : f32
    %410 = vector.broadcast %cst_260 : f32 to vector<16x256xf32>
    %411 = arith.mulf %410, %409 : vector<16x256xf32>
    %412 = math.tanh %411 : vector<16x256xf32>
    %cst_261 = arith.constant 5.000000e-01 : f32
    %413 = vector.broadcast %cst_261 : f32 to vector<16x256xf32>
    %414 = arith.mulf %413, %412 : vector<16x256xf32>
    %cst_262 = arith.constant 5.000000e-01 : f32
    %415 = vector.broadcast %cst_262 : f32 to vector<16x256xf32>
    %416 = arith.addf %414, %415 : vector<16x256xf32>
    %417 = arith.mulf %408, %416 : vector<16x256xf32>
    %418 = arith.truncf %417 : vector<16x256xf32> to vector<16x256xbf16>
    %c0_263 = arith.constant 0 : index
    %c0_264 = arith.constant 0 : index
    %419 = vector.load %arg50[%c0_263, %c0_264] : memref<32x16xbf16, #tpu.memory_space<vmem>>, vector<32x16xbf16>
    %cst_265 = arith.constant dense<0.000000e+00> : vector<32x256xf32>
    %420 = tpu.matmul %419, %418, %cst_265 {dimension_numbers = #tpu.dot_dimension_numbers<[1], [0], [0], [1], [0, 0, 1, 1], [], []>} : vector<32x16xbf16>, vector<16x256xbf16>, vector<32x256xf32> -> vector<32x256xf32>
    %c0_266 = arith.constant 0 : index
    %c0_267 = arith.constant 0 : index
    %421 = vector.load %arg51[%c0_266, %c0_267] : memref<32x1xf32, #tpu.memory_space<vmem>>, vector<32x1xf32>
    %422 = vector.broadcast %421 : vector<32x1xf32> to vector<32x256xf32>
    %423 = arith.addf %420, %422 : vector<32x256xf32>
    %424 = arith.addf %423, %388 : vector<32x256xf32>
    %cst_268 = arith.constant 0.707106769 : f32
    %425 = vector.broadcast %cst_268 : f32 to vector<32x256xf32>
    %426 = arith.mulf %424, %425 : vector<32x256xf32>
    %cst_269 = arith.constant 0.000000e+00 : f32
    %427 = vector.shape_cast %15 : vector<1x256xi1> to vector<1x256xi1>
    %428 = vector.broadcast %427 : vector<1x256xi1> to vector<32x256xi1>
    %429 = vector.broadcast %cst_269 : f32 to vector<32x256xf32>
    %430 = arith.select %428, %426, %429 : vector<32x256xi1>, vector<32x256xf32>
    %431 = arith.truncf %430 : vector<32x256xf32> to vector<32x256xbf16>
    %cst_270 = arith.constant 0.000000e+00 : bf16
    %432 = vector.broadcast %cst_270 : bf16 to vector<96x4xbf16>
    %c0_271 = arith.constant 0 : index
    %c0_272 = arith.constant 0 : index
    %433 = vector.load %arg60[%c0_271, %c0_272] : memref<96x256xbf16, #tpu.memory_space<vmem>>, vector<96x4xbf16>
    tpu.vector_store %arg60[%c0_271, %c0_272], %432 {strides = array<i32>} : memref<96x256xbf16, #tpu.memory_space<vmem>>, vector<96x4xbf16>,
    %434 = vector.extract_strided_slice %431 {offsets = [0, 0], sizes = [32, 252], strides = [1, 1]} : vector<32x256xbf16> to vector<32x252xbf16>
    %c0_273 = arith.constant 0 : index
    %c4_274 = arith.constant 4 : index
    %435 = vector.load %arg60[%c0_273, %c4_274] : memref<96x256xbf16, #tpu.memory_space<vmem>>, vector<32x252xbf16>
    tpu.vector_store %arg60[%c0_273, %c4_274], %434 {strides = array<i32>} : memref<96x256xbf16, #tpu.memory_space<vmem>>, vector<32x252xbf16>,
    %436 = vector.extract_strided_slice %431 {offsets = [0, 0], sizes = [32, 254], strides = [1, 1]} : vector<32x256xbf16> to vector<32x254xbf16>
    %c32_275 = arith.constant 32 : index
    %c2_276 = arith.constant 2 : index
    %437 = vector.load %arg60[%c32_275, %c2_276] : memref<96x256xbf16, #tpu.memory_space<vmem>>, vector<32x254xbf16>
    tpu.vector_store %arg60[%c32_275, %c2_276], %436 {strides = array<i32>} : memref<96x256xbf16, #tpu.memory_space<vmem>>, vector<32x254xbf16>,
    %c64_277 = arith.constant 64 : index
    %c0_278 = arith.constant 0 : index
    %438 = vector.load %arg60[%c64_277, %c0_278] : memref<96x256xbf16, #tpu.memory_space<vmem>>, vector<32x256xbf16>
    tpu.vector_store %arg60[%c64_277, %c0_278], %431 {strides = array<i32>} : memref<96x256xbf16, #tpu.memory_space<vmem>>, vector<32x256xbf16>,
    %c0_279 = arith.constant 0 : index
    %c0_280 = arith.constant 0 : index
    %439 = vector.load %arg52[%c0_279, %c0_280] : memref<32x96xbf16, #tpu.memory_space<vmem>>, vector<32x96xbf16>
    %c0_281 = arith.constant 0 : index
    %c0_282 = arith.constant 0 : index
    %440 = vector.load %arg60[%c0_281, %c0_282] : memref<96x256xbf16, #tpu.memory_space<vmem>>, vector<96x256xbf16>
    %cst_283 = arith.constant dense<0.000000e+00> : vector<32x256xf32>
    %441 = tpu.matmul %439, %440, %cst_283 {dimension_numbers = #tpu.dot_dimension_numbers<[1], [0], [0], [1], [0, 0, 1, 1], [], []>} : vector<32x96xbf16>, vector<96x256xbf16>, vector<32x256xf32> -> vector<32x256xf32>
    %c0_284 = arith.constant 0 : index
    %c0_285 = arith.constant 0 : index
    %442 = vector.load %arg53[%c0_284, %c0_285] : memref<32x1xf32, #tpu.memory_space<vmem>>, vector<32x1xf32>
    %443 = vector.broadcast %442 : vector<32x1xf32> to vector<32x256xf32>
    %444 = arith.addf %441, %443 : vector<32x256xf32>
    %445 = vector.extract_strided_slice %444 {offsets = [0, 0], sizes = [16, 256], strides = [1, 1]} : vector<32x256xf32> to vector<16x256xf32>
    %446 = math.tanh %445 : vector<16x256xf32>
    %447 = vector.extract_strided_slice %444 {offsets = [16, 0], sizes = [16, 256], strides = [1, 1]} : vector<32x256xf32> to vector<16x256xf32>
    %cst_286 = arith.constant 5.000000e-01 : f32
    %448 = vector.broadcast %cst_286 : f32 to vector<16x256xf32>
    %449 = arith.mulf %448, %447 : vector<16x256xf32>
    %450 = math.tanh %449 : vector<16x256xf32>
    %cst_287 = arith.constant 5.000000e-01 : f32
    %451 = vector.broadcast %cst_287 : f32 to vector<16x256xf32>
    %452 = arith.mulf %451, %450 : vector<16x256xf32>
    %cst_288 = arith.constant 5.000000e-01 : f32
    %453 = vector.broadcast %cst_288 : f32 to vector<16x256xf32>
    %454 = arith.addf %452, %453 : vector<16x256xf32>
    %455 = arith.mulf %446, %454 : vector<16x256xf32>
    %456 = arith.truncf %455 : vector<16x256xf32> to vector<16x256xbf16>
    %c0_289 = arith.constant 0 : index
    %c0_290 = arith.constant 0 : index
    %457 = vector.load %arg54[%c0_289, %c0_290] : memref<32x16xbf16, #tpu.memory_space<vmem>>, vector<32x16xbf16>
    %cst_291 = arith.constant dense<0.000000e+00> : vector<32x256xf32>
    %458 = tpu.matmul %457, %456, %cst_291 {dimension_numbers = #tpu.dot_dimension_numbers<[1], [0], [0], [1], [0, 0, 1, 1], [], []>} : vector<32x16xbf16>, vector<16x256xbf16>, vector<32x256xf32> -> vector<32x256xf32>
    %c0_292 = arith.constant 0 : index
    %c0_293 = arith.constant 0 : index
    %459 = vector.load %arg55[%c0_292, %c0_293] : memref<32x1xf32, #tpu.memory_space<vmem>>, vector<32x1xf32>
    %460 = vector.broadcast %459 : vector<32x1xf32> to vector<32x256xf32>
    %461 = arith.addf %458, %460 : vector<32x256xf32>
    %462 = arith.addf %461, %426 : vector<32x256xf32>
    %cst_294 = arith.constant 0.707106769 : f32
    %463 = vector.broadcast %cst_294 : f32 to vector<32x256xf32>
    %464 = arith.mulf %462, %463 : vector<32x256xf32>
    %cst_295 = arith.constant 0.000000e+00 : f32
    %465 = vector.broadcast %cst_295 : f32 to vector<32x256xf32>
    %466 = arith.maximumf %464, %465 : vector<32x256xf32>
    %467 = arith.truncf %466 : vector<32x256xf32> to vector<32x256xbf16>
    %c0_296 = arith.constant 0 : index
    %c0_297 = arith.constant 0 : index
    %468 = vector.load %arg56[%c0_296, %c0_297] : memref<8x32xbf16, #tpu.memory_space<vmem>>, vector<8x32xbf16>
    %cst_298 = arith.constant dense<0.000000e+00> : vector<8x256xf32>
    %469 = tpu.matmul %468, %467, %cst_298 {dimension_numbers = #tpu.dot_dimension_numbers<[1], [0], [0], [1], [0, 0, 1, 1], [], []>} : vector<8x32xbf16>, vector<32x256xbf16>, vector<8x256xf32> -> vector<8x256xf32>
    %c0_299 = arith.constant 0 : index
    %c0_300 = arith.constant 0 : index
    %470 = vector.load %arg57[%c0_299, %c0_300] : memref<8x1xf32, #tpu.memory_space<vmem>>, vector<8x1xf32>
    %471 = vector.broadcast %470 : vector<8x1xf32> to vector<8x256xf32>
    %472 = arith.addf %469, %471 : vector<8x256xf32>
    %473 = vector.extract_strided_slice %472 {offsets = [0, 0], sizes = [1, 256], strides = [1, 1]} : vector<8x256xf32> to vector<1x256xf32>
    %474 = vector.extract_strided_slice %472 {offsets = [1, 0], sizes = [1, 256], strides = [1, 1]} : vector<8x256xf32> to vector<1x256xf32>
    %475 = math.exp %474 : vector<1x256xf32>
    %476 = arith.mulf %301, %475 : vector<1x256xf32>
    %477 = arith.addf %473, %476 : vector<1x256xf32>
    %478 = arith.mulf %475, %303 : vector<1x256xf32>
    %479 = arith.mulf %205, %478 : vector<1x256xf32>
    %480 = arith.addf %477, %479 : vector<1x256xf32>
    %481 = arith.mulf %478, %207 : vector<1x256xf32>
    %482 = arith.mulf %109, %481 : vector<1x256xf32>
    %483 = arith.addf %480, %482 : vector<1x256xf32>
    %484 = arith.mulf %481, %111 : vector<1x256xf32>
    %485 = vector.extract_strided_slice %483 {offsets = [0, 128], sizes = [1, 128], strides = [1, 1]} : vector<1x256xf32> to vector<1x128xf32>
    %c0_301 = arith.constant 0 : index
    %c0_302 = arith.constant 0 : index
    %c0_303 = arith.constant 0 : index
    %486 = vector.load %arg58[%c0_301, %c0_302, %c0_303] : memref<1x1x128xf32, #tpu.memory_space<vmem>>, vector<1x1x128xf32>
    %487 = vector.shape_cast %486 : vector<1x1x128xf32> to vector<1x128xf32>
    %488 = vector.shape_cast %485 : vector<1x128xf32> to vector<1x1x128xf32>
    tpu.vector_store %arg58[%c0_301, %c0_302, %c0_303], %488 {strides = array<i32>} : memref<1x1x128xf32, #tpu.memory_space<vmem>>, vector<1x1x128xf32>,
    %489 = vector.extract_strided_slice %484 {offsets = [0, 128], sizes = [1, 128], strides = [1, 1]} : vector<1x256xf32> to vector<1x128xf32>
    %c0_304 = arith.constant 0 : index
    %c0_305 = arith.constant 0 : index
    %c0_306 = arith.constant 0 : index
    %490 = vector.load %arg59[%c0_304, %c0_305, %c0_306] : memref<1x1x128xf32, #tpu.memory_space<vmem>>, vector<1x1x128xf32>
    %491 = vector.shape_cast %490 : vector<1x1x128xf32> to vector<1x128xf32>
    %492 = vector.shape_cast %489 : vector<1x128xf32> to vector<1x1x128xf32>
    tpu.vector_store %arg59[%c0_304, %c0_305, %c0_306], %492 {strides = array<i32>} : memref<1x1x128xf32, #tpu.memory_space<vmem>>, vector<1x1x128xf32>,
    return
  }
  func.func @transform_0(%arg0: i32) -> (i32, i32, i32) {
    %c0_i32 = arith.constant 0 : i32
    %c0_i32_0 = arith.constant 0 : i32
    %c0_i32_1 = arith.constant 0 : i32
    return %arg0, %c0_i32, %c0_i32_0 : i32, i32, i32
  }
  func.func @transform_1(%arg0: i32) -> (i32, i32) {
    %c0_i32 = arith.constant 0 : i32
    %c0_i32_0 = arith.constant 0 : i32
    %c0_i32_1 = arith.constant 0 : i32
    return %c0_i32, %c0_i32_0 : i32, i32
  }
  func.func @transform_2(%arg0: i32) -> (i32, i32) {
    %c0_i32 = arith.constant 0 : i32
    %c0_i32_0 = arith.constant 0 : i32
    %c0_i32_1 = arith.constant 0 : i32
    return %c0_i32, %c0_i32_0 : i32, i32
  }
  func.func @transform_3(%arg0: i32) -> (i32, i32) {
    %c0_i32 = arith.constant 0 : i32
    %c0_i32_0 = arith.constant 0 : i32
    %c0_i32_1 = arith.constant 0 : i32
    return %c0_i32, %c0_i32_0 : i32, i32
  }
  func.func @transform_4(%arg0: i32) -> (i32, i32) {
    %c0_i32 = arith.constant 0 : i32
    %c0_i32_0 = arith.constant 0 : i32
    %c0_i32_1 = arith.constant 0 : i32
    return %c0_i32, %c0_i32_0 : i32, i32
  }
  func.func @transform_5(%arg0: i32) -> (i32, i32) {
    %c0_i32 = arith.constant 0 : i32
    %c0_i32_0 = arith.constant 0 : i32
    %c0_i32_1 = arith.constant 0 : i32
    return %c0_i32, %c0_i32_0 : i32, i32
  }
  func.func @transform_6(%arg0: i32) -> (i32, i32) {
    %c0_i32 = arith.constant 0 : i32
    %c0_i32_0 = arith.constant 0 : i32
    %c0_i32_1 = arith.constant 0 : i32
    return %c0_i32, %c0_i32_0 : i32, i32
  }
  func.func @transform_7(%arg0: i32) -> (i32, i32) {
    %c0_i32 = arith.constant 0 : i32
    %c0_i32_0 = arith.constant 0 : i32
    %c0_i32_1 = arith.constant 0 : i32
    return %c0_i32, %c0_i32_0 : i32, i32
  }
  func.func @transform_8(%arg0: i32) -> (i32, i32) {
    %c0_i32 = arith.constant 0 : i32
    %c0_i32_0 = arith.constant 0 : i32
    %c0_i32_1 = arith.constant 0 : i32
    return %c0_i32, %c0_i32_0 : i32, i32
  }
  func.func @transform_9(%arg0: i32) -> (i32, i32) {
    %c0_i32 = arith.constant 0 : i32
    %c0_i32_0 = arith.constant 0 : i32
    %c0_i32_1 = arith.constant 0 : i32
    return %c0_i32, %c0_i32_0 : i32, i32
  }
  func.func @transform_10(%arg0: i32) -> (i32, i32) {
    %c0_i32 = arith.constant 0 : i32
    %c0_i32_0 = arith.constant 0 : i32
    %c0_i32_1 = arith.constant 0 : i32
    return %c0_i32, %c0_i32_0 : i32, i32
  }
  func.func @transform_11(%arg0: i32) -> (i32, i32) {
    %c0_i32 = arith.constant 0 : i32
    %c0_i32_0 = arith.constant 0 : i32
    %c0_i32_1 = arith.constant 0 : i32
    return %c0_i32, %c0_i32_0 : i32, i32
  }
  func.func @transform_12(%arg0: i32) -> (i32, i32) {
    %c0_i32 = arith.constant 0 : i32
    %c0_i32_0 = arith.constant 0 : i32
    %c0_i32_1 = arith.constant 0 : i32
    return %c0_i32, %c0_i32_0 : i32, i32
  }
  func.func @transform_13(%arg0: i32) -> (i32, i32) {
    %c0_i32 = arith.constant 0 : i32
    %c0_i32_0 = arith.constant 0 : i32
    %c0_i32_1 = arith.constant 0 : i32
    return %c0_i32, %c0_i32_0 : i32, i32
  }
  func.func @transform_14(%arg0: i32) -> (i32, i32) {
    %c0_i32 = arith.constant 0 : i32
    %c0_i32_0 = arith.constant 0 : i32
    %c0_i32_1 = arith.constant 0 : i32
    return %c0_i32, %c0_i32_0 : i32, i32
  }
  func.func @transform_15(%arg0: i32) -> (i32, i32) {
    %c0_i32 = arith.constant 0 : i32
    %c0_i32_0 = arith.constant 0 : i32
    %c0_i32_1 = arith.constant 0 : i32
    return %c0_i32, %c0_i32_0 : i32, i32
  }
  func.func @transform_16(%arg0: i32) -> (i32, i32) {
    %c0_i32 = arith.constant 0 : i32
    %c0_i32_0 = arith.constant 0 : i32
    %c0_i32_1 = arith.constant 0 : i32
    return %c0_i32, %c0_i32_0 : i32, i32
  }
  func.func @transform_17(%arg0: i32) -> (i32, i32) {
    %c0_i32 = arith.constant 0 : i32
    %c0_i32_0 = arith.constant 0 : i32
    %c0_i32_1 = arith.constant 0 : i32
    return %c0_i32, %c0_i32_0 : i32, i32
  }
  func.func @transform_18(%arg0: i32) -> (i32, i32) {
    %c0_i32 = arith.constant 0 : i32
    %c0_i32_0 = arith.constant 0 : i32
    %c0_i32_1 = arith.constant 0 : i32
    return %c0_i32, %c0_i32_0 : i32, i32
  }
  func.func @transform_19(%arg0: i32) -> (i32, i32) {
    %c0_i32 = arith.constant 0 : i32
    %c0_i32_0 = arith.constant 0 : i32
    %c0_i32_1 = arith.constant 0 : i32
    return %c0_i32, %c0_i32_0 : i32, i32
  }
  func.func @transform_20(%arg0: i32) -> (i32, i32) {
    %c0_i32 = arith.constant 0 : i32
    %c0_i32_0 = arith.constant 0 : i32
    %c0_i32_1 = arith.constant 0 : i32
    return %c0_i32, %c0_i32_0 : i32, i32
  }
  func.func @transform_21(%arg0: i32) -> (i32, i32) {
    %c0_i32 = arith.constant 0 : i32
    %c0_i32_0 = arith.constant 0 : i32
    %c0_i32_1 = arith.constant 0 : i32
    return %c0_i32, %c0_i32_0 : i32, i32
  }
  func.func @transform_22(%arg0: i32) -> (i32, i32) {
    %c0_i32 = arith.constant 0 : i32
    %c0_i32_0 = arith.constant 0 : i32
    %c0_i32_1 = arith.constant 0 : i32
    return %c0_i32, %c0_i32_0 : i32, i32
  }
  func.func @transform_23(%arg0: i32) -> (i32, i32) {
    %c0_i32 = arith.constant 0 : i32
    %c0_i32_0 = arith.constant 0 : i32
    %c0_i32_1 = arith.constant 0 : i32
    return %c0_i32, %c0_i32_0 : i32, i32
  }
  func.func @transform_24(%arg0: i32) -> (i32, i32) {
    %c0_i32 = arith.constant 0 : i32
    %c0_i32_0 = arith.constant 0 : i32
    %c0_i32_1 = arith.constant 0 : i32
    return %c0_i32, %c0_i32_0 : i32, i32
  }
  func.func @transform_25(%arg0: i32) -> (i32, i32) {
    %c0_i32 = arith.constant 0 : i32
    %c0_i32_0 = arith.constant 0 : i32
    %c0_i32_1 = arith.constant 0 : i32
    return %c0_i32, %c0_i32_0 : i32, i32
  }
  func.func @transform_26(%arg0: i32) -> (i32, i32) {
    %c0_i32 = arith.constant 0 : i32
    %c0_i32_0 = arith.constant 0 : i32
    %c0_i32_1 = arith.constant 0 : i32
    return %c0_i32, %c0_i32_0 : i32, i32
  }
  func.func @transform_27(%arg0: i32) -> (i32, i32) {
    %c0_i32 = arith.constant 0 : i32
    %c0_i32_0 = arith.constant 0 : i32
    %c0_i32_1 = arith.constant 0 : i32
    return %c0_i32, %c0_i32_0 : i32, i32
  }
  func.func @transform_28(%arg0: i32) -> (i32, i32) {
    %c0_i32 = arith.constant 0 : i32
    %c0_i32_0 = arith.constant 0 : i32
    %c0_i32_1 = arith.constant 0 : i32
    return %c0_i32, %c0_i32_0 : i32, i32
  }
  func.func @transform_29(%arg0: i32) -> (i32, i32) {
    %c0_i32 = arith.constant 0 : i32
    %c0_i32_0 = arith.constant 0 : i32
    %c0_i32_1 = arith.constant 0 : i32
    return %c0_i32, %c0_i32_0 : i32, i32
  }
  func.func @transform_30(%arg0: i32) -> (i32, i32) {
    %c0_i32 = arith.constant 0 : i32
    %c0_i32_0 = arith.constant 0 : i32
    %c0_i32_1 = arith.constant 0 : i32
    return %c0_i32, %c0_i32_0 : i32, i32
  }
  func.func @transform_31(%arg0: i32) -> (i32, i32) {
    %c0_i32 = arith.constant 0 : i32
    %c0_i32_0 = arith.constant 0 : i32
    %c0_i32_1 = arith.constant 0 : i32
    return %c0_i32, %c0_i32_0 : i32, i32
  }
  func.func @transform_32(%arg0: i32) -> (i32, i32) {
    %c0_i32 = arith.constant 0 : i32
    %c0_i32_0 = arith.constant 0 : i32
    %c0_i32_1 = arith.constant 0 : i32
    return %c0_i32, %c0_i32_0 : i32, i32
  }
  func.func @transform_33(%arg0: i32) -> (i32, i32) {
    %c0_i32 = arith.constant 0 : i32
    %c0_i32_0 = arith.constant 0 : i32
    %c0_i32_1 = arith.constant 0 : i32
    return %c0_i32, %c0_i32_0 : i32, i32
  }
  func.func @transform_34(%arg0: i32) -> (i32, i32) {
    %c0_i32 = arith.constant 0 : i32
    %c0_i32_0 = arith.constant 0 : i32
    %c0_i32_1 = arith.constant 0 : i32
    return %c0_i32, %c0_i32_0 : i32, i32
  }
  func.func @transform_35(%arg0: i32) -> (i32, i32) {
    %c0_i32 = arith.constant 0 : i32
    %c0_i32_0 = arith.constant 0 : i32
    %c0_i32_1 = arith.constant 0 : i32
    return %c0_i32, %c0_i32_0 : i32, i32
  }
  func.func @transform_36(%arg0: i32) -> (i32, i32) {
    %c0_i32 = arith.constant 0 : i32
    %c0_i32_0 = arith.constant 0 : i32
    %c0_i32_1 = arith.constant 0 : i32
    return %c0_i32, %c0_i32_0 : i32, i32
  }
  func.func @transform_37(%arg0: i32) -> (i32, i32) {
    %c0_i32 = arith.constant 0 : i32
    %c0_i32_0 = arith.constant 0 : i32
    %c0_i32_1 = arith.constant 0 : i32
    return %c0_i32, %c0_i32_0 : i32, i32
  }
  func.func @transform_38(%arg0: i32) -> (i32, i32) {
    %c0_i32 = arith.constant 0 : i32
    %c0_i32_0 = arith.constant 0 : i32
    %c0_i32_1 = arith.constant 0 : i32
    return %c0_i32, %c0_i32_0 : i32, i32
  }
  func.func @transform_39(%arg0: i32) -> (i32, i32) {
    %c0_i32 = arith.constant 0 : i32
    %c0_i32_0 = arith.constant 0 : i32
    %c0_i32_1 = arith.constant 0 : i32
    return %c0_i32, %c0_i32_0 : i32, i32
  }
  func.func @transform_40(%arg0: i32) -> (i32, i32) {
    %c0_i32 = arith.constant 0 : i32
    %c0_i32_0 = arith.constant 0 : i32
    %c0_i32_1 = arith.constant 0 : i32
    return %c0_i32, %c0_i32_0 : i32, i32
  }
  func.func @transform_41(%arg0: i32) -> (i32, i32) {
    %c0_i32 = arith.constant 0 : i32
    %c0_i32_0 = arith.constant 0 : i32
    %c0_i32_1 = arith.constant 0 : i32
    return %c0_i32, %c0_i32_0 : i32, i32
  }
  func.func @transform_42(%arg0: i32) -> (i32, i32) {
    %c0_i32 = arith.constant 0 : i32
    %c0_i32_0 = arith.constant 0 : i32
    %c0_i32_1 = arith.constant 0 : i32
    return %c0_i32, %c0_i32_0 : i32, i32
  }
  func.func @transform_43(%arg0: i32) -> (i32, i32) {
    %c0_i32 = arith.constant 0 : i32
    %c0_i32_0 = arith.constant 0 : i32
    %c0_i32_1 = arith.constant 0 : i32
    return %c0_i32, %c0_i32_0 : i32, i32
  }
  func.func @transform_44(%arg0: i32) -> (i32, i32) {
    %c0_i32 = arith.constant 0 : i32
    %c0_i32_0 = arith.constant 0 : i32
    %c0_i32_1 = arith.constant 0 : i32
    return %c0_i32, %c0_i32_0 : i32, i32
  }
  func.func @transform_45(%arg0: i32) -> (i32, i32) {
    %c0_i32 = arith.constant 0 : i32
    %c0_i32_0 = arith.constant 0 : i32
    %c0_i32_1 = arith.constant 0 : i32
    return %c0_i32, %c0_i32_0 : i32, i32
  }
  func.func @transform_46(%arg0: i32) -> (i32, i32) {
    %c0_i32 = arith.constant 0 : i32
    %c0_i32_0 = arith.constant 0 : i32
    %c0_i32_1 = arith.constant 0 : i32
    return %c0_i32, %c0_i32_0 : i32, i32
  }
  func.func @transform_47(%arg0: i32) -> (i32, i32) {
    %c0_i32 = arith.constant 0 : i32
    %c0_i32_0 = arith.constant 0 : i32
    %c0_i32_1 = arith.constant 0 : i32
    return %c0_i32, %c0_i32_0 : i32, i32
  }
  func.func @transform_48(%arg0: i32) -> (i32, i32) {
    %c0_i32 = arith.constant 0 : i32
    %c0_i32_0 = arith.constant 0 : i32
    %c0_i32_1 = arith.constant 0 : i32
    return %c0_i32, %c0_i32_0 : i32, i32
  }
  func.func @transform_49(%arg0: i32) -> (i32, i32) {
    %c0_i32 = arith.constant 0 : i32
    %c0_i32_0 = arith.constant 0 : i32
    %c0_i32_1 = arith.constant 0 : i32
    return %c0_i32, %c0_i32_0 : i32, i32
  }
  func.func @transform_50(%arg0: i32) -> (i32, i32) {
    %c0_i32 = arith.constant 0 : i32
    %c0_i32_0 = arith.constant 0 : i32
    %c0_i32_1 = arith.constant 0 : i32
    return %c0_i32, %c0_i32_0 : i32, i32
  }
  func.func @transform_51(%arg0: i32) -> (i32, i32) {
    %c0_i32 = arith.constant 0 : i32
    %c0_i32_0 = arith.constant 0 : i32
    %c0_i32_1 = arith.constant 0 : i32
    return %c0_i32, %c0_i32_0 : i32, i32
  }
  func.func @transform_52(%arg0: i32) -> (i32, i32) {
    %c0_i32 = arith.constant 0 : i32
    %c0_i32_0 = arith.constant 0 : i32
    %c0_i32_1 = arith.constant 0 : i32
    return %c0_i32, %c0_i32_0 : i32, i32
  }
  func.func @transform_53(%arg0: i32) -> (i32, i32) {
    %c0_i32 = arith.constant 0 : i32
    %c0_i32_0 = arith.constant 0 : i32
    %c0_i32_1 = arith.constant 0 : i32
    return %c0_i32, %c0_i32_0 : i32, i32
  }
  func.func @transform_54(%arg0: i32) -> (i32, i32) {
    %c0_i32 = arith.constant 0 : i32
    %c0_i32_0 = arith.constant 0 : i32
    %c0_i32_1 = arith.constant 0 : i32
    return %c0_i32, %c0_i32_0 : i32, i32
  }
  func.func @transform_55(%arg0: i32) -> (i32, i32) {
    %c0_i32 = arith.constant 0 : i32
    %c0_i32_0 = arith.constant 0 : i32
    %c0_i32_1 = arith.constant 0 : i32
    return %c0_i32, %c0_i32_0 : i32, i32
  }
  func.func @transform_56(%arg0: i32) -> (i32, i32) {
    %c0_i32 = arith.constant 0 : i32
    %c0_i32_0 = arith.constant 0 : i32
    %c0_i32_1 = arith.constant 0 : i32
    return %c0_i32, %c0_i32_0 : i32, i32
  }
  func.func @transform_57(%arg0: i32) -> (i32, i32, i32) {
    %c0_i32 = arith.constant 0 : i32
    %c0_i32_0 = arith.constant 0 : i32
    %c0_i32_1 = arith.constant 0 : i32
    return %arg0, %c0_i32, %c0_i32_0 : i32, i32, i32
  }
  func.func @transform_58(%arg0: i32) -> (i32, i32, i32) {
    %c0_i32 = arith.constant 0 : i32
    %c0_i32_0 = arith.constant 0 : i32
    %c0_i32_1 = arith.constant 0 : i32
    return %arg0, %c0_i32, %c0_i32_0 : i32, i32, i32
  }
}

</mosaic_0001>

<bundles_post_ra>
// kernel: tpu_custom_call.1
= control target key start
LH: loop header
LB: loop body
LE: loop exit
PB: predicated region body
PF: predicated region fallthrough
CT: control target
= control target key end

     0   :  { %s7631_s6 = smov 1   ;;  %s7632_s10 = smov 2   ;;  %s9595_s0 = inlined_call_operand.smem [shape: u32[59], index: -1, kind: input, shape index: {}] }
   0x1   :  { %s7704_s5 = sld [smem:[%s9595_s0]]   ;;  %s7633_s14 = smov 3  }
   0x2   :  { %s7709_s9 = sld [smem:[%s9595_s0 + %s7631_s6]]   ;;  %s7634_s18 = smov 4  }
   0x3   :  { %s7714_s13 = sld [smem:[%s9595_s0 + %s7632_s10]]   ;;  %s7635_s22 = smov 5  }
   0x4   :  { %s7719_s17 = sld [smem:[%s9595_s0 + %s7633_s14]]   ;;  %s7636_s26 = smov 6  }
   0x5   :  { %s7724_s21 = sld [smem:[%s9595_s0 + %s7634_s18]]   ;;  %s7637_s30 = smov 7  }
   0x6   :  { %s7729_s25 = sld [smem:[%s9595_s0 + %s7635_s22]]   ;;  %s7638_s4 = smov 8  }
   0x7   :  { %9684 = sst [smem:[#allocation9_spill]] %s7704_s5  ;;  %s7639_s10 = smov 9  }
   0x8   :  { %9685 = sst [smem:[#allocation10_spill]] %s7709_s9  ;;  %s7640_s15 = smov 10  }
   0x9   :  { %9686 = sst [smem:[#allocation11_spill]] %s7714_s13  ;;  %s7641_s20 = smov 11  }
   0xa   :  { %s7734_s29 = sld [smem:[%s9595_s0 + %s7636_s26]]   ;;  %s7642_s26 = smov 12  }
   0xb   :  { %s7739_s3 = sld [smem:[%s9595_s0 + %s7637_s30]]   ;;  %s7643_s1 = smov 13  }
   0xc   :  { %s7744_s8 = sld [smem:[%s9595_s0 + %s7638_s4]]   ;;  %s7644_s7 = smov 14  }
   0xd   :  { %s7749_s14 = sld [smem:[%s9595_s0 + %s7639_s10]]   ;;  %s7646_s22 = smov 16  }
   0xe   :  { %s7754_s19 = sld [smem:[%s9595_s0 + %s7640_s15]]   ;;  %s7645_s15 = smov 15  }
   0xf   :  { %s7759_s24 = sld [smem:[%s9595_s0 + %s7641_s20]]   ;;  %s7647_s28 = smov 17  }
  0x10   :  { %s7764_s30 = sld [smem:[%s9595_s0 + %s7642_s26]]  }
  0x11   :  { %9687 = sst [smem:[#allocation12_spill]] %s7739_s3 }
  0x12   :  { %9688 = sst [smem:[#allocation13_spill]] %s7744_s8 }
  0x13   :  { %9689 = sst [smem:[#allocation14_spill]] %s7749_s14 }
  0x14   :  { %s7769_s6 = sld [smem:[%s9595_s0 + %s7643_s1]]  }
  0x15   :  { %9690 = sst [smem:[#allocation15_spill]] %s7759_s24 }
  0x16   :  { %s7774_s12 = sld [smem:[%s9595_s0 + %s7644_s7]]   ;;  %s7648_s7 = smov 18  }
  0x17   :  { %s7779_s20 = sld [smem:[%s9595_s0 + %s7645_s15]]   ;;  %s7649_s15 = smov 19  }
  0x18   :  { %s7784_s27 = sld [smem:[%s9595_s0 + %s7646_s22]]   ;;  %s7650_s22 = smov 20  }
  0x19   :  { %s7789_s4 = sld [smem:[%s9595_s0 + %s7647_s28]]   ;;  %s7651_s28 = smov 21  }
  0x1a   :  { %9691 = sst [smem:[#allocation16_spill]] %s7769_s6 }
  0x1b   :  { %s7794_s24 = sld [smem:[%s9595_s0 + %s7648_s7]]   ;;  %s7652_s7 = smov 22  }
  0x1c   :  { %9692 = sst [smem:[#allocation17_spill]] %s7774_s12 }
  0x1d   :  { %9693 = sst [smem:[#allocation18_spill]] %s7779_s20 }
  0x1e   :  { %9694 = sst [smem:[#allocation19_spill]] %s7784_s27 }
  0x1f   :  { %9695 = sst [smem:[#allocation20_spill]] %s7789_s4 }
  0x20   :  { %s7799_s20 = sld [smem:[%s9595_s0 + %s7649_s15]]   ;;  %s7653_s15 = smov 23  }
  0x21   :  { %9696 = sst [smem:[#allocation21_spill]] %s7794_s24 }
  0x22   :  { %s7804_s27 = sld [smem:[%s9595_s0 + %s7650_s22]]   ;;  %s7654_s22 = smov 24  }
  0x23   :  { %s7809_s4 = sld [smem:[%s9595_s0 + %s7651_s28]]   ;;  %s7655_s28 = smov 25  }
  0x24   :  { %s7814_s24 = sld [smem:[%s9595_s0 + %s7652_s7]]   ;;  %s7656_s7 = smov 26  }
  0x26   :  { %9697 = sst [smem:[#allocation22_spill]] %s7799_s20 }
  0x27   :  { %s7819_s20 = sld [smem:[%s9595_s0 + %s7653_s15]]   ;;  %s7657_s15 = smov 27  }
  0x28   :  { %9698 = sst [smem:[#allocation23_spill]] %s7804_s27 }
  0x29   :  { %9699 = sst [smem:[#allocation24_spill]] %s7809_s4 }
  0x2a   :  { %9700 = sst [smem:[#allocation25_spill]] %s7814_s24 }
  0x2b   :  { %s7824_s27 = sld [smem:[%s9595_s0 + %s7654_s22]]   ;;  %s7658_s22 = smov 28  }
  0x2c   :  { %s7829_s4 = sld [smem:[%s9595_s0 + %s7655_s28]]   ;;  %s7659_s28 = smov 29  }
  0x2d   :  { %9701 = sst [smem:[#allocation26_spill]] %s7819_s20 }
  0x2e   :  { %s7834_s24 = sld [smem:[%s9595_s0 + %s7656_s7]]   ;;  %s7660_s7 = smov 30  }
  0x2f   :  { %s7839_s20 = sld [smem:[%s9595_s0 + %s7657_s15]]   ;;  %s7661_s15 = smov 31  }
  0x31   :  { %9702 = sst [smem:[#allocation27_spill]] %s7824_s27 }
  0x32   :  { %9703 = sst [smem:[#allocation28_spill]] %s7829_s4 }
  0x33   :  { %s7844_s27 = sld [smem:[%s9595_s0 + %s7658_s22]]   ;;  %s7662_s22 = smov 32  }
  0x34   :  { %9704 = sst [smem:[#allocation29_spill]] %s7834_s24 }
  0x35   :  { %9705 = sst [smem:[#allocation30_spill]] %s7839_s20 }
  0x36   :  { %s7849_s4 = sld [smem:[%s9595_s0 + %s7659_s28]]   ;;  %s7663_s28 = smov 33  }
  0x37   :  { %s7854_s24 = sld [smem:[%s9595_s0 + %s7660_s7]]   ;;  %s7664_s7 = smov 34  }
  0x38   :  { %s7859_s20 = sld [smem:[%s9595_s0 + %s7661_s15]]   ;;  %s7665_s15 = smov 35  }
  0x39   :  { %9706 = sst [smem:[#allocation31_spill]] %s7844_s27 }
  0x3a   :  { %s7864_s27 = sld [smem:[%s9595_s0 + %s7662_s22]]   ;;  %s7666_s22 = smov 36  }
  0x3c   :  { %9707 = sst [smem:[#allocation32_spill]] %s7849_s4 }
  0x3d   :  { %9708 = sst [smem:[#allocation33_spill]] %s7854_s24 }
  0x3e   :  { %9709 = sst [smem:[#allocation34_spill]] %s7859_s20 }
  0x3f   :  { %s7869_s4 = sld [smem:[%s9595_s0 + %s7663_s28]]   ;;  %s7667_s28 = smov 37  }
  0x40   :  { %9710 = sst [smem:[#allocation35_spill]] %s7864_s27 }
  0x41   :  { %s7874_s24 = sld [smem:[%s9595_s0 + %s7664_s7]]   ;;  %s7668_s7 = smov 38  }
  0x42   :  { %s7879_s20 = sld [smem:[%s9595_s0 + %s7665_s15]]   ;;  %s7669_s15 = smov 39  }
  0x43   :  { %s7884_s27 = sld [smem:[%s9595_s0 + %s7666_s22]]   ;;  %s7670_s22 = smov 40  }
  0x45   :  { %9711 = sst [smem:[#allocation36_spill]] %s7869_s4 }
  0x46   :  { %s7889_s4 = sld [smem:[%s9595_s0 + %s7667_s28]]   ;;  %s7671_s28 = smov 41  }
  0x47   :  { %9712 = sst [smem:[#allocation37_spill]] %s7874_s24 }
  0x48   :  { %9713 = sst [smem:[#allocation38_spill]] %s7879_s20 }
  0x49   :  { %9714 = sst [smem:[#allocation39_spill]] %s7884_s27 }
  0x4a   :  { %s7894_s24 = sld [smem:[%s9595_s0 + %s7668_s7]]   ;;  %s7672_s7 = smov 42  }
  0x4b   :  { %s7899_s20 = sld [smem:[%s9595_s0 + %s7669_s15]]   ;;  %s7673_s15 = smov 43  }
  0x4c   :  { %9715 = sst [smem:[#allocation40_spill]] %s7889_s4 }
  0x4d   :  { %s7904_s27 = sld [smem:[%s9595_s0 + %s7670_s22]]   ;;  %s7674_s22 = smov 44  }
  0x4e   :  { %s7909_s4 = sld [smem:[%s9595_s0 + %s7671_s28]]   ;;  %s7675_s28 = smov 45  }
  0x50   :  { %9716 = sst [smem:[#allocation41_spill]] %s7894_s24 }
  0x51   :  { %9717 = sst [smem:[#allocation42_spill]] %s7899_s20 }
  0x52   :  { %s7914_s24 = sld [smem:[%s9595_s0 + %s7672_s7]]   ;;  %s7676_s7 = smov 46  }
  0x53   :  { %9718 = sst [smem:[#allocation43_spill]] %s7904_s27 }
  0x54   :  { %9719 = sst [smem:[#allocation44_spill]] %s7909_s4 }
  0x55   :  { %s7919_s20 = sld [smem:[%s9595_s0 + %s7673_s15]]   ;;  %s7677_s15 = smov 47  }
  0x56   :  { %s7924_s27 = sld [smem:[%s9595_s0 + %s7674_s22]]   ;;  %s7678_s22 = smov 48  }
  0x57   :  { %s7929_s4 = sld [smem:[%s9595_s0 + %s7675_s28]]   ;;  %s7679_s28 = smov 49  }
  0x58   :  { %9720 = sst [smem:[#allocation45_spill]] %s7914_s24 }
  0x59   :  { %s7934_s24 = sld [smem:[%s9595_s0 + %s7676_s7]]   ;;  %s7680_s7 = smov 50  }
  0x5b   :  { %9721 = sst [smem:[#allocation46_spill]] %s7919_s20 }
  0x5c   :  { %9722 = sst [smem:[#allocation47_spill]] %s7924_s27 }
  0x5d   :  { %9723 = sst [smem:[#allocation48_spill]] %s7929_s4 }
  0x5e   :  { %s7939_s20 = sld [smem:[%s9595_s0 + %s7677_s15]]   ;;  %s7681_s15 = smov 51  }
  0x5f   :  { %9724 = sst [smem:[#allocation49_spill]] %s7934_s24 }
  0x60   :  { %s7944_s27 = sld [smem:[%s9595_s0 + %s7678_s22]]   ;;  %s7682_s22 = smov 52  }
  0x61   :  { %s7949_s4 = sld [smem:[%s9595_s0 + %s7679_s28]]   ;;  %s7683_s28 = smov 53  }
  0x62   :  { %s7954_s24 = sld [smem:[%s9595_s0 + %s7680_s7]]   ;;  %s7684_s7 = smov 54  }
  0x64   :  { %9725 = sst [smem:[#allocation50_spill]] %s7939_s20 }
  0x65   :  { %s7959_s20 = sld [smem:[%s9595_s0 + %s7681_s15]]   ;;  %s7685_s15 = smov 55  }
  0x66   :  { %9726 = sst [smem:[#allocation51_spill]] %s7944_s27 }
  0x67   :  { %9727 = sst [smem:[#allocation52_spill]] %s7949_s4 }
  0x68   :  { %9728 = sst [smem:[#allocation53_spill]] %s7954_s24 }
  0x69   :  { %s7964_s27 = sld [smem:[%s9595_s0 + %s7682_s22]]   ;;  %s7686_s22 = smov 56  }
  0x6a   :  { %s7969_s4 = sld [smem:[%s9595_s0 + %s7683_s28]]   ;;  %s7687_s28 = smov 57  }
  0x6b   :  { %9729 = sst [smem:[#allocation54_spill]] %s7959_s20 }
  0x6c   :  { %s7974_s24 = sld [smem:[%s9595_s0 + %s7684_s7]]   ;;  %s7688_s7 = smov 58  }
  0x6d   :  { %s7979_s20 = sld [smem:[%s9595_s0 + %s7685_s15]]  }
  0x6f   :  { %9730 = sst [smem:[#allocation55_spill]] %s7964_s27 }
  0x70   :  { %9731 = sst [smem:[#allocation56_spill]] %s7969_s4 }
  0x71   :  { %s7984_s27 = sld [smem:[%s9595_s0 + %s7686_s22]]  }
  0x72   :  { %9732 = sst [smem:[#allocation57_spill]] %s7974_s24 }
  0x73   :  { %s7989_s4 = sld [smem:[%s9595_s0 + %s7687_s28]]  }
  0x74   :  { %s7994_s24 = sld [smem:[%s9595_s0 + %s7688_s7]]  }
  0x75   :  { %123 = vsyncpa [#allocation4], 0 }
  0x76   :  { %125 = vsyncpa [#allocation4 + $0x1], 0 }
  0x77   :  { %126 = vsyncpa [#allocation6], 0 }
  0x78   :  { %128 = vsyncpa [#allocation6 + $0x1], 0  ;;  %s7996_s15 = smov 0   ;;  %s7998_s16 = smov 0  }
  0x79   :  { %s8000_s18 = smov 0   ;;  %s8002_s22 = smov 0  }
  0x7a LB: > { %s9733_s14 = sld [smem:[#allocation14_spill]]  ;;  %s8017_s0 = sadd.s32 4294967295, %s7629_s22   ;;  %s7625_s18 = sphi %s8000_s18, %s9817_s18   ;;  %s7621_s16 = sphi %s7998_s16, %s9816_s16   ;;  %s7617_s15 = sphi %s7996_s15, %s9815_s15   ;;  %s7629_s22 = sphi %s8002_s22, %s9812_s22  }
  0x7b   : > { %s9734_s12 = sld [smem:[#allocation17_spill]]  ;;  %s6674_s23 = sadd.s32 4294967294, %s7629_s22  }
  0x7c   : > { %s9735_s8 = sld [smem:[#allocation13_spill]]  ;;  %s8021_s26 = sadd.s32 1, %s7629_s22  }
  0x7d   : > { %s9736_s6 = sld [smem:[#allocation16_spill]]  ;;  %s1343_s28 = sadd.s32 1, %s7625_s18 }
  0x7e   : > { %s9737_s3 = sld [smem:[#allocation12_spill]]  ;;  %s1340_s1 = ssub.s32 %s7629_s22, %s8021_s26 }
  0x7f   : > { %s9738_s13 = sld [smem:[#allocation11_spill]]  ;;  %p1353_p0 = scmp.ne.s32.totalorder %s7625_s18, %s7621_s16 }
  0x80   : > { %s9739_s9 = sld [smem:[#allocation10_spill]]  ;;  %p1341_p1 = scmp.eq.s32.totalorder %s1340_s1, 0 }
  0x81   : > { %9740 = sst [smem:[#allocation58_spill]] %s7625_s18  ;;  %p1354_p2 = scmp.eq.s32.totalorder %s8017_s0, 3 }
  0x82   : > { %9741 = sst [smem:[#allocation59_spill]] %s8021_s26  ;;  %p1359_p3 = scmp.ne.s32.totalorder %s7621_s16, %s7617_s15 }
  0x83   : > { %p1360_p4 = scmp.eq.s32.totalorder %s6674_s23, 3  ;;  %p8034_p5 = por %p1354_p2, %p1353_p0 }
  0x84   : > { %s8032_s2 = scalar_select %p1341_p1, %s7625_s18, %s1343_s28  }
  0x85   : > { %p8038_p6 = por %p1360_p4, %p1359_p3  ;;  %p6677_p7 = scmp.ge.s32.totalorder %s7629_s22, 1 }
  0x86   : > { %9742 = sst [smem:[#allocation60_spill]] %s8032_s2  ;;  %p1579_p8 = scmp.lt.s32.totalorder %s7629_s22, 5 }
  0x87   : > { %s9744_s10 = scalar_select %p8038_p6, 1, 0 }
  0x88   : > { %p1580_p9 = pnand %p6677_p7, %p1579_p8 }
  0x89   : > { %9745 = sst [smem:[#allocation61_spill]] %s9744_s10  ;;  %s1721_s11 = ssub.s32 (!%p1580_p9), 0, %s8017_s0 }
  0x8a   : > { %1583 = sbr.rel (%p1580_p9) target bundleno = 7234 (0x1c42), region = 248  ;;  %s9746_s5 = sld [smem:[#allocation9_spill]] (!%p1580_p9) }
  0x8b   : > { %s6679_s23 = smin.u32 (!%p1580_p9), %s8017_s0, %s1721_s11  ;;  %p1720_p10 = scmp.lt.s32.totalorder (!%p1580_p9), %s8017_s0, 0 }
  0x8c   : > { %s1723_s28 = sand.u32 (!%p1580_p9), 1, %s6679_s23   ;;  %p1715_p12 = scmp.lt.s32.totalorder (!%p1580_p9), %s8017_s0, 3 }
  0x8d   : > { %s1724_s1 = ssub.s32 (!%p1580_p9), 0, %s1723_s28  ;;  %s9764_s11 = sld [smem:[#allocation18_spill]] (!%p1580_p9) }
  0x8e   : > { %s9765_s23 = sld [smem:[#allocation20_spill]] (!%p1580_p9) }
  0x8f   : > { %v1788_v0 = vld [vmem:[%s9738_s13 + $0x10] sm:$0xff]  ;;  %v7689_v2 = vmov 0   ;;  %v1789_v3 = vld [vmem:[%s9738_s13 + $0x18] sm:$0xff]  ;;  %vm1834_vm0 = vcmask 27648   ;;  %v1744_v5 = vld [vmem:[%s9739_s9 + $0x8] sm:$0xff]  ;;  %s9819_s1 = smov (!%p1720_p10, %s1724_s1), %s1723_s28  ;;  %v1736_v9 = vlaneseq  ;;  %vm1885_vm5 = vcmask 1047556  }
  0x90   : > { %v1745_v1 = vld [vmem:[%s9739_s9 + $0x10] sm:$0xff]  ;;  %7079 = vset.pattern.permute.xlu1 %v7689_v2  ;;  %7078 = vset.pattern.permute.xlu0 %v7689_v2  ;;  %v1746_v4 = vld [vmem:[%s9739_s9 + $0x18] sm:$0xff]  ;;  %1835 = vst.msk [vmem:[#allocation2] sm:$0xf] %vm1834_vm0, %v7689_v2  ;;  %1836 = vst.msk [vmem:[#allocation2 + $0x8] sm:$0xf] %vm1834_vm0, %v7689_v2 }
  0x91   : > { %1802 = vperm.xlu1 %7079, %v1788_v0   ;;  %1759 = vperm.xlu0 %7078, %v1745_v1   ;;  %1837 = vst.msk [vmem:[#allocation2 + $0x10] sm:$0xf] %vm1834_vm0, %v7689_v2  ;;  %1838 = vst.msk [vmem:[#allocation2 + $0x18] sm:$0xf] %vm1834_vm0, %v7689_v2  ;;  %v1743_v6 = vld [vmem:[%s9739_s9] sm:$0xff]  ;;  %v1787_v7 = vld [vmem:[%s9738_s13 + $0x8] sm:$0xff] }
  0x92   : > { %2075 = vmatprep.mubr.bf16.mxu0 %v7689_v2  ;;  %2199 = vmatprep.mubr.bf16.mxu1 %v7689_v2  ;;  %1839 = vst.msk [vmem:[#allocation2 + $0x20] sm:$0xf] %vm1834_vm0, %v7689_v2  ;;  %1840 = vst.msk [vmem:[#allocation2 + $0x28] sm:$0xf] %vm1834_vm0, %v7689_v2  ;;  %v1786_v8 = vld [vmem:[%s9738_s13] sm:$0xff]  ;;  %p6681_p11 = scmp.lt.s32.totalorder %s9819_s1, 0 }
  0x93   : > { %1841 = vst.msk [vmem:[#allocation2 + $0x30] sm:$0xf] %vm1834_vm0, %v7689_v2  ;;  %1842 = vst.msk [vmem:[#allocation2 + $0x38] sm:$0xf] %vm1834_vm0, %v7689_v2  ;;  %s1730_s2 = sadd.s32 2, %s9819_s1  ;;  %v8077_v10 = vshrl.u32 %v1736_v9, 7 }
  0x94   : > { %s9821_s2 = smov (!%p6681_p11, %s1730_s2), %s9819_s1  ;;  %v1737_v13 = vand.u32 127, %v1736_v9  ;;  %v1945_v63 = vld [vmem:[%s7724_s21 + $0x18] sm:$0xff]  ;;  %v1944_v0 = vld [vmem:[%s7724_s21 + $0x10] sm:$0xff]  ;;  %v1943_v1 = vld [vmem:[%s7724_s21 + $0x8] sm:$0xff]  ;;  %vm1912_vm6 = vcmask 1043464   ;;  %vm1903_vm7 = vcmask 7168  }
  0x95   : > { %1807 = vperm.xlu1 %7079, %v1789_v3   ;;  %1764 = vperm.xlu0 %7078, %v1746_v4   ;;  %s1716_s18 = scalar_select %p1715_p12, %s8017_s0, 3  ;;  %v8083_v11 = vsub.s32 0, %v8077_v10  ;;  %v8086_v12 = vsub.s32 1, %v8077_v10  ;;  %v1942_v3 = vld [vmem:[%s7724_s21] sm:$0xff]  ;;  %v2129_v4 = vld [vmem:[%s7734_s29 + $0x18] sm:$0xff]  ;;  %vm8186_vm8 = vmor %vm1885_vm5, %vm1912_vm6  ;;  %vm1884_vm9 = vcmask 1043472  }
  0x96   : > { %s6682_s9 = sshll.u32 %s9821_s2, 7  ;;  %v1738_v17 = vadd.s32 128, %v1737_v13  ;;  %vm1875_vm10 = vcmask 15360   ;;  %vm8203_vm11 = vmor %vm1885_vm5, %vm1884_vm9  ;;  %vm2036_vm12 = vcmask 785408   ;;  %vm2160_vm13 = vcmask 130048   ;;  %s9762_s2 = sld [smem:[#allocation19_spill]] }
  0x97   : > { %s6678_s26 = sshll.u32 %s1716_s18, 1  ;;  %s1733_s13 = ssub.s32 128, %s6682_s9  ;;  %vm2297_vm14 = vcmask 1043488   ;;  %vm2288_vm15 = vcmask 31744  }
  0x98   : > { %s8080_s10 = scalar_lea.vmem %s9746_s5, %s6678_s26  ;;  %p1734_p13 = scmp.gt.s32.totalorder %s1733_s13, 0  ;;  %vm8346_vm6 = vmor %vm1885_vm5, %vm2297_vm14  ;;  %vm2662_vm5 = vcmask 261120  }
  0x99   : > { %1754 = vperm.xlu1 %7079, %v1744_v5   ;;  %1749 = vperm.xlu0 %7078, %v1743_v6   ;;  %v1742_v14 = vld [vmem:[%s8080_s10] sm:$0x3]  ;;  %s9640_s9 = smov 1   ;;  %v2128_v5 = vld [vmem:[%s7734_s29 + $0x10] sm:$0xff]  ;;  %v2127_v6 = vld [vmem:[%s7734_s29 + $0x8] sm:$0xff]  ;;  %s9642_s18 = smov 4  }
  0x9a   : > { %s9823_s13 = smov (!%p1734_p13, %s1733_s13), 0  ;;  %v1771_v15 = vrot.slane %v1742_v14, %v8083_v11  ;;  %v1775_v16 = vrot.slane %v1742_v14, %v8086_v12  ;;  %s9761_s26 = sld [smem:[#allocation15_spill]] }
  0x9b   : > { %v1739_v18 = vstv %s9823_s13  ;;  %s9638_s13 = smov 2   ;;  %s9766_s28 = sld [smem:[#allocation23_spill]] }
  0x9c   : > { %vm8091_vm1 = vcmp.ge.s32.totalorder %v1737_v13, %v1739_v18  ;;  %vm8095_vm2 = vcmp.ge.s32.totalorder %v1738_v17, %v1739_v18  ;;  %s9767_s1 = sld [smem:[#allocation25_spill]] }
  0x9d   : > { %1797 = vperm.xlu1 %7079, %v1787_v7   ;;  %1792 = vperm.xlu0 %7078, %v1786_v8   ;;  %vm8144_vm3 = vmpackc.low %vm8095_vm2, %vm8095_vm2  ;;  %v2126_v7 = vld [vmem:[%s7734_s29] sm:$0xff]  ;;  %s9783_s5 = sld [smem:[#allocation37_spill]] }
  0x9e   : > { %vm8155_vm4 = vmpackc.low %vm8091_vm1, %vm8091_vm1 }
 0x10c   : > { %v1803_v19 = vpop.permute.xlu1 %1802  ;;  %v1760_v20 = vpop.permute.xlu0 %1759 }
 0x10d   : > { %v1782_v21 = vmul.f32 %v1771_v15, %v1760_v20  ;;  %v1783_v22 = vmul.f32 %v1775_v16, %v1760_v20 }
 0x10f   : > { %v8099_v25 = vadd.f32 %v1803_v19, %v1782_v21  ;;  %v8101_v26 = vadd.f32 %v1803_v19, %v1783_v22 }
 0x110   : > { %v1808_v27 = vpop.permute.xlu1 %1807  ;;  %v1765_v28 = vpop.permute.xlu0 %1764 }
 0x111   : > { %v1784_v29 = vmul.f32 %v1771_v15, %v1765_v28  ;;  %v1785_v30 = vmul.f32 %v1775_v16, %v1765_v28  ;;  %v1826_v31 = vsel %vm8091_vm1, %v8099_v25, 0.0  ;;  %v1827_v32 = vsel %vm8095_vm2, %v8101_v26, 0.0 }
 0x112   : > { %v6933_v33 = vpack.c.bf16 %v1827_v32, %v1826_v31 }
 0x113   : > { %v8109_v34 = vadd.f32 %v1808_v27, %v1784_v29  ;;  %v8111_v35 = vadd.f32 %v1808_v27, %v1785_v30 }
 0x114   : > { %v1755_v36 = vpop.permute.xlu1 %1754  ;;  %v1750_v37 = vpop.permute.xlu0 %1749  ;;  %1895 = vrot.lane.b32.xlu0 %v6933_v33, %s9640_s9 }
 0x115   : > { %v1780_v38 = vmul.f32 %v1771_v15, %v1755_v36  ;;  %v1828_v39 = vsel %vm8091_vm1, %v8109_v34, 0.0  ;;  %v1829_v40 = vsel %vm8095_vm2, %v8111_v35, 0.0  ;;  %v1781_v41 = vmul.f32 %v1775_v16, %v1755_v36 }
 0x116   : > { %v1778_v42 = vmul.f32 %v1771_v15, %v1750_v37  ;;  %v1779_v43 = vmul.f32 %v1775_v16, %v1750_v37  ;;  %v6934_v44 = vpack.c.bf16 %v1829_v40, %v1828_v39  ;;  %v7382_v58 = vpack.c.bf16 %v8111_v35, %v8101_v26 }
 0x117   : > { %v7385_v60 = vpack.c.bf16 %v8109_v34, %v8099_v25 }
 0x118   : > { %v1798_v45 = vpop.permute.xlu1 %1797  ;;  %v1793_v46 = vpop.permute.xlu0 %1792  ;;  %1897 = vrot.lane.b32.xlu1 %v6934_v44, %s9640_s9  ;;  %7383 = vmatprep.subr.msk.bf16.mxu0 %vm8144_vm3, %v7382_v58 }
 0x119   : > { %v8120_v47 = vadd.f32 %v1798_v45, %v1780_v38  ;;  %v8122_v48 = vadd.f32 %v1798_v45, %v1781_v41  ;;  %v8124_v49 = vadd.f32 %v1793_v46, %v1778_v42  ;;  %v8126_v50 = vadd.f32 %v1793_v46, %v1779_v43  ;;  %7386 = vmatpush1.bf16.msk.msra.mxu0 %vm8155_vm4, %v7385_v60 }
 0x11b   : > { %v1824_v51 = vsel %vm8091_vm1, %v8120_v47, 0.0  ;;  %v1825_v52 = vsel %vm8095_vm2, %v8122_v48, 0.0  ;;  %v1822_v53 = vsel %vm8091_vm1, %v8124_v49, 0.0  ;;  %v1823_v54 = vsel %vm8095_vm2, %v8126_v50, 0.0 }
 0x11c   : > { %v6932_v55 = vpack.c.bf16 %v1825_v52, %v1824_v51  ;;  %v6931_v56 = vpack.c.bf16 %v1823_v54, %v1822_v53  ;;  %v7390_v61 = vpack.c.bf16 %v8122_v48, %v8126_v50  ;;  %v7393_v62 = vpack.c.bf16 %v8120_v47, %v8124_v49 }
 0x11e   : > { %1893 = vrot.lane.b32.xlu1 %v6932_v55, %s9640_s9  ;;  %1891 = vrot.lane.b32.xlu0 %v6931_v56, %s9640_s9 }
 0x11f   : > { %7391 = vmatprep.subr.msk.bf16.mxu0 %vm8144_vm3, %v7390_v61 }
 0x120   : > { %7394 = vmatpush1.bf16.msk.msra.mxu0 %vm8155_vm4, %v7393_v62 }
 0x122   : > { %1869 = vrot.lane.b32.xlu1 %v6934_v44, %s9638_s13  ;;  %1867 = vrot.lane.b32.xlu0 %v6933_v33, %s9638_s13 }
 0x126   : > { %1865 = vrot.lane.b32.xlu1 %v6932_v55, %s9638_s13  ;;  %1863 = vrot.lane.b32.xlu0 %v6931_v56, %s9638_s13 }
 0x12a   : > { %1963 = vperm.xlu1 %7079, %v1945_v63   ;;  %1958 = vperm.xlu0 %7078, %v1944_v0  }
 0x12e   : > { %1953 = vperm.xlu1 %7079, %v1943_v1   ;;  %1948 = vperm.xlu0 %7078, %v1942_v3   ;;  %v7088_v1 = vld [vmem:[%s7719_s17] sm:$0xff]   ;;  %v7089_v3 = vld [vmem:[%s7719_s17 + $0x8] sm:$0xff]  }
 0x132   : > { %2147 = vperm.xlu1 %7079, %v2129_v4   ;;  %2142 = vperm.xlu0 %7078, %v2128_v5  }
 0x136   : > { %2137 = vperm.xlu1 %7079, %v2127_v6   ;;  %2132 = vperm.xlu0 %7078, %v2126_v7  }
 0x186   : > { %v1896_v8 = vpop.permute.xlu0 %1895 }
 0x187   : > { %v1901_v13 = vrot.slane %v1896_v8, 4 }
 0x189   : > { %v1906_v14 = vsel %vm1903_vm7, %v1901_v13, %v1896_v8 }
 0x18a   : > { %1916 = vst.msk [vmem:[#allocation2 + $0x30] sm:$0xff] %vm8186_vm8, %v1906_v14  ;;  %v1898_v15 = vpop.permute.xlu1 %1897 }
 0x18b   : > { %v1902_v16 = vrot.slane %v1898_v15, 4 }
 0x18d   : > { %v1907_v17 = vsel %vm1903_vm7, %v1902_v16, %v1898_v15 }
 0x18e   : > { %1917 = vst.msk [vmem:[#allocation2 + $0x38] sm:$0xff] %vm8186_vm8, %v1907_v17 }
 0x190   : > { %v1894_v18 = vpop.permute.xlu1 %1893  ;;  %v1892_v19 = vpop.permute.xlu0 %1891 }
 0x191   : > { %v1900_v20 = vrot.slane %v1894_v18, 4  ;;  %v1899_v21 = vrot.slane %v1892_v19, 4  ;;  %v1936_v33 = vld [vmem:[#allocation2 + $0x30] sm:$0xff] }
 0x192   : > { %2254 = vst.msk [vmem:[#allocation2 + $0x30] sm:$0xf] %vm1834_vm0, %v7689_v2 }
 0x193   : > { %v1905_v22 = vsel %vm1903_vm7, %v1900_v20, %v1894_v18  ;;  %v1904_v27 = vsel %vm1903_vm7, %v1899_v21, %v1892_v19 }
 0x194   : > { %1915 = vst.msk [vmem:[#allocation2 + $0x28] sm:$0xff] %vm8186_vm8, %v1905_v22  ;;  %1914 = vst.msk [vmem:[#allocation2 + $0x20] sm:$0xff] %vm8186_vm8, %v1904_v27  ;;  %v1870_v28 = vpop.permute.xlu1 %1869  ;;  %v1868_v29 = vpop.permute.xlu0 %1867 }
 0x195   : > { %v1874_v31 = vrot.slane %v1870_v28, 4  ;;  %v1873_v32 = vrot.slane %v1868_v29, 4  ;;  %v1937_v36 = vld [vmem:[#allocation2 + $0x38] sm:$0xff] }
 0x196   : > { %v7080_v37 = vld [vmem:[#allocation2 + $0x34] ss:$8 sps:$4 sm:$0xff]   ;;  %2255 = vst.msk [vmem:[#allocation2 + $0x38] sm:$0xf] %vm1834_vm0, %v7689_v2  ;;  %v6695_v40 = vcombine.low %v1936_v33, %v1937_v36 }
 0x197   : > { %v1879_v38 = vsel %vm1875_vm10, %v1874_v31, %v1870_v28  ;;  %v1878_v39 = vsel %vm1875_vm10, %v1873_v32, %v1868_v29  ;;  %2051 = vmatprep.subr.bf16.mxu0 %v7080_v37 }
 0x198   : > { %1890 = vst.msk [vmem:[#allocation2 + $0x18] sm:$0xff] %vm8203_vm11, %v1879_v38  ;;  %1889 = vst.msk [vmem:[#allocation2 + $0x10] sm:$0xff] %vm8203_vm11, %v1878_v39  ;;  %v1866_v41 = vpop.permute.xlu1 %1865  ;;  %v1864_v42 = vpop.permute.xlu0 %1863  ;;  %2052 = vmatpush1.bf16.msra.mxu0 %v6695_v40 }
 0x199   : > { %v1872_v43 = vrot.slane %v1866_v41, 4  ;;  %v1871_v44 = vrot.slane %v1864_v42, 4 }
 0x19b   : > { %v1877_v45 = vsel %vm1875_vm10, %v1872_v43, %v1866_v41  ;;  %v1876_v46 = vsel %vm1875_vm10, %v1871_v44, %v1864_v42  ;;  %v1934_v51 = vld [vmem:[#allocation2 + $0x20] sm:$0xff]  ;;  %v1935_v52 = vld [vmem:[#allocation2 + $0x28] sm:$0xff] }
 0x19c   : > { %v7082_v53 = vld [vmem:[#allocation2 + $0x24] ss:$8 sps:$4 sm:$0xff]   ;;  %1888 = vst.msk [vmem:[#allocation2 + $0x8] sm:$0xff] %vm8203_vm11, %v1877_v45  ;;  %1887 = vst.msk [vmem:[#allocation2] sm:$0xff] %vm8203_vm11, %v1876_v46  ;;  %v6693_v54 = vcombine.low %v1934_v51, %v1935_v52 }
 0x19d   : > { %2252 = vst.msk [vmem:[#allocation2 + $0x20] sm:$0xf] %vm1834_vm0, %v7689_v2  ;;  %2253 = vst.msk [vmem:[#allocation2 + $0x28] sm:$0xf] %vm1834_vm0, %v7689_v2  ;;  %2053 = vmatprep.subr.bf16.mxu0 %v7082_v53 }
 0x19e   : > { %2054 = vmatpush1.bf16.msra.mxu0 %v6693_v54 }
 0x19f   : > { %v1932_v55 = vld [vmem:[#allocation2 + $0x10] sm:$0xff]  ;;  %v1933_v56 = vld [vmem:[#allocation2 + $0x18] sm:$0xff] }
 0x1a0   : > { %v7084_v58 = vld [vmem:[#allocation2 + $0x14] ss:$8 sps:$4 sm:$0xff]   ;;  %2250 = vst.msk [vmem:[#allocation2 + $0x10] sm:$0xf] %vm1834_vm0, %v7689_v2  ;;  %2251 = vst.msk [vmem:[#allocation2 + $0x18] sm:$0xf] %vm1834_vm0, %v7689_v2  ;;  %v6691_v60 = vcombine.low %v1932_v55, %v1933_v56 }
 0x1a1   : > { %2055 = vmatprep.subr.bf16.mxu0 %v7084_v58 }
 0x1a2   : > { %2056 = vmatpush1.bf16.msra.mxu0 %v6691_v60 }
 0x1a3   : > { %v1930_v61 = vld [vmem:[#allocation2] sm:$0xff]  ;;  %v1931_v62 = vld [vmem:[#allocation2 + $0x8] sm:$0xff] }
 0x1a4   : > { %v7086_v63 = vld [vmem:[#allocation2 + $0x4] ss:$8 sps:$4 sm:$0xff]   ;;  %2248 = vst.msk [vmem:[#allocation2] sm:$0xf] %vm1834_vm0, %v7689_v2  ;;  %2249 = vst.msk [vmem:[#allocation2 + $0x8] sm:$0xf] %vm1834_vm0, %v7689_v2  ;;  %v6689_v0 = vcombine.low %v1930_v61, %v1931_v62 }
 0x1a5   : > { %2057 = vmatprep.subr.bf16.mxu0 %v7086_v63  ;;  %v1959_v8 = vpop.permute.xlu0 %1958  ;;  %v1964_v16 = vpop.permute.xlu1 %1963 }
 0x1a6   : > { %2058 = vmatpush1.bf16.msra.mxu0 %v6689_v0 }
 0x1a9   : > { %6701 = vmatmul.mubr.msk.bf16.vlgmr.msra.gmra.mxu0 %vm2036_vm12, %v7088_v1  ;;  %v1949_v29 = vpop.permute.xlu0 %1948  ;;  %v1954_v31 = vpop.permute.xlu1 %1953 }
 0x1aa   : > { %2085 = vmatprep.mubr.bf16.mxu0 %v7689_v2 }
 0x1b1   : > { %6702 = vmatmul.mubr.msk.bf16.gmra.mxu0 %vm2036_vm12, %v7089_v3 }
 0x1b2   : > { %2606 = vmatprep.mubr.bf16.mxu0 %v7689_v2 }
 0x269   : > { %v2077_v4 = vpop.f32.mrf.mxu0 }
 0x26a   : > { %v2078_v38 = vadd.f32 %v2077_v4, %v1949_v29  ;;  %v7090_v4 = vld [vmem:[%s7729_s25] sm:$0xff]  }
 0x26b   : > { %v2079_v5 = vpop.f32.mrf.mxu0 }
 0x26c   : > { %v2080_v32 = vadd.f32 %v2079_v5, %v1949_v29  ;;  %v7091_v5 = vld [vmem:[%s7729_s25 + $0x8] sm:$0xff]  }
 0x26d   : > { %v2081_v6 = vpop.f32.mrf.mxu0 }
 0x26e   : > { %v2082_v36 = vadd.f32 %v2081_v6, %v1954_v31  ;;  %v2143_v6 = vpop.permute.xlu0 %2142 }
 0x26f   : > { %v2083_v7 = vpop.f32.mrf.mxu0 }
 0x270   : > { %v2084_v37 = vadd.f32 %v2083_v7, %v1954_v31  ;;  %v2148_v7 = vpop.permute.xlu1 %2147 }
 0x271   : > { %v2087_v13 = vpop.f32.mrf.mxu0 }
 0x272   : > { %v2088_v14 = vadd.f32 %v2087_v13, %v1959_v8 }
 0x273   : > { %v2089_v15 = vpop.f32.mrf.mxu0 }
 0x274   : > { %v2100_v17 = vmul.f32 0.5, %v2088_v14  ;;  %v2090_v18 = vadd.f32 %v2089_v15, %v1959_v8  ;;  %v2133_v8 = vpop.permute.xlu0 %2132 }
 0x275   : > { %v2091_v19 = vpop.f32.mrf.mxu0 }
 0x276   : > { %v2101_v20 = vmul.f32 0.5, %v2090_v18  ;;  %v2092_v21 = vadd.f32 %v2091_v19, %v1964_v16  ;;  %7204 = vtanh.f32 %v2100_v17  ;;  %v2138_v18 = vpop.permute.xlu1 %2137 }
 0x277   : > { %v2093_v22 = vpop.f32.mrf.mxu0 }
 0x278   : > { %7206 = vtanh.f32 %v2101_v20  ;;  %v2102_v27 = vmul.f32 0.5, %v2092_v21  ;;  %v2094_v28 = vadd.f32 %v2093_v22, %v1964_v16 }
 0x27a   : > { %7208 = vtanh.f32 %v2102_v27  ;;  %v2103_v33 = vmul.f32 0.5, %v2094_v28 }
 0x27c   : > { %7210 = vtanh.f32 %v2103_v33 }
 0x27d   : > { %7212 = vtanh.f32 %v2080_v32 }
 0x27e   : > { %7214 = vtanh.f32 %v2082_v36 }
 0x27f   : > { %7216 = vtanh.f32 %v2084_v37 }
 0x280   : > { %7218 = vtanh.f32 %v2078_v38 }
 0x283   : > { %v7205_v39 = vpop.eup %7204 }
 0x284   : > { %v2108_v43 = vmul.f32 0.5, %v7205_v39 }
 0x285   : > { %v7207_v40 = vpop.eup %7206 }
 0x286   : > { %v2109_v41 = vmul.f32 0.5, %v7207_v40  ;;  %v2112_v54 = vadd.f32 0.5, %v2108_v43 }
 0x287   : > { %v7209_v42 = vpop.eup %7208 }
 0x288   : > { %v2110_v44 = vmul.f32 0.5, %v7209_v42  ;;  %v2113_v51 = vadd.f32 0.5, %v2109_v41 }
 0x289   : > { %v7211_v45 = vpop.eup %7210 }
 0x28a   : > { %v2111_v46 = vmul.f32 0.5, %v7211_v45  ;;  %v2114_v52 = vadd.f32 0.5, %v2110_v44  ;;  %v7213_v53 = vpop.eup %7212 }
 0x28b   : > { %v7215_v55 = vpop.eup %7214  ;;  %v2117_v62 = vmul.f32 %v7213_v53, %v2113_v51 }
 0x28c   : > { %v2115_v56 = vadd.f32 0.5, %v2111_v46  ;;  %v7217_v58 = vpop.eup %7216  ;;  %v2118_v60 = vmul.f32 %v7215_v55, %v2114_v52 }
 0x28d   : > { %v7219_v61 = vpop.eup %7218 }
 0x28e   : > { %v2119_v63 = vmul.f32 %v7217_v58, %v2115_v56  ;;  %v2116_v0 = vmul.f32 %v7219_v61, %v2112_v54 }
 0x290   : > { %v2121_v1 = vpack.c.bf16 %v2119_v63, %v2117_v62  ;;  %v2120_v3 = vpack.c.bf16 %v2118_v60, %v2116_v0 }
 0x292   : > { %2181 = vmatprep.subr.bf16.mxu1 %v2121_v1 }
 0x293   : > { %2182 = vmatpush1.bf16.msra.mxu1 %v2120_v3 }
 0x296   : > { %6705 = vmatmul.mubr.msk.bf16.vlgmr.msra.gmra.mxu1 %vm2160_vm13, %v7090_v4  ;;  %v2353_v4 = vld [vmem:[%s9735_s8 + $0x10] sm:$0xff] }
 0x297   : > { %2209 = vmatprep.mubr.bf16.mxu1 %v7689_v2 }
 0x29e   : > { %6706 = vmatmul.mubr.msk.bf16.gmra.mxu1 %vm2160_vm13, %v7091_v5  ;;  %v2354_v5 = vld [vmem:[%s9735_s8 + $0x18] sm:$0xff] }
 0x29f   : > { %2483 = vmatprep.mubr.bf16.mxu1 %v7689_v2 }
 0x356   : > { %v2201_v13 = vpop.f32.mrf.mxu1 }
 0x357   : > { %v2202_v14 = vadd.f32 %v2201_v13, %v2133_v8  ;;  %v2537_v13 = vld [vmem:[%s7754_s19 + $0x18] sm:$0xff] }
 0x358   : > { %v2203_v15 = vpop.f32.mrf.mxu1 }
 0x359   : > { %v2220_v16 = vadd.f32 %v2202_v14, %v8124_v49  ;;  %v2204_v17 = vadd.f32 %v2203_v15, %v2133_v8  ;;  %v2536_v8 = vld [vmem:[%s7754_s19 + $0x10] sm:$0xff]  ;;  %v2534_v14 = vld [vmem:[%s7754_s19] sm:$0xff]  ;;  %v2535_v15 = vld [vmem:[%s7754_s19 + $0x8] sm:$0xff] }
 0x35a   : > { %v2205_v19 = vpop.f32.mrf.mxu1 }
 0x35b   : > { %v8248_v20 = vmul.f32 0.70710677, %v2220_v16  ;;  %v2221_v21 = vadd.f32 %v2204_v17, %v8126_v50  ;;  %v2206_v22 = vadd.f32 %v2205_v19, %v2138_v18  ;;  %v2656_v16 = vld [vmem:[%s7764_s30] sm:$0xff]  ;;  %v2752_v17 = vld [vmem:[%s9736_s6 + $0x10] sm:$0xff] }
 0x35c   : > { %v2207_v27 = vpop.f32.mrf.mxu1  ;;  %v2795_v19 = vld [vmem:[%s9734_s12 + $0x10] sm:$0xff] }
 0x35d   : > { %v8251_v28 = vmul.f32 0.70710677, %v2221_v21  ;;  %v2222_v29 = vadd.f32 %v2206_v22, %v8120_v47  ;;  %v2208_v31 = vadd.f32 %v2207_v27, %v2138_v18  ;;  %v2236_v33 = vsel %vm8091_vm1, %v8248_v20, 0.0  ;;  %v2753_v18 = vld [vmem:[%s9736_s6 + $0x18] sm:$0xff]  ;;  %v2750_v22 = vld [vmem:[%s9736_s6] sm:$0xff]  ;;  %v2751_v27 = vld [vmem:[%s9736_s6 + $0x8] sm:$0xff] }
 0x35e   : > { %v2211_v32 = vpop.f32.mrf.mxu1  ;;  %v2796_v21 = vld [vmem:[%s9734_s12 + $0x18] sm:$0xff]  ;;  %s9784_s6 = sld [smem:[#allocation39_spill]] }
 0x35f   : > { %v8257_v49 = vmul.f32 0.70710677, %v2222_v29  ;;  %v2223_v36 = vadd.f32 %v2208_v31, %v8122_v48  ;;  %v2212_v37 = vadd.f32 %v2211_v32, %v2143_v6  ;;  %v2237_v50 = vsel %vm8095_vm2, %v8251_v28, 0.0  ;;  %v2793_v29 = vld [vmem:[%s9734_s12] sm:$0xff]  ;;  %v2794_v31 = vld [vmem:[%s9734_s12 + $0x8] sm:$0xff] }
 0x360   : > { %v2213_v38 = vpop.f32.mrf.mxu1  ;;  %v6935_v39 = vpack.c.bf16 %v2237_v50, %v2236_v33 }
 0x361   : > { %v8263_v40 = vmul.f32 0.70710677, %v2223_v36  ;;  %v2224_v47 = vadd.f32 %v2212_v37, %v8099_v25  ;;  %v2214_v41 = vadd.f32 %v2213_v38, %v2143_v6  ;;  %v2238_v43 = vsel %vm8091_vm1, %v8257_v49, 0.0  ;;  %v2351_v6 = vld [vmem:[%s9735_s8] sm:$0xff] }
 0x362   : > { %v2215_v42 = vpop.f32.mrf.mxu1  ;;  %v7409_v3 = vpack.c.bf16 %v8257_v49, %v8248_v20 }
 0x363   : > { %v8269_v44 = vmul.f32 0.70710677, %v2224_v47  ;;  %v2225_v48 = vadd.f32 %v2214_v41, %v8101_v26  ;;  %v2216_v45 = vadd.f32 %v2215_v42, %v2148_v7  ;;  %v2239_v46 = vsel %vm8095_vm2, %v8263_v40, 0.0 }
 0x364   : > { %v2217_v51 = vpop.f32.mrf.mxu1  ;;  %v6936_v52 = vpack.c.bf16 %v2239_v46, %v2238_v43  ;;  %v7405_v1 = vpack.c.bf16 %v8263_v40, %v8251_v28 }
 0x365   : > { %v8275_v53 = vmul.f32 0.70710677, %v2225_v48  ;;  %v2226_v25 = vadd.f32 %v2216_v45, %v8109_v34  ;;  %v2218_v54 = vadd.f32 %v2217_v51, %v2148_v7  ;;  %v2240_v26 = vsel %vm8091_vm1, %v8269_v44, 0.0  ;;  %v2352_v7 = vld [vmem:[%s9735_s8 + $0x8] sm:$0xff]  ;;  %s9785_s8 = sld [smem:[#allocation40_spill]] }
 0x367   : > { %v8278_v55 = vmul.f32 0.70710677, %v2226_v25  ;;  %v2227_v56 = vadd.f32 %v2218_v54, %v8111_v35  ;;  %v2241_v58 = vsel %vm8095_vm2, %v8275_v53, 0.0 }
 0x368   : > { %v6937_v60 = vpack.c.bf16 %v2241_v58, %v2240_v26 }
 0x369   : > { %v8287_v61 = vmul.f32 0.70710677, %v2227_v56  ;;  %v2242_v34 = vsel %vm8091_vm1, %v8278_v55, 0.0  ;;  %v7401_v0 = vpack.c.bf16 %v8278_v55, %v8269_v44 }
 0x36a   : > { %2307 = vrot.lane.b32.xlu0 %v6937_v60, %s9638_s13 }
 0x36b   : > { %v2243_v35 = vsel %vm8095_vm2, %v8287_v61, 0.0  ;;  %v7398_v63 = vpack.c.bf16 %v8287_v61, %v8275_v53 }
 0x36c   : > { %v6938_v62 = vpack.c.bf16 %v2243_v35, %v2242_v34 }
 0x36d   : > { %7399 = vmatprep.subr.msk.bf16.mxu1 %vm8144_vm3, %v7398_v63 }
 0x36e   : > { %2309 = vrot.lane.b32.xlu1 %v6938_v62, %s9638_s13  ;;  %2303 = vrot.lane.b32.xlu0 %v6935_v39, %s9638_s13 }
 0x36f   : > { %7402 = vmatpush1.bf16.msk.msra.mxu1 %vm8155_vm4, %v7401_v0 }
 0x370   : > { %7406 = vmatprep.subr.msk.bf16.mxu1 %vm8144_vm3, %v7405_v1 }
 0x372   : > { %2305 = vrot.lane.b32.xlu1 %v6936_v52, %s9638_s13  ;;  %2280 = vrot.lane.b32.xlu0 %v6937_v60, %s9642_s18 }
 0x373   : > { %7410 = vmatpush1.bf16.msk.msra.mxu1 %vm8155_vm4, %v7409_v3 }
 0x376   : > { %2282 = vrot.lane.b32.xlu1 %v6938_v62, %s9642_s18  ;;  %2276 = vrot.lane.b32.xlu0 %v6935_v39, %s9642_s18 }
 0x37a   : > { %2278 = vrot.lane.b32.xlu1 %v6936_v52, %s9642_s18  ;;  %2367 = vperm.xlu0 %7078, %v2353_v4  }
 0x37e   : > { %2372 = vperm.xlu1 %7079, %v2354_v5   ;;  %2357 = vperm.xlu0 %7078, %v2351_v6  }
 0x382   : > { %2362 = vperm.xlu1 %7079, %v2352_v7   ;;  %2550 = vperm.xlu0 %7078, %v2536_v8  }
 0x386   : > { %2555 = vperm.xlu1 %7079, %v2537_v13   ;;  %2540 = vperm.xlu0 %7078, %v2534_v14  }
 0x38a   : > { %2545 = vperm.xlu1 %7079, %v2535_v15   ;;  %2659 = vperm.xlu0 %7078, %v2656_v16  }
 0x38e   : > { %2766 = vperm.xlu1 %7079, %v2752_v17   ;;  %2771 = vperm.xlu0 %7078, %v2753_v18  }
 0x392   : > { %2809 = vperm.xlu1 %7079, %v2795_v19   ;;  %2814 = vperm.xlu0 %7078, %v2796_v21   ;;  %v7100_v21 = vld [vmem:[%s9737_s3] sm:$0xff]  }
 0x396   : > { %2756 = vperm.xlu1 %7079, %v2750_v22   ;;  %2761 = vperm.xlu0 %7078, %v2751_v27   ;;  %v7101_v22 = vld [vmem:[%s9737_s3 + $0x8] sm:$0xff]   ;;  %s9778_s3 = smov 2  }
 0x39a   : > { %2799 = vperm.xlu1 %7079, %v2793_v29   ;;  %2804 = vperm.xlu0 %7078, %v2794_v31  }
 0x3dc   : > { %v2308_v32 = vpop.permute.xlu0 %2307 }
 0x3dd   : > { %v2313_v33 = vrot.slane %v2308_v32, 4 }
 0x3df   : > { %v2317_v36 = vsel %vm1875_vm10, %v2313_v33, %v2308_v32 }
 0x3e0   : > { %2325 = vst.msk [vmem:[#allocation2 + $0x30] sm:$0xff] %vm8203_vm11, %v2317_v36  ;;  %v2310_v37 = vpop.permute.xlu1 %2309  ;;  %v2304_v50 = vpop.permute.xlu0 %2303 }
 0x3e1   : > { %v2314_v38 = vrot.slane %v2310_v37, 4  ;;  %v2311_v39 = vrot.slane %v2304_v50, 4 }
 0x3e3   : > { %v2318_v47 = vsel %vm1875_vm10, %v2314_v38, %v2310_v37  ;;  %v2315_v41 = vsel %vm1875_vm10, %v2311_v39, %v2304_v50 }
 0x3e4   : > { %2326 = vst.msk [vmem:[#allocation2 + $0x38] sm:$0xff] %vm8203_vm11, %v2318_v47  ;;  %2323 = vst.msk [vmem:[#allocation2 + $0x20] sm:$0xff] %vm8203_vm11, %v2315_v41  ;;  %v2306_v42 = vpop.permute.xlu1 %2305  ;;  %v2281_v43 = vpop.permute.xlu0 %2280 }
 0x3e5   : > { %v2312_v48 = vrot.slane %v2306_v42, 4  ;;  %v2286_v46 = vrot.slane %v2281_v43, 4 }
 0x3e7   : > { %v2316_v51 = vsel %vm1875_vm10, %v2312_v48, %v2306_v42  ;;  %v2291_v52 = vsel %vm2288_vm15, %v2286_v46, %v2281_v43  ;;  %v2345_v34 = vld [vmem:[#allocation2 + $0x30] sm:$0xff] }
 0x3e8   : > { %2324 = vst.msk [vmem:[#allocation2 + $0x28] sm:$0xff] %vm8203_vm11, %v2316_v51  ;;  %v2283_v25 = vpop.permute.xlu1 %2282  ;;  %v2277_v54 = vpop.permute.xlu0 %2276 }
 0x3e9   : > { %2301 = vst.msk [vmem:[#allocation2 + $0x10] sm:$0xff] %vm8346_vm6, %v2291_v52  ;;  %v2287_v56 = vrot.slane %v2283_v25, 4  ;;  %v2284_v26 = vrot.slane %v2277_v54, 4 }
 0x3ea   : > { %2843 = vst.msk [vmem:[#allocation2 + $0x30] sm:$0xf] %vm1834_vm0, %v7689_v2 }
 0x3eb   : > { %v2292_v58 = vsel %vm2288_vm15, %v2287_v56, %v2283_v25  ;;  %v2289_v60 = vsel %vm2288_vm15, %v2284_v26, %v2277_v54  ;;  %v2346_v35 = vld [vmem:[#allocation2 + $0x38] sm:$0xff]  ;;  %v2343_v4 = vld [vmem:[#allocation2 + $0x20] sm:$0xff] }
 0x3ec   : > { %v7092_v62 = vld [vmem:[#allocation2 + $0x34] ss:$8 sps:$4 sm:$0xff]   ;;  %2302 = vst.msk [vmem:[#allocation2 + $0x18] sm:$0xff] %vm8346_vm6, %v2292_v58  ;;  %2299 = vst.msk [vmem:[#allocation2] sm:$0xff] %vm8346_vm6, %v2289_v60  ;;  %v2279_v63 = vpop.permute.xlu1 %2278  ;;  %v6719_v0 = vcombine.low %v2345_v34, %v2346_v35 }
 0x3ed   : > { %2844 = vst.msk [vmem:[#allocation2 + $0x38] sm:$0xf] %vm1834_vm0, %v7689_v2  ;;  %v2285_v1 = vrot.slane %v2279_v63, 4  ;;  %2459 = vmatprep.subr.bf16.mxu1 %v7092_v62  ;;  %2841 = vst.msk [vmem:[#allocation2 + $0x20] sm:$0xf] %vm1834_vm0, %v7689_v2 }
 0x3ee   : > { %2460 = vmatpush1.bf16.msra.mxu1 %v6719_v0 }
 0x3ef   : > { %v2290_v3 = vsel %vm2288_vm15, %v2285_v1, %v2279_v63  ;;  %v2344_v5 = vld [vmem:[#allocation2 + $0x28] sm:$0xff] }
 0x3f0   : > { %v7094_v6 = vld [vmem:[#allocation2 + $0x24] ss:$8 sps:$4 sm:$0xff]   ;;  %2300 = vst.msk [vmem:[#allocation2 + $0x8] sm:$0xff] %vm8346_vm6, %v2290_v3  ;;  %v6717_v7 = vcombine.low %v2343_v4, %v2344_v5  ;;  %v2341_v8 = vld [vmem:[#allocation2 + $0x10] sm:$0xff] }
 0x3f1   : > { %2842 = vst.msk [vmem:[#allocation2 + $0x28] sm:$0xf] %vm1834_vm0, %v7689_v2  ;;  %2461 = vmatprep.subr.bf16.mxu1 %v7094_v6  ;;  %2839 = vst.msk [vmem:[#allocation2 + $0x10] sm:$0xf] %vm1834_vm0, %v7689_v2 }
 0x3f2   : > { %2462 = vmatpush1.bf16.msra.mxu1 %v6717_v7 }
 0x3f3   : > { %v2342_v13 = vld [vmem:[#allocation2 + $0x18] sm:$0xff]  ;;  %v2339_v16 = vld [vmem:[#allocation2] sm:$0xff] }
 0x3f4   : > { %v7096_v14 = vld [vmem:[#allocation2 + $0x14] ss:$8 sps:$4 sm:$0xff]   ;;  %2840 = vst.msk [vmem:[#allocation2 + $0x18] sm:$0xf] %vm1834_vm0, %v7689_v2  ;;  %v6715_v15 = vcombine.low %v2341_v8, %v2342_v13  ;;  %2837 = vst.msk [vmem:[#allocation2] sm:$0xf] %vm1834_vm0, %v7689_v2 }
 0x3f5   : > { %2463 = vmatprep.subr.bf16.mxu1 %v7096_v14  ;;  %v2368_v33 = vpop.permute.xlu0 %2367 }
 0x3f6   : > { %2464 = vmatpush1.bf16.msra.mxu1 %v6715_v15 }
 0x3f7   : > { %v2340_v17 = vld [vmem:[#allocation2 + $0x8] sm:$0xff] }
 0x3f8   : > { %v7098_v18 = vld [vmem:[#allocation2 + $0x4] ss:$8 sps:$4 sm:$0xff]   ;;  %2838 = vst.msk [vmem:[#allocation2 + $0x8] sm:$0xf] %vm1834_vm0, %v7689_v2  ;;  %v6713_v19 = vcombine.low %v2339_v16, %v2340_v17 }
 0x3f9   : > { %2465 = vmatprep.subr.bf16.mxu1 %v7098_v18  ;;  %v2373_v38 = vpop.permute.xlu1 %2372  ;;  %v2358_v52 = vpop.permute.xlu0 %2357 }
 0x3fa   : > { %2466 = vmatpush1.bf16.msra.mxu1 %v6713_v19 }
 0x3fd   : > { %6725 = vmatmul.mubr.msk.bf16.vlgmr.msra.gmra.mxu1 %vm2036_vm12, %v7100_v21  ;;  %v2363_v25 = vpop.permute.xlu1 %2362 }
 0x3fe   : > { %2493 = vmatprep.mubr.bf16.mxu1 %v7689_v2 }
 0x405   : > { %6726 = vmatmul.mubr.msk.bf16.gmra.mxu1 %vm2036_vm12, %v7101_v22 }
 0x406   : > { %2698 = vmatprep.mubr.bf16.mxu1 %v7689_v2 }
 0x4bd   : > { %v2485_v27 = vpop.f32.mrf.mxu1 }
 0x4be   : > { %v2486_v60 = vadd.f32 %v2485_v27, %v2358_v52 }
 0x4bf   : > { %v2487_v29 = vpop.f32.mrf.mxu1 }
 0x4c0   : > { %v2488_v54 = vadd.f32 %v2487_v29, %v2358_v52  ;;  %v7102_v29 = vld [vmem:[%s9733_s14] sm:$0xff]  }
 0x4c1   : > { %v2489_v31 = vpop.f32.mrf.mxu1 }
 0x4c2   : > { %v2490_v26 = vadd.f32 %v2489_v31, %v2363_v25  ;;  %v7103_v31 = vld [vmem:[%s9733_s14 + $0x8] sm:$0xff]  }
 0x4c3   : > { %v2491_v32 = vpop.f32.mrf.mxu1 }
 0x4c4   : > { %v2492_v58 = vadd.f32 %v2491_v32, %v2363_v25 }
 0x4c5   : > { %v2495_v36 = vpop.f32.mrf.mxu1 }
 0x4c6   : > { %v2496_v37 = vadd.f32 %v2495_v36, %v2368_v33 }
 0x4c7   : > { %v2497_v50 = vpop.f32.mrf.mxu1 }
 0x4c8   : > { %v2508_v39 = vmul.f32 0.5, %v2496_v37  ;;  %v2498_v47 = vadd.f32 %v2497_v50, %v2368_v33  ;;  %v2556_v33 = vpop.permute.xlu1 %2555  ;;  %v2551_v37 = vpop.permute.xlu0 %2550 }
 0x4c9   : > { %v2499_v41 = vpop.f32.mrf.mxu1 }
 0x4ca   : > { %v2509_v42 = vmul.f32 0.5, %v2498_v47  ;;  %v2500_v43 = vadd.f32 %v2499_v41, %v2373_v38  ;;  %7220 = vtanh.f32 %v2508_v39 }
 0x4cb   : > { %v2501_v48 = vpop.f32.mrf.mxu1 }
 0x4cc   : > { %7222 = vtanh.f32 %v2509_v42  ;;  %v2510_v46 = vmul.f32 0.5, %v2500_v43  ;;  %v2502_v51 = vadd.f32 %v2501_v48, %v2373_v38  ;;  %v2546_v39 = vpop.permute.xlu1 %2545  ;;  %v2541_v42 = vpop.permute.xlu0 %2540 }
 0x4ce   : > { %7224 = vtanh.f32 %v2510_v46  ;;  %v2511_v56 = vmul.f32 0.5, %v2502_v51 }
 0x4d0   : > { %7226 = vtanh.f32 %v2511_v56 }
 0x4d1   : > { %7228 = vtanh.f32 %v2488_v54 }
 0x4d2   : > { %7230 = vtanh.f32 %v2490_v26 }
 0x4d3   : > { %7232 = vtanh.f32 %v2492_v58 }
 0x4d4   : > { %7234 = vtanh.f32 %v2486_v60 }
 0x4d7   : > { %v7221_v34 = vpop.eup %7220 }
 0x4d8   : > { %v2516_v0 = vmul.f32 0.5, %v7221_v34 }
 0x4d9   : > { %v7223_v35 = vpop.eup %7222 }
 0x4da   : > { %v2517_v62 = vmul.f32 0.5, %v7223_v35  ;;  %v2520_v8 = vadd.f32 0.5, %v2516_v0 }
 0x4db   : > { %v7225_v63 = vpop.eup %7224 }
 0x4dc   : > { %v2518_v1 = vmul.f32 0.5, %v7225_v63  ;;  %v2521_v4 = vadd.f32 0.5, %v2517_v62 }
 0x4dd   : > { %v7227_v3 = vpop.eup %7226 }
 0x4de   : > { %v2522_v5 = vadd.f32 0.5, %v2518_v1  ;;  %v2519_v6 = vmul.f32 0.5, %v7227_v3  ;;  %v7229_v7 = vpop.eup %7228 }
 0x4df   : > { %v7231_v13 = vpop.eup %7230  ;;  %v2525_v18 = vmul.f32 %v7229_v7, %v2521_v4 }
 0x4e0   : > { %v2523_v14 = vadd.f32 0.5, %v2519_v6  ;;  %v7233_v15 = vpop.eup %7232  ;;  %v2526_v16 = vmul.f32 %v7231_v13, %v2522_v5 }
 0x4e1   : > { %v7235_v17 = vpop.eup %7234 }
 0x4e2   : > { %v2527_v19 = vmul.f32 %v7233_v15, %v2523_v14  ;;  %v2524_v21 = vmul.f32 %v7235_v17, %v2520_v8 }
 0x4e4   : > { %v2529_v22 = vpack.c.bf16 %v2527_v19, %v2525_v18  ;;  %v2528_v27 = vpack.c.bf16 %v2526_v16, %v2524_v21  ;;  %v2655_v21 = vld [vmem:[%s9761_s26] sm:$0xf]  ;;  %s9768_s26 = sld [smem:[#allocation27_spill]] }
 0x4e6   : > { %2588 = vmatprep.subr.bf16.mxu0 %v2529_v22  ;;  %v2660_v22 = vpop.permute.xlu0 %2659 }
 0x4e7   : > { %2589 = vmatpush1.bf16.msra.mxu0 %v2528_v27 }
 0x4ea   : > { %6729 = vmatmul.mubr.msk.bf16.vlgmr.msra.gmra.mxu0 %vm2160_vm13, %v7102_v29 }
 0x4eb   : > { %2616 = vmatprep.mubr.bf16.mxu0 %v7689_v2 }
 0x4f2   : > { %6730 = vmatmul.mubr.msk.bf16.gmra.mxu0 %vm2160_vm13, %v7103_v31 }
 0x4f3   : > { %3069 = vmatprep.mubr.bf16.mxu0 %v7689_v2 }
 0x5aa   : > { %v2608_v32 = vpop.f32.mrf.mxu0 }
 0x5ab   : > { %v2609_v26 = vadd.f32 %v2608_v32, %v2541_v42 }
 0x5ac   : > { %v2610_v36 = vpop.f32.mrf.mxu0 }
 0x5ad   : > { %v2611_v46 = vadd.f32 %v2610_v36, %v2541_v42  ;;  %v2767_v42 = vpop.permute.xlu1 %2766 }
 0x5ae   : > { %v2612_v50 = vpop.f32.mrf.mxu0 }
 0x5af   : > { %v2613_v52 = vadd.f32 %v2612_v50, %v2546_v39  ;;  %v2628_v35 = vadd.f32 %v2611_v46, %v8251_v28 }
 0x5b0   : > { %v2614_v38 = vpop.f32.mrf.mxu0 }
 0x5b1   : > { %v2615_v41 = vadd.f32 %v2614_v38, %v2546_v39  ;;  %v2629_v63 = vadd.f32 %v2613_v52, %v8257_v49  ;;  %v2636_v6 = vmul.f32 0.70710677, %v2628_v35  ;;  %v7693_v38 = vmov 1966171168  }
 0x5b2   : > { %v2618_v47 = vpop.f32.mrf.mxu0  ;;  %v2715_v39 = vunpack.c.l.s4 %v7693_v38 }
 0x5b3   : > { %v2619_v43 = vadd.f32 %v2618_v47, %v2551_v37  ;;  %v2630_v54 = vadd.f32 %v2615_v41, %v8263_v40  ;;  %v2627_v40 = vadd.f32 %v2609_v26, %v8248_v20  ;;  %v2644_v16 = vmax.f32 %v2636_v6, 0.0 }
 0x5b4   : > { %v2620_v48 = vpop.f32.mrf.mxu0  ;;  %v2716_v47 = vunpack.c.0.s8 %v2715_v39 }
 0x5b5   : > { %v2621_v51 = vadd.f32 %v2620_v48, %v2551_v37  ;;  %v2631_v58 = vadd.f32 %v2619_v43, %v8269_v44  ;;  %v2638_v1 = vmul.f32 0.70710677, %v2630_v54  ;;  %v2637_v44 = vmul.f32 0.70710677, %v2629_v63  ;;  %v2772_v43 = vpop.permute.xlu0 %2771  ;;  %v2810_v54 = vpop.permute.xlu1 %2809 }
 0x5b6   : > { %v2622_v25 = vpop.f32.mrf.mxu0  ;;  %v2635_v15 = vmul.f32 0.70710677, %v2627_v40  ;;  %v8410_v46 = vsub.s32 %v2716_v47, %v8077_v10 }
 0x5b7   : > { %v2632_v56 = vadd.f32 %v2621_v51, %v8275_v53  ;;  %v2623_v60 = vadd.f32 %v2622_v25, %v2556_v33  ;;  %v2639_v5 = vmul.f32 0.70710677, %v2631_v58  ;;  %v2646_v13 = vmax.f32 %v2638_v1, 0.0 }
 0x5b8   : > { %v2624_v34 = vpop.f32.mrf.mxu0  ;;  %v2645_v17 = vmax.f32 %v2637_v44, 0.0  ;;  %v2643_v19 = vmax.f32 %v2635_v15, 0.0 }
 0x5b9   : > { %v2625_v62 = vadd.f32 %v2624_v34, %v2556_v33  ;;  %v2633_v0 = vadd.f32 %v2623_v60, %v8278_v55  ;;  %v2640_v3 = vmul.f32 0.70710677, %v2632_v56  ;;  %v2647_v49 = vmax.f32 %v2639_v5, 0.0  ;;  %v2815_v56 = vpop.permute.xlu0 %2814  ;;  %v7378_v34 = vld [vmem:[%s8080_s10] sm:$0x3]  ;;  %v2757_v63 = vpop.permute.xlu1 %2756  ;;  %s9763_s10 = sld [smem:[#allocation21_spill]] }
 0x5ba   : > { %v2651_v20 = vpack.c.bf16 %v2645_v17, %v2643_v19 }
 0x5bb   : > { %v2634_v4 = vadd.f32 %v2625_v62, %v8287_v61  ;;  %v2641_v53 = vmul.f32 0.70710677, %v2633_v0  ;;  %v2648_v28 = vmax.f32 %v2640_v3, 0.0  ;;  %v2652_v61 = vpack.c.bf16 %v2646_v13, %v2644_v16 }
 0x5bd   : > { %v2642_v7 = vmul.f32 0.70710677, %v2634_v4  ;;  %v2649_v8 = vmax.f32 %v2641_v53, 0.0  ;;  %v2762_v10 = vpop.permute.xlu0 %2761  ;;  %v2800_v13 = vpop.permute.xlu1 %2799 }
 0x5bf   : > { %v2650_v14 = vmax.f32 %v2642_v7, 0.0  ;;  %v2653_v18 = vpack.c.bf16 %v2649_v8, %v2647_v49 }
 0x5c1   : > { %v2654_v55 = vpack.c.bf16 %v2650_v14, %v2648_v28  ;;  %v2805_v28 = vpop.permute.xlu0 %2804 }
 0x5c3   : > { %2678 = vmatprep.subr.bf16.mxu1 %v2654_v55 }
 0x5c4   : > { %2679 = vmatpush1.bf16.msra.mxu1 %v2653_v18 }
 0x5c5   : > { %2680 = vmatprep.subr.bf16.mxu1 %v2652_v61 }
 0x5c8   : > { %2681 = vmatpush1.bf16.msra.mxu1 %v2651_v20 }
 0x5cb   : > { %6731 = vmatmul.mubr.msk.bf16.vlgmr.msra.gmra.mxu1 %vm2662_vm5, %v2655_v21 }
 0x5cc   : > { %3192 = vmatprep.mubr.bf16.mxu1 %v7689_v2 }
 0x68b   : > { %v2700_v27 = vpop.f32.mrf.mxu1 }
 0x68c   : > { %v2701_v29 = vadd.f32 %v2700_v27, %v2660_v22 }
 0x68d   : > { %v2702_v31 = vpop.f32.mrf.mxu1 }
 0x68e   : > { %v2707_v32 = vmul.f32 1.442695, %v2701_v29  ;;  %v8404_v33 = vadd.f32 %v2702_v31, %v2660_v22 }
 0x68f   : > { %v2704_v36 = vpop.f32.mrf.mxu1 }
 0x690   : > { %v2709_v37 = vmul.f32 1.442695, %v8404_v33  ;;  %7236 = vpow2.f32 %v2707_v32  ;;  %v2733_v52 = vcombine.low %v2701_v29, %v8404_v33 }
 0x691   : > { %v2705_v50 = vpop.f32.mrf.mxu1 }
 0x692   : > { %7238 = vpow2.f32 %v2709_v37  ;;  %v2740_v58 = vrot.slane %v2733_v52, %v8410_v46  ;;  %v2938_v52 = vld [vmem:[%s9762_s2 + $0x8] sm:$0xff] }
 0x694   : > { %v2747_v62 = vrot.slane %v2740_v58, %v8410_v46  ;;  %v3120_v58 = vld [vmem:[%s9763_s10] sm:$0xff] }
 0x69d   : > { %v7237_v41 = vpop.eup %7236 }
 0x69f   : > { %v8407_v48 = vpop.eup %7238 }
 0x6a0   : > { %v2713_v51 = vcombine.low %v7237_v41, %v8407_v48 }
 0x6a2   : > { %v2720_v25 = vrot.slane %v2713_v51, %v8410_v46  ;;  %v2939_v51 = vld [vmem:[%s9762_s2 + $0x10] sm:$0xff] }
 0x6a4   : > { %v2721_v26 = vcombine.high %v2720_v25, %v2720_v25  ;;  %v2937_v25 = vld [vmem:[%s9762_s2] sm:$0xff] }
 0x6a6   : > { %v2728_v60 = vrot.slane %v2721_v26, %v8410_v46  ;;  %v3121_v26 = vld [vmem:[%s9763_s10 + $0x8] sm:$0xff] }
 0x6a8   : > { %v2730_v35 = vmul.f32 %v7378_v34, %v2728_v60 }
 0x6aa   : > { %v8419_v0 = vadd.f32 %v2747_v62, %v2730_v35 }
 0x6ac   : > { %v2778_v1 = vrot.slane %v8419_v0, %v8083_v11  ;;  %v2782_v3 = vrot.slane %v8419_v0, %v8086_v12 }
 0x6ae   : > { %v2791_v4 = vmul.f32 %v2778_v1, %v2772_v43  ;;  %v2792_v40 = vmul.f32 %v2782_v3, %v2772_v43  ;;  %v2789_v5 = vmul.f32 %v2778_v1, %v2767_v42  ;;  %v2790_v53 = vmul.f32 %v2782_v3, %v2767_v42  ;;  %v2940_v43 = vld [vmem:[%s9762_s2 + $0x18] sm:$0xff]  ;;  %s9777_s2 = sld [smem:[#allocation33_spill]] }
 0x6af   : > { %v2787_v6 = vmul.f32 %v2778_v1, %v2762_v10  ;;  %v2788_v7 = vmul.f32 %v2782_v3, %v2762_v10  ;;  %v2785_v44 = vmul.f32 %v2778_v1, %v2757_v63  ;;  %v2786_v8 = vmul.f32 %v2782_v3, %v2757_v63 }
 0x6b0   : > { %v8425_v14 = vadd.f32 %v2815_v56, %v2791_v4  ;;  %v8427_v15 = vadd.f32 %v2815_v56, %v2792_v40  ;;  %v8429_v49 = vadd.f32 %v2810_v54, %v2789_v5  ;;  %v8431_v16 = vadd.f32 %v2810_v54, %v2790_v53  ;;  %v3123_v54 = vld [vmem:[%s9763_s10 + $0x18] sm:$0xff]  ;;  %v3122_v56 = vld [vmem:[%s9763_s10 + $0x10] sm:$0xff] }
 0x6b1   : > { %v8433_v55 = vadd.f32 %v2805_v28, %v2787_v6  ;;  %v8435_v17 = vadd.f32 %v2805_v28, %v2788_v7  ;;  %v8437_v18 = vadd.f32 %v2800_v13, %v2785_v44  ;;  %v8439_v61 = vadd.f32 %v2800_v13, %v2786_v8 }
 0x6b2   : > { %v2831_v19 = vsel %vm8091_vm1, %v8425_v14, 0.0  ;;  %v2832_v20 = vsel %vm8095_vm2, %v8427_v15, 0.0  ;;  %v2829_v21 = vsel %vm8091_vm1, %v8429_v49, 0.0  ;;  %v2830_v22 = vsel %vm8095_vm2, %v8431_v16, 0.0 }
 0x6b3   : > { %v6942_v27 = vpack.c.bf16 %v2832_v20, %v2831_v19  ;;  %v6941_v29 = vpack.c.bf16 %v2830_v22, %v2829_v21  ;;  %v2827_v31 = vsel %vm8091_vm1, %v8433_v55, 0.0  ;;  %v2828_v32 = vsel %vm8095_vm2, %v8435_v17, 0.0 }
 0x6b4   : > { %v6940_v36 = vpack.c.bf16 %v2828_v32, %v2827_v31  ;;  %v2825_v37 = vsel %vm8091_vm1, %v8437_v18, 0.0  ;;  %v2826_v50 = vsel %vm8095_vm2, %v8439_v61, 0.0  ;;  %v7414_v39 = vpack.c.bf16 %v8427_v15, %v8431_v16 }
 0x6b5   : > { %2895 = vrot.lane.b32.xlu0 %v6942_v27, %s9640_s9  ;;  %2893 = vrot.lane.b32.xlu1 %v6941_v29, %s9640_s9  ;;  %v6939_v38 = vpack.c.bf16 %v2826_v50, %v2825_v37  ;;  %v7417_v47 = vpack.c.bf16 %v8425_v14, %v8429_v49  ;;  %v7421_v41 = vpack.c.bf16 %v8435_v17, %v8439_v61 }
 0x6b6   : > { %7415 = vmatprep.subr.msk.bf16.mxu0 %vm8144_vm3, %v7414_v39  ;;  %v7425_v42 = vpack.c.bf16 %v8433_v55, %v8437_v18 }
 0x6b7   : > { %7418 = vmatpush1.bf16.msk.msra.mxu0 %vm8155_vm4, %v7417_v47 }
 0x6b8   : > { %7422 = vmatprep.subr.msk.bf16.mxu0 %vm8144_vm3, %v7421_v41 }
 0x6b9   : > { %2891 = vrot.lane.b32.xlu0 %v6940_v36, %s9640_s9  ;;  %2889 = vrot.lane.b32.xlu1 %v6939_v38, %s9640_s9  ;;  %s9770_s9 = sld [smem:[#allocation29_spill]] }
 0x6bb   : > { %7426 = vmatpush1.bf16.msk.msra.mxu0 %vm8155_vm4, %v7425_v42 }
 0x6bd   : > { %2871 = vrot.lane.b32.xlu0 %v6942_v27, %s9638_s13  ;;  %2869 = vrot.lane.b32.xlu1 %v6941_v29, %s9638_s13 }
 0x6c1   : > { %2867 = vrot.lane.b32.xlu0 %v6940_v36, %s9638_s13  ;;  %2865 = vrot.lane.b32.xlu1 %v6939_v38, %s9638_s13 }
 0x6c5   : > { %2958 = vperm.xlu0 %7078, %v2940_v43   ;;  %2953 = vperm.xlu1 %7079, %v2939_v51  }
 0x6c9   : > { %2948 = vperm.xlu0 %7078, %v2938_v52   ;;  %2943 = vperm.xlu1 %7079, %v2937_v25  }
 0x6cd   : > { %3141 = vperm.xlu0 %7078, %v3123_v54   ;;  %3136 = vperm.xlu1 %7079, %v3122_v56  }
 0x6d1   : > { %3131 = vperm.xlu0 %7078, %v3121_v26   ;;  %3126 = vperm.xlu1 %7079, %v3120_v58   ;;  %v7112_v26 = vld [vmem:[%s9764_s11] sm:$0xff]   ;;  %v7113_v58 = vld [vmem:[%s9764_s11 + $0x8] sm:$0xff]  }
 0x727   : > { %v2896_v60 = vpop.permute.xlu0 %2895  ;;  %v2894_v34 = vpop.permute.xlu1 %2893 }
 0x728   : > { %v2900_v35 = vrot.slane %v2896_v60, 4  ;;  %v2899_v62 = vrot.slane %v2894_v34, 4 }
 0x72a   : > { %v2904_v63 = vsel %vm1903_vm7, %v2900_v35, %v2896_v60  ;;  %v2903_v10 = vsel %vm1903_vm7, %v2899_v62, %v2894_v34 }
 0x72b   : > { %2912 = vst.msk [vmem:[#allocation2 + $0x38] sm:$0xff] %vm8186_vm8, %v2904_v63  ;;  %2911 = vst.msk [vmem:[#allocation2 + $0x30] sm:$0xff] %vm8186_vm8, %v2903_v10  ;;  %v2892_v1 = vpop.permute.xlu0 %2891  ;;  %v2890_v3 = vpop.permute.xlu1 %2889 }
 0x72c   : > { %v2898_v4 = vrot.slane %v2892_v1, 4  ;;  %v2897_v40 = vrot.slane %v2890_v3, 4 }
 0x72e   : > { %v2902_v5 = vsel %vm1903_vm7, %v2898_v4, %v2892_v1  ;;  %v2901_v53 = vsel %vm1903_vm7, %v2897_v40, %v2890_v3 }
 0x72f   : > { %2910 = vst.msk [vmem:[#allocation2 + $0x28] sm:$0xff] %vm8186_vm8, %v2902_v5  ;;  %2909 = vst.msk [vmem:[#allocation2 + $0x20] sm:$0xff] %vm8186_vm8, %v2901_v53  ;;  %v2872_v6 = vpop.permute.xlu0 %2871  ;;  %v2870_v7 = vpop.permute.xlu1 %2869 }
 0x730   : > { %v2876_v44 = vrot.slane %v2872_v6, 4  ;;  %v2875_v8 = vrot.slane %v2870_v7, 4 }
 0x732   : > { %v2880_v13 = vsel %vm1875_vm10, %v2876_v44, %v2872_v6  ;;  %v2879_v28 = vsel %vm1875_vm10, %v2875_v8, %v2870_v7  ;;  %v2931_v19 = vld [vmem:[#allocation2 + $0x30] sm:$0xff]  ;;  %v2932_v20 = vld [vmem:[#allocation2 + $0x38] sm:$0xff] }
 0x733   : > { %v7104_v21 = vld [vmem:[#allocation2 + $0x34] ss:$8 sps:$4 sm:$0xff]   ;;  %2888 = vst.msk [vmem:[#allocation2 + $0x18] sm:$0xff] %vm8203_vm11, %v2880_v13  ;;  %2887 = vst.msk [vmem:[#allocation2 + $0x10] sm:$0xff] %vm8203_vm11, %v2879_v28  ;;  %v2868_v22 = vpop.permute.xlu0 %2867  ;;  %v2866_v27 = vpop.permute.xlu1 %2865  ;;  %v6744_v29 = vcombine.low %v2931_v19, %v2932_v20 }
 0x734   : > { %3247 = vst.msk [vmem:[#allocation2 + $0x30] sm:$0xf] %vm1834_vm0, %v7689_v2  ;;  %3248 = vst.msk [vmem:[#allocation2 + $0x38] sm:$0xf] %vm1834_vm0, %v7689_v2  ;;  %v2874_v31 = vrot.slane %v2868_v22, 4  ;;  %v2873_v32 = vrot.slane %v2866_v27, 4  ;;  %3045 = vmatprep.subr.bf16.mxu0 %v7104_v21 }
 0x735   : > { %3046 = vmatpush1.bf16.msra.mxu0 %v6744_v29 }
 0x736   : > { %v2878_v36 = vsel %vm1875_vm10, %v2874_v31, %v2868_v22  ;;  %v2877_v37 = vsel %vm1875_vm10, %v2873_v32, %v2866_v27  ;;  %v2929_v50 = vld [vmem:[#allocation2 + $0x20] sm:$0xff]  ;;  %v2930_v38 = vld [vmem:[#allocation2 + $0x28] sm:$0xff] }
 0x737   : > { %v7106_v39 = vld [vmem:[#allocation2 + $0x24] ss:$8 sps:$4 sm:$0xff]   ;;  %2886 = vst.msk [vmem:[#allocation2 + $0x8] sm:$0xff] %vm8203_vm11, %v2878_v36  ;;  %2885 = vst.msk [vmem:[#allocation2] sm:$0xff] %vm8203_vm11, %v2877_v37  ;;  %v6742_v47 = vcombine.low %v2929_v50, %v2930_v38 }
 0x738   : > { %3245 = vst.msk [vmem:[#allocation2 + $0x20] sm:$0xf] %vm1834_vm0, %v7689_v2  ;;  %3246 = vst.msk [vmem:[#allocation2 + $0x28] sm:$0xf] %vm1834_vm0, %v7689_v2  ;;  %3047 = vmatprep.subr.bf16.mxu0 %v7106_v39 }
 0x739   : > { %3048 = vmatpush1.bf16.msra.mxu0 %v6742_v47 }
 0x73a   : > { %v2927_v41 = vld [vmem:[#allocation2 + $0x10] sm:$0xff]  ;;  %v2928_v42 = vld [vmem:[#allocation2 + $0x18] sm:$0xff] }
 0x73b   : > { %v7108_v43 = vld [vmem:[#allocation2 + $0x14] ss:$8 sps:$4 sm:$0xff]   ;;  %3243 = vst.msk [vmem:[#allocation2 + $0x10] sm:$0xf] %vm1834_vm0, %v7689_v2  ;;  %3244 = vst.msk [vmem:[#allocation2 + $0x18] sm:$0xf] %vm1834_vm0, %v7689_v2  ;;  %v6740_v51 = vcombine.low %v2927_v41, %v2928_v42 }
 0x73c   : > { %3049 = vmatprep.subr.bf16.mxu0 %v7108_v43 }
 0x73d   : > { %3050 = vmatpush1.bf16.msra.mxu0 %v6740_v51 }
 0x73e   : > { %v2925_v52 = vld [vmem:[#allocation2] sm:$0xff]  ;;  %v2926_v25 = vld [vmem:[#allocation2 + $0x8] sm:$0xff] }
 0x73f   : > { %v7110_v54 = vld [vmem:[#allocation2 + $0x4] ss:$8 sps:$4 sm:$0xff]   ;;  %3241 = vst.msk [vmem:[#allocation2] sm:$0xf] %vm1834_vm0, %v7689_v2  ;;  %3242 = vst.msk [vmem:[#allocation2 + $0x8] sm:$0xf] %vm1834_vm0, %v7689_v2  ;;  %v6738_v56 = vcombine.low %v2925_v52, %v2926_v25 }
 0x740   : > { %3051 = vmatprep.subr.bf16.mxu0 %v7110_v54  ;;  %v2954_v63 = vpop.permute.xlu1 %2953  ;;  %v2959_v4 = vpop.permute.xlu0 %2958 }
 0x741   : > { %3052 = vmatpush1.bf16.msra.mxu0 %v6738_v56 }
 0x744   : > { %6750 = vmatmul.mubr.msk.bf16.vlgmr.msra.gmra.mxu0 %vm2036_vm12, %v7112_v26  ;;  %v2944_v28 = vpop.permute.xlu1 %2943  ;;  %v2949_v19 = vpop.permute.xlu0 %2948 }
 0x745   : > { %3079 = vmatprep.mubr.bf16.mxu0 %v7689_v2 }
 0x74c   : > { %6751 = vmatmul.mubr.msk.bf16.gmra.mxu0 %vm2036_vm12, %v7113_v58 }
 0x74d   : > { %3596 = vmatprep.mubr.bf16.mxu0 %v7689_v2 }
 0x804   : > { %v3071_v60 = vpop.f32.mrf.mxu0 }
 0x805   : > { %v3072_v29 = vadd.f32 %v3071_v60, %v2944_v28 }
 0x806   : > { %v3073_v34 = vpop.f32.mrf.mxu0 }
 0x807   : > { %v3074_v20 = vadd.f32 %v3073_v34, %v2944_v28 }
 0x808   : > { %v3075_v35 = vpop.f32.mrf.mxu0 }
 0x809   : > { %v3076_v22 = vadd.f32 %v3075_v35, %v2949_v19 }
 0x80a   : > { %v3077_v62 = vpop.f32.mrf.mxu0 }
 0x80b   : > { %v3078_v27 = vadd.f32 %v3077_v62, %v2949_v19 }
 0x80c   : > { %v3081_v10 = vpop.f32.mrf.mxu0 }
 0x80d   : > { %v3082_v1 = vadd.f32 %v3081_v10, %v2954_v63  ;;  %v7115_v10 = vld [vmem:[%s9765_s23 + $0x8] sm:$0xff]  }
 0x80e   : > { %v3083_v3 = vpop.f32.mrf.mxu0 }
 0x80f   : > { %v3094_v40 = vmul.f32 0.5, %v3082_v1  ;;  %v3084_v5 = vadd.f32 %v3083_v3, %v2954_v63  ;;  %v7114_v63 = vld [vmem:[%s9765_s23] sm:$0xff]   ;;  %v3137_v1 = vpop.permute.xlu1 %3136  ;;  %v3142_v3 = vpop.permute.xlu0 %3141 }
 0x810   : > { %v3085_v53 = vpop.f32.mrf.mxu0 }
 0x811   : > { %v3095_v6 = vmul.f32 0.5, %v3084_v5  ;;  %v3086_v7 = vadd.f32 %v3085_v53, %v2959_v4  ;;  %7240 = vtanh.f32 %v3094_v40 }
 0x812   : > { %v3087_v44 = vpop.f32.mrf.mxu0 }
 0x813   : > { %7242 = vtanh.f32 %v3095_v6  ;;  %v3096_v8 = vmul.f32 0.5, %v3086_v7  ;;  %v3088_v13 = vadd.f32 %v3087_v44, %v2959_v4  ;;  %v3127_v4 = vpop.permute.xlu1 %3126  ;;  %v3132_v44 = vpop.permute.xlu0 %3131 }
 0x815   : > { %7244 = vtanh.f32 %v3096_v8  ;;  %v3097_v21 = vmul.f32 0.5, %v3088_v13 }
 0x817   : > { %7246 = vtanh.f32 %v3097_v21 }
 0x818   : > { %7248 = vtanh.f32 %v3074_v20 }
 0x819   : > { %7250 = vtanh.f32 %v3076_v22 }
 0x81a   : > { %7252 = vtanh.f32 %v3078_v27 }
 0x81b   : > { %7254 = vtanh.f32 %v3072_v29 }
 0x81e   : > { %v7241_v31 = vpop.eup %7240 }
 0x81f   : > { %v3102_v50 = vmul.f32 0.5, %v7241_v31 }
 0x820   : > { %v7243_v32 = vpop.eup %7242 }
 0x821   : > { %v3103_v36 = vmul.f32 0.5, %v7243_v32  ;;  %v3106_v51 = vadd.f32 0.5, %v3102_v50 }
 0x822   : > { %v7245_v37 = vpop.eup %7244 }
 0x823   : > { %v3104_v38 = vmul.f32 0.5, %v7245_v37  ;;  %v3107_v47 = vadd.f32 0.5, %v3103_v36 }
 0x824   : > { %v7247_v39 = vpop.eup %7246 }
 0x825   : > { %v3108_v41 = vadd.f32 0.5, %v3104_v38  ;;  %v3105_v42 = vmul.f32 0.5, %v7247_v39  ;;  %v7249_v43 = vpop.eup %7248 }
 0x826   : > { %v7251_v52 = vpop.eup %7250  ;;  %v3111_v58 = vmul.f32 %v7249_v43, %v3107_v47 }
 0x827   : > { %v3109_v25 = vadd.f32 0.5, %v3105_v42  ;;  %v7253_v54 = vpop.eup %7252  ;;  %v3112_v56 = vmul.f32 %v7251_v52, %v3108_v41 }
 0x828   : > { %v7255_v26 = vpop.eup %7254 }
 0x829   : > { %v3113_v60 = vmul.f32 %v7253_v54, %v3109_v25  ;;  %v3110_v34 = vmul.f32 %v7255_v26, %v3106_v51 }
 0x82b   : > { %v3115_v35 = vpack.c.bf16 %v3113_v60, %v3111_v58  ;;  %v3114_v62 = vpack.c.bf16 %v3112_v56, %v3110_v34 }
 0x82d   : > { %3174 = vmatprep.subr.bf16.mxu1 %v3115_v35 }
 0x82e   : > { %3175 = vmatpush1.bf16.msra.mxu1 %v3114_v62 }
 0x831   : > { %6754 = vmatmul.mubr.msk.bf16.vlgmr.msra.gmra.mxu1 %vm2160_vm13, %v7114_v63 }
 0x832   : > { %3202 = vmatprep.mubr.bf16.mxu1 %v7689_v2 }
 0x839   : > { %6755 = vmatmul.mubr.msk.bf16.gmra.mxu1 %vm2160_vm13, %v7115_v10 }
 0x83a   : > { %3473 = vmatprep.mubr.bf16.mxu1 %v7689_v2 }
 0x8f1   : > { %v3194_v40 = vpop.f32.mrf.mxu1 }
 0x8f2   : > { %v3195_v5 = vadd.f32 %v3194_v40, %v3127_v4  ;;  %v3344_v40 = vld [vmem:[%s9766_s28 + $0x18] sm:$0xff] }
 0x8f3   : > { %v3196_v53 = vpop.f32.mrf.mxu1 }
 0x8f4   : > { %v3213_v6 = vadd.f32 %v3195_v5, %v8437_v18  ;;  %v3197_v7 = vadd.f32 %v3196_v53, %v3127_v4  ;;  %v3343_v4 = vld [vmem:[%s9766_s28 + $0x10] sm:$0xff]  ;;  %v3341_v5 = vld [vmem:[%s9766_s28] sm:$0xff]  ;;  %v3342_v53 = vld [vmem:[%s9766_s28 + $0x8] sm:$0xff] }
 0x8f5   : > { %v3198_v8 = vpop.f32.mrf.mxu1 }
 0x8f6   : > { %v8550_v13 = vmul.f32 0.70710677, %v3213_v6  ;;  %v3214_v28 = vadd.f32 %v3197_v7, %v8439_v61  ;;  %v3199_v19 = vadd.f32 %v3198_v8, %v3132_v44  ;;  %v3526_v6 = vld [vmem:[%s9767_s1 + $0x10] sm:$0xff]  ;;  %v3527_v7 = vld [vmem:[%s9767_s1 + $0x18] sm:$0xff]  ;;  %v3525_v8 = vld [vmem:[%s9767_s1 + $0x8] sm:$0xff] }
 0x8f7   : > { %v3200_v20 = vpop.f32.mrf.mxu1 }
 0x8f8   : > { %v8553_v21 = vmul.f32 0.70710677, %v3214_v28  ;;  %v3215_v22 = vadd.f32 %v3199_v19, %v8433_v55  ;;  %v3201_v27 = vadd.f32 %v3200_v20, %v3132_v44  ;;  %v3229_v31 = vsel %vm8091_vm1, %v8550_v13, 0.0  ;;  %v3524_v44 = vld [vmem:[%s9767_s1] sm:$0xff] }
 0x8f9   : > { %v3204_v29 = vpop.f32.mrf.mxu1  ;;  %v3646_v28 = vld [vmem:[%s9768_s26] sm:$0xff]  ;;  %s9771_s26 = sld [smem:[#allocation22_spill]] }
 0x8fa   : > { %v8559_v18 = vmul.f32 0.70710677, %v3215_v22  ;;  %v3216_v32 = vadd.f32 %v3201_v27, %v8435_v17  ;;  %v3205_v36 = vadd.f32 %v3204_v29, %v3137_v1  ;;  %v3230_v61 = vsel %vm8095_vm2, %v8553_v21, 0.0  ;;  %v3784_v22 = vld [vmem:[%s9770_s9 + $0x10] sm:$0xff]  ;;  %v3785_v27 = vld [vmem:[%s9770_s9 + $0x18] sm:$0xff] }
 0x8fb   : > { %v3206_v37 = vpop.f32.mrf.mxu1  ;;  %v6943_v50 = vpack.c.bf16 %v3230_v61, %v3229_v31 }
 0x8fc   : > { %v8565_v38 = vmul.f32 0.70710677, %v3216_v32  ;;  %v3217_v55 = vadd.f32 %v3205_v36, %v8429_v49  ;;  %v3207_v39 = vadd.f32 %v3206_v37, %v3137_v1  ;;  %v3231_v41 = vsel %vm8091_vm1, %v8559_v18, 0.0  ;;  %v3782_v32 = vld [vmem:[%s9770_s9] sm:$0xff]  ;;  %v3783_v36 = vld [vmem:[%s9770_s9 + $0x8] sm:$0xff]  ;;  %s9786_s9 = sld [smem:[#allocation41_spill]] }
 0x8fd   : > { %v3208_v47 = vpop.f32.mrf.mxu1 }
 0x8fe   : > { %v8571_v42 = vmul.f32 0.70710677, %v3217_v55  ;;  %v3218_v17 = vadd.f32 %v3207_v39, %v8431_v16  ;;  %v3209_v43 = vadd.f32 %v3208_v47, %v3142_v3  ;;  %v3232_v51 = vsel %vm8095_vm2, %v8565_v38, 0.0 }
 0x8ff   : > { %v3210_v52 = vpop.f32.mrf.mxu1  ;;  %v6944_v25 = vpack.c.bf16 %v3232_v51, %v3231_v41  ;;  %v7437_v1 = vpack.c.bf16 %v8565_v38, %v8553_v21 }
 0x900   : > { %v8577_v54 = vmul.f32 0.70710677, %v3218_v17  ;;  %v3219_v49 = vadd.f32 %v3209_v43, %v8425_v14  ;;  %v3211_v56 = vadd.f32 %v3210_v52, %v3142_v3  ;;  %v3233_v16 = vsel %vm8091_vm1, %v8571_v42, 0.0 }
 0x901   : > { %v7441_v3 = vpack.c.bf16 %v8559_v18, %v8550_v13 }
 0x902   : > { %v8580_v26 = vmul.f32 0.70710677, %v3219_v49  ;;  %v3220_v58 = vadd.f32 %v3211_v56, %v8427_v15  ;;  %v3234_v60 = vsel %vm8095_vm2, %v8577_v54, 0.0 }
 0x903   : > { %v6945_v34 = vpack.c.bf16 %v3234_v60, %v3233_v16 }
 0x904   : > { %v8589_v35 = vmul.f32 0.70710677, %v3220_v58  ;;  %v3235_v14 = vsel %vm8091_vm1, %v8580_v26, 0.0  ;;  %v7433_v10 = vpack.c.bf16 %v8580_v26, %v8571_v42 }
 0x905   : > { %3297 = vrot.lane.b32.xlu1 %v6945_v34, %s9638_s13 }
 0x906   : > { %v3236_v15 = vsel %vm8095_vm2, %v8589_v35, 0.0  ;;  %v7430_v63 = vpack.c.bf16 %v8589_v35, %v8577_v54 }
 0x907   : > { %v6946_v62 = vpack.c.bf16 %v3236_v15, %v3235_v14 }
 0x908   : > { %7431 = vmatprep.subr.msk.bf16.mxu1 %vm8144_vm3, %v7430_v63 }
 0x909   : > { %3299 = vrot.lane.b32.xlu0 %v6946_v62, %s9638_s13  ;;  %3293 = vrot.lane.b32.xlu1 %v6943_v50, %s9638_s13 }
 0x90a   : > { %7434 = vmatpush1.bf16.msk.msra.mxu1 %vm8155_vm4, %v7433_v10 }
 0x90b   : > { %7438 = vmatprep.subr.msk.bf16.mxu1 %vm8144_vm3, %v7437_v1 }
 0x90d   : > { %3295 = vrot.lane.b32.xlu0 %v6944_v25, %s9638_s13  ;;  %3273 = vrot.lane.b32.xlu1 %v6945_v34, %s9642_s18  ;;  %s9769_s13 = sld [smem:[#allocation28_spill]] }
 0x90e   : > { %7442 = vmatpush1.bf16.msk.msra.mxu1 %vm8155_vm4, %v7441_v3 }
 0x911   : > { %3275 = vrot.lane.b32.xlu0 %v6946_v62, %s9642_s18  ;;  %3269 = vrot.lane.b32.xlu1 %v6943_v50, %s9642_s18 }
 0x913   : > { %v3741_v19 = vld [vmem:[%s9769_s13 + $0x10] sm:$0xff]  ;;  %v3742_v20 = vld [vmem:[%s9769_s13 + $0x18] sm:$0xff]  ;;  %v3739_v29 = vld [vmem:[%s9769_s13] sm:$0xff] }
 0x914   : > { %v3740_v31 = vld [vmem:[%s9769_s13 + $0x8] sm:$0xff] }
 0x915   : > { %3271 = vrot.lane.b32.xlu0 %v6944_v25, %s9642_s18  ;;  %3357 = vperm.xlu1 %7079, %v3343_v4   ;;  %s9772_s18 = sld [smem:[#allocation24_spill]] }
 0x919   : > { %3362 = vperm.xlu0 %7078, %v3344_v40   ;;  %3347 = vperm.xlu1 %7079, %v3341_v5  }
 0x91b   : > { %s9773_s1 = smov %s9772_s18 }
 0x91d   : > { %3352 = vperm.xlu0 %7078, %v3342_v53   ;;  %3540 = vperm.xlu1 %7079, %v3526_v6  }
 0x921   : > { %3545 = vperm.xlu0 %7078, %v3527_v7   ;;  %3530 = vperm.xlu1 %7079, %v3524_v44  }
 0x925   : > { %3535 = vperm.xlu0 %7078, %v3525_v8   ;;  %3649 = vperm.xlu1 %7079, %v3646_v28  }
 0x929   : > { %3755 = vperm.xlu0 %7078, %v3741_v19   ;;  %3760 = vperm.xlu1 %7079, %v3742_v20  }
 0x92d   : > { %3798 = vperm.xlu0 %7078, %v3784_v22   ;;  %3803 = vperm.xlu1 %7079, %v3785_v27  }
 0x931   : > { %3745 = vperm.xlu0 %7078, %v3739_v29   ;;  %3750 = vperm.xlu1 %7079, %v3740_v31  }
 0x935   : > { %3788 = vperm.xlu0 %7078, %v3782_v32   ;;  %3793 = vperm.xlu1 %7079, %v3783_v36   ;;  %v7124_v32 = vld [vmem:[%s9771_s26] sm:$0xff]   ;;  %v7125_v36 = vld [vmem:[%s9771_s26 + $0x8] sm:$0xff]  }
 0x977   : > { %v3298_v61 = vpop.permute.xlu1 %3297 }
 0x978   : > { %v3303_v37 = vrot.slane %v3298_v61, 4 }
 0x97a   : > { %v3307_v50 = vsel %vm1875_vm10, %v3303_v37, %v3298_v61 }
 0x97b   : > { %3315 = vst.msk [vmem:[#allocation2 + $0x30] sm:$0xff] %vm8203_vm11, %v3307_v50  ;;  %v3300_v55 = vpop.permute.xlu0 %3299  ;;  %v3294_v39 = vpop.permute.xlu1 %3293 }
 0x97c   : > { %v3304_v47 = vrot.slane %v3300_v55, 4  ;;  %v3301_v41 = vrot.slane %v3294_v39, 4 }
 0x97e   : > { %v3308_v17 = vsel %vm1875_vm10, %v3304_v47, %v3300_v55  ;;  %v3305_v43 = vsel %vm1875_vm10, %v3301_v41, %v3294_v39 }
 0x97f   : > { %3316 = vst.msk [vmem:[#allocation2 + $0x38] sm:$0xff] %vm8203_vm11, %v3308_v17  ;;  %3313 = vst.msk [vmem:[#allocation2 + $0x20] sm:$0xff] %vm8203_vm11, %v3305_v43  ;;  %v3296_v51 = vpop.permute.xlu0 %3295  ;;  %v3274_v52 = vpop.permute.xlu1 %3273 }
 0x980   : > { %v3302_v25 = vrot.slane %v3296_v51, 4  ;;  %v3279_v49 = vrot.slane %v3274_v52, 4 }
 0x982   : > { %v3306_v56 = vsel %vm1875_vm10, %v3302_v25, %v3296_v51  ;;  %v3283_v58 = vsel %vm2288_vm15, %v3279_v49, %v3274_v52  ;;  %v3335_v63 = vld [vmem:[#allocation2 + $0x30] sm:$0xff] }
 0x983   : > { %3314 = vst.msk [vmem:[#allocation2 + $0x28] sm:$0xff] %vm8203_vm11, %v3306_v56  ;;  %v3276_v16 = vpop.permute.xlu0 %3275  ;;  %v3270_v60 = vpop.permute.xlu1 %3269 }
 0x984   : > { %3291 = vst.msk [vmem:[#allocation2 + $0x10] sm:$0xff] %vm8346_vm6, %v3283_v58  ;;  %v3280_v34 = vrot.slane %v3276_v16, 4  ;;  %v3277_v14 = vrot.slane %v3270_v60, 4 }
 0x985   : > { %3832 = vst.msk [vmem:[#allocation2 + $0x30] sm:$0xf] %vm1834_vm0, %v7689_v2 }
 0x986   : > { %v3284_v15 = vsel %vm2288_vm15, %v3280_v34, %v3276_v16  ;;  %v3281_v62 = vsel %vm2288_vm15, %v3277_v14, %v3270_v60  ;;  %v3336_v10 = vld [vmem:[#allocation2 + $0x38] sm:$0xff]  ;;  %v3333_v53 = vld [vmem:[#allocation2 + $0x20] sm:$0xff] }
 0x987   : > { %v7116_v1 = vld [vmem:[#allocation2 + $0x34] ss:$8 sps:$4 sm:$0xff]   ;;  %3292 = vst.msk [vmem:[#allocation2 + $0x18] sm:$0xff] %vm8346_vm6, %v3284_v15  ;;  %3289 = vst.msk [vmem:[#allocation2] sm:$0xff] %vm8346_vm6, %v3281_v62  ;;  %v3272_v3 = vpop.permute.xlu0 %3271  ;;  %v6768_v4 = vcombine.low %v3335_v63, %v3336_v10 }
 0x988   : > { %3833 = vst.msk [vmem:[#allocation2 + $0x38] sm:$0xf] %vm1834_vm0, %v7689_v2  ;;  %v3278_v40 = vrot.slane %v3272_v3, 4  ;;  %3449 = vmatprep.subr.bf16.mxu1 %v7116_v1  ;;  %3830 = vst.msk [vmem:[#allocation2 + $0x20] sm:$0xf] %vm1834_vm0, %v7689_v2 }
 0x989   : > { %3450 = vmatpush1.bf16.msra.mxu1 %v6768_v4 }
 0x98a   : > { %v3282_v5 = vsel %vm2288_vm15, %v3278_v40, %v3272_v3  ;;  %v3334_v6 = vld [vmem:[#allocation2 + $0x28] sm:$0xff] }
 0x98b   : > { %v7118_v7 = vld [vmem:[#allocation2 + $0x24] ss:$8 sps:$4 sm:$0xff]   ;;  %3290 = vst.msk [vmem:[#allocation2 + $0x8] sm:$0xff] %vm8346_vm6, %v3282_v5  ;;  %v6766_v44 = vcombine.low %v3333_v53, %v3334_v6  ;;  %v3331_v8 = vld [vmem:[#allocation2 + $0x10] sm:$0xff] }
 0x98c   : > { %3831 = vst.msk [vmem:[#allocation2 + $0x28] sm:$0xf] %vm1834_vm0, %v7689_v2  ;;  %3451 = vmatprep.subr.bf16.mxu1 %v7118_v7  ;;  %3828 = vst.msk [vmem:[#allocation2 + $0x10] sm:$0xf] %vm1834_vm0, %v7689_v2 }
 0x98d   : > { %3452 = vmatpush1.bf16.msra.mxu1 %v6766_v44 }
 0x98e   : > { %v3332_v28 = vld [vmem:[#allocation2 + $0x18] sm:$0xff]  ;;  %v3329_v22 = vld [vmem:[#allocation2] sm:$0xff] }
 0x98f   : > { %v7120_v19 = vld [vmem:[#allocation2 + $0x14] ss:$8 sps:$4 sm:$0xff]   ;;  %3829 = vst.msk [vmem:[#allocation2 + $0x18] sm:$0xf] %vm1834_vm0, %v7689_v2  ;;  %v6764_v20 = vcombine.low %v3331_v8, %v3332_v28  ;;  %3826 = vst.msk [vmem:[#allocation2] sm:$0xf] %vm1834_vm0, %v7689_v2 }
 0x990   : > { %3453 = vmatprep.subr.bf16.mxu1 %v7120_v19  ;;  %v3358_v39 = vpop.permute.xlu1 %3357 }
 0x991   : > { %3454 = vmatpush1.bf16.msra.mxu1 %v6764_v20 }
 0x992   : > { %v3330_v27 = vld [vmem:[#allocation2 + $0x8] sm:$0xff] }
 0x993   : > { %v7122_v29 = vld [vmem:[#allocation2 + $0x4] ss:$8 sps:$4 sm:$0xff]   ;;  %3827 = vst.msk [vmem:[#allocation2 + $0x8] sm:$0xf] %vm1834_vm0, %v7689_v2  ;;  %v6762_v31 = vcombine.low %v3329_v22, %v3330_v27 }
 0x994   : > { %3455 = vmatprep.subr.bf16.mxu1 %v7122_v29  ;;  %v3363_v43 = vpop.permute.xlu0 %3362  ;;  %v3348_v34 = vpop.permute.xlu1 %3347 }
 0x995   : > { %3456 = vmatpush1.bf16.msra.mxu1 %v6762_v31 }
 0x998   : > { %6774 = vmatmul.mubr.msk.bf16.vlgmr.msra.gmra.mxu1 %vm2036_vm12, %v7124_v32  ;;  %v3353_v14 = vpop.permute.xlu0 %3352 }
 0x999   : > { %3483 = vmatprep.mubr.bf16.mxu1 %v7689_v2 }
 0x9a0   : > { %6775 = vmatmul.mubr.msk.bf16.gmra.mxu1 %vm2036_vm12, %v7125_v36 }
 0x9a1   : > { %3687 = vmatprep.mubr.bf16.mxu1 %v7689_v2 }
 0xa58   : > { %v3475_v61 = vpop.f32.mrf.mxu1 }
 0xa59   : > { %v3476_v1 = vadd.f32 %v3475_v61, %v3348_v34 }
 0xa5a   : > { %v3477_v37 = vpop.f32.mrf.mxu1 }
 0xa5b   : > { %v3478_v15 = vadd.f32 %v3477_v37, %v3348_v34 }
 0xa5c   : > { %v3479_v50 = vpop.f32.mrf.mxu1 }
 0xa5d   : > { %v3480_v63 = vadd.f32 %v3479_v50, %v3353_v14 }
 0xa5e   : > { %v3481_v55 = vpop.f32.mrf.mxu1 }
 0xa5f   : > { %v3482_v10 = vadd.f32 %v3481_v55, %v3353_v14 }
 0xa60   : > { %v3485_v47 = vpop.f32.mrf.mxu1 }
 0xa61   : > { %v3486_v41 = vadd.f32 %v3485_v47, %v3358_v39  ;;  %v7127_v47 = vld [vmem:[%s9773_s1 + $0x8] sm:$0xff]   ;;  %s9776_s1 = sld [smem:[#allocation31_spill]] }
 0xa62   : > { %v3487_v17 = vpop.f32.mrf.mxu1 }
 0xa63   : > { %v3498_v51 = vmul.f32 0.5, %v3486_v41  ;;  %v3488_v52 = vadd.f32 %v3487_v17, %v3358_v39  ;;  %v7126_v39 = vld [vmem:[%s9772_s18] sm:$0xff]   ;;  %v3546_v17 = vpop.permute.xlu0 %3545  ;;  %s9774_s18 = sld [smem:[#allocation26_spill]] }
 0xa64   : > { %v3489_v25 = vpop.f32.mrf.mxu1 }
 0xa65   : > { %v3499_v49 = vmul.f32 0.5, %v3488_v52  ;;  %v3490_v56 = vadd.f32 %v3489_v25, %v3363_v43  ;;  %7256 = vtanh.f32 %v3498_v51  ;;  %v3541_v51 = vpop.permute.xlu1 %3540 }
 0xa66   : > { %v3491_v58 = vpop.f32.mrf.mxu1 }
 0xa67   : > { %7258 = vtanh.f32 %v3499_v49  ;;  %v3500_v16 = vmul.f32 0.5, %v3490_v56  ;;  %v3492_v60 = vadd.f32 %v3491_v58, %v3363_v43  ;;  %v3536_v49 = vpop.permute.xlu0 %3535 }
 0xa69   : > { %7260 = vtanh.f32 %v3500_v16  ;;  %v3501_v62 = vmul.f32 0.5, %v3492_v60  ;;  %v3531_v16 = vpop.permute.xlu1 %3530 }
 0xa6b   : > { %7262 = vtanh.f32 %v3501_v62 }
 0xa6c   : > { %7264 = vtanh.f32 %v3478_v15 }
 0xa6d   : > { %7266 = vtanh.f32 %v3480_v63 }
 0xa6e   : > { %7268 = vtanh.f32 %v3482_v10 }
 0xa6f   : > { %7270 = vtanh.f32 %v3476_v1 }
 0xa72   : > { %v7257_v3 = vpop.eup %7256 }
 0xa73   : > { %v3506_v53 = vmul.f32 0.5, %v7257_v3 }
 0xa74   : > { %v7259_v4 = vpop.eup %7258 }
 0xa75   : > { %v3507_v40 = vmul.f32 0.5, %v7259_v4  ;;  %v3510_v20 = vadd.f32 0.5, %v3506_v53 }
 0xa76   : > { %v7261_v5 = vpop.eup %7260 }
 0xa77   : > { %v3508_v6 = vmul.f32 0.5, %v7261_v5  ;;  %v3511_v44 = vadd.f32 0.5, %v3507_v40 }
 0xa78   : > { %v7263_v7 = vpop.eup %7262 }
 0xa79   : > { %v3512_v8 = vadd.f32 0.5, %v3508_v6  ;;  %v3509_v28 = vmul.f32 0.5, %v7263_v7  ;;  %v7265_v19 = vpop.eup %7264 }
 0xa7a   : > { %v7267_v22 = vpop.eup %7266  ;;  %v3515_v36 = vmul.f32 %v7265_v19, %v3511_v44 }
 0xa7b   : > { %v3513_v27 = vadd.f32 0.5, %v3509_v28  ;;  %v7269_v29 = vpop.eup %7268  ;;  %v3516_v31 = vmul.f32 %v7267_v22, %v3512_v8 }
 0xa7c   : > { %v7271_v32 = vpop.eup %7270 }
 0xa7d   : > { %v3517_v61 = vmul.f32 %v7269_v29, %v3513_v27  ;;  %v3514_v37 = vmul.f32 %v7271_v32, %v3510_v20 }
 0xa7f   : > { %v3519_v50 = vpack.c.bf16 %v3517_v61, %v3515_v36  ;;  %v3518_v55 = vpack.c.bf16 %v3516_v31, %v3514_v37 }
 0xa81   : > { %3578 = vmatprep.subr.bf16.mxu0 %v3519_v50 }
 0xa82   : > { %3579 = vmatpush1.bf16.msra.mxu0 %v3518_v55 }
 0xa85   : > { %6778 = vmatmul.mubr.msk.bf16.vlgmr.msra.gmra.mxu0 %vm2160_vm13, %v7126_v39  ;;  %v3645_v39 = vld [vmem:[%s9774_s18] sm:$0xf]  ;;  %s9775_s18 = smov 1  }
 0xa86   : > { %3606 = vmatprep.mubr.bf16.mxu0 %v7689_v2 }
 0xa8d   : > { %6779 = vmatmul.mubr.msk.bf16.gmra.mxu0 %vm2160_vm13, %v7127_v47  ;;  %v3650_v47 = vpop.permute.xlu1 %3649 }
 0xa8e   : > { %4058 = vmatprep.mubr.bf16.mxu0 %v7689_v2 }
 0xb45   : > { %v3598_v41 = vpop.f32.mrf.mxu0 }
 0xb46   : > { %v3599_v3 = vadd.f32 %v3598_v41, %v3531_v16 }
 0xb47   : > { %v3600_v43 = vpop.f32.mrf.mxu0 }
 0xb48   : > { %v3601_v14 = vadd.f32 %v3600_v43, %v3531_v16  ;;  %v3756_v16 = vpop.permute.xlu0 %3755 }
 0xb49   : > { %v3602_v52 = vpop.f32.mrf.mxu0 }
 0xb4a   : > { %v3603_v62 = vadd.f32 %v3602_v52, %v3536_v49  ;;  %v3618_v53 = vadd.f32 %v3601_v14, %v8553_v21 }
 0xb4b   : > { %v3604_v25 = vpop.f32.mrf.mxu0 }
 0xb4c   : > { %v3605_v58 = vadd.f32 %v3604_v25, %v3536_v49  ;;  %v3619_v7 = vadd.f32 %v3603_v62, %v8559_v18  ;;  %v3626_v22 = vmul.f32 0.70710677, %v3618_v53 }
 0xb4d   : > { %v3608_v56 = vpop.f32.mrf.mxu0 }
 0xb4e   : > { %v3609_v60 = vadd.f32 %v3608_v56, %v3541_v51  ;;  %v3620_v10 = vadd.f32 %v3605_v58, %v8565_v38  ;;  %v3617_v38 = vadd.f32 %v3599_v3, %v8550_v13  ;;  %v3634_v61 = vmax.f32 %v3626_v22, 0.0 }
 0xb4f   : > { %v3610_v34 = vpop.f32.mrf.mxu0 }
 0xb50   : > { %v3611_v15 = vadd.f32 %v3610_v34, %v3541_v51  ;;  %v3621_v4 = vadd.f32 %v3609_v60, %v8571_v42  ;;  %v3628_v8 = vmul.f32 0.70710677, %v3620_v10  ;;  %v3627_v42 = vmul.f32 0.70710677, %v3619_v7  ;;  %v3761_v60 = vpop.permute.xlu1 %3760 }
 0xb51   : > { %v3612_v63 = vpop.f32.mrf.mxu0  ;;  %v3625_v36 = vmul.f32 0.70710677, %v3617_v38 }
 0xb52   : > { %v3622_v1 = vadd.f32 %v3611_v15, %v8577_v54  ;;  %v3613_v40 = vadd.f32 %v3612_v63, %v3546_v17  ;;  %v3629_v20 = vmul.f32 0.70710677, %v3621_v4  ;;  %v3636_v31 = vmax.f32 %v3628_v8, 0.0  ;;  %v3799_v63 = vpop.permute.xlu0 %3798 }
 0xb53   : > { %v3614_v5 = vpop.f32.mrf.mxu0  ;;  %v3635_v37 = vmax.f32 %v3627_v42, 0.0  ;;  %v3633_v55 = vmax.f32 %v3625_v36, 0.0 }
 0xb54   : > { %v3615_v6 = vadd.f32 %v3614_v5, %v3546_v17  ;;  %v3623_v44 = vadd.f32 %v3613_v40, %v8580_v26  ;;  %v3630_v28 = vmul.f32 0.70710677, %v3622_v1  ;;  %v3637_v18 = vmax.f32 %v3629_v20, 0.0  ;;  %v3804_v10 = vpop.permute.xlu1 %3803 }
 0xb55   : > { %v3641_v13 = vpack.c.bf16 %v3635_v37, %v3633_v55 }
 0xb56   : > { %v3624_v19 = vadd.f32 %v3615_v6, %v8589_v35  ;;  %v3631_v54 = vmul.f32 0.70710677, %v3623_v44  ;;  %v3638_v21 = vmax.f32 %v3630_v28, 0.0  ;;  %v3642_v35 = vpack.c.bf16 %v3636_v31, %v3634_v61  ;;  %v3746_v53 = vpop.permute.xlu0 %3745 }
 0xb58   : > { %v3632_v27 = vmul.f32 0.70710677, %v3624_v19  ;;  %v3639_v29 = vmax.f32 %v3631_v54, 0.0  ;;  %v3751_v6 = vpop.permute.xlu1 %3750 }
 0xb5a   : > { %v3640_v32 = vmax.f32 %v3632_v27, 0.0  ;;  %v3643_v50 = vpack.c.bf16 %v3639_v29, %v3637_v18  ;;  %v3789_v42 = vpop.permute.xlu0 %3788 }
 0xb5c   : > { %v3644_v26 = vpack.c.bf16 %v3640_v32, %v3638_v21  ;;  %v3794_v29 = vpop.permute.xlu1 %3793 }
 0xb5e   : > { %3667 = vmatprep.subr.bf16.mxu1 %v3644_v26 }
 0xb5f   : > { %3668 = vmatpush1.bf16.msra.mxu1 %v3643_v50 }
 0xb60   : > { %3669 = vmatprep.subr.bf16.mxu1 %v3642_v35 }
 0xb63   : > { %3670 = vmatpush1.bf16.msra.mxu1 %v3641_v13 }
 0xb66   : > { %6780 = vmatmul.mubr.msk.bf16.vlgmr.msra.gmra.mxu1 %vm2662_vm5, %v3645_v39 }
 0xb67   : > { %4181 = vmatprep.mubr.bf16.mxu1 %v7689_v2 }
 0xc26   : > { %v3689_v41 = vpop.f32.mrf.mxu1 }
 0xc27   : > { %v3690_v17 = vadd.f32 %v3689_v41, %v3650_v47 }
 0xc28   : > { %v3691_v43 = vpop.f32.mrf.mxu1 }
 0xc29   : > { %v3696_v51 = vmul.f32 1.442695, %v3690_v17  ;;  %v8701_v52 = vadd.f32 %v3691_v43, %v3650_v47 }
 0xc2a   : > { %v3693_v25 = vpop.f32.mrf.mxu1 }
 0xc2b   : > { %v3698_v49 = vmul.f32 1.442695, %v8701_v52  ;;  %7272 = vpow2.f32 %v3696_v51  ;;  %v3722_v15 = vcombine.low %v3690_v17, %v8701_v52 }
 0xc2c   : > { %v3694_v56 = vpop.f32.mrf.mxu1 }
 0xc2d   : > { %7274 = vpow2.f32 %v3698_v49  ;;  %v3729_v3 = vrot.slane %v3722_v15, %v8410_v46  ;;  %v3928_v15 = vld [vmem:[%s9776_s1 + $0x10] sm:$0xff] }
 0xc2f   : > { %v3736_v5 = vrot.slane %v3729_v3, %v8410_v46  ;;  %v4110_v3 = vld [vmem:[%s9777_s2 + $0x8] sm:$0xff] }
 0xc38   : > { %v7273_v58 = vpop.eup %7272 }
 0xc3a   : > { %v8704_v34 = vpop.eup %7274 }
 0xc3b   : > { %v3702_v14 = vcombine.low %v7273_v58, %v8704_v34 }
 0xc3d   : > { %v3709_v62 = vrot.slane %v3702_v14, %v8410_v46  ;;  %v3929_v14 = vld [vmem:[%s9776_s1 + $0x18] sm:$0xff] }
 0xc3f   : > { %v3710_v1 = vcombine.high %v3709_v62, %v3709_v62  ;;  %v3927_v62 = vld [vmem:[%s9776_s1 + $0x8] sm:$0xff] }
 0xc41   : > { %v3717_v4 = vrot.slane %v3710_v1, %v8410_v46  ;;  %v4111_v1 = vld [vmem:[%s9777_s2 + $0x10] sm:$0xff] }
 0xc43   : > { %v3719_v40 = vmul.f32 %v3717_v4, %v8419_v0  ;;  %v4109_v4 = vld [vmem:[%s9777_s2] sm:$0xff] }
 0xc45   : > { %v8713_v7 = vadd.f32 %v3736_v5, %v3719_v40 }
 0xc47   : > { %v3767_v44 = vrot.slane %v8713_v7, %v8083_v11  ;;  %v3771_v8 = vrot.slane %v8713_v7, %v8086_v12 }
 0xc49   : > { %v3780_v28 = vmul.f32 %v3767_v44, %v3761_v60  ;;  %v3781_v19 = vmul.f32 %v3771_v8, %v3761_v60  ;;  %v3778_v38 = vmul.f32 %v3767_v44, %v3756_v16  ;;  %v3779_v20 = vmul.f32 %v3771_v8, %v3756_v16 }
 0xc4a   : > { %v3776_v54 = vmul.f32 %v3767_v44, %v3751_v6  ;;  %v3777_v22 = vmul.f32 %v3771_v8, %v3751_v6  ;;  %v3774_v27 = vmul.f32 %v3767_v44, %v3746_v53  ;;  %v3775_v0 = vmul.f32 %v3771_v8, %v3746_v53 }
 0xc4b   : > { %v8719_v31 = vadd.f32 %v3804_v10, %v3780_v28  ;;  %v8721_v21 = vadd.f32 %v3804_v10, %v3781_v19  ;;  %v8723_v32 = vadd.f32 %v3799_v63, %v3778_v38  ;;  %v8725_v36 = vadd.f32 %v3799_v63, %v3779_v20  ;;  %v3926_v63 = vld [vmem:[%s9776_s1] sm:$0xff]  ;;  %v4112_v10 = vld [vmem:[%s9777_s2 + $0x18] sm:$0xff]  ;;  %s9779_s1 = sld [smem:[#allocation30_spill]]  ;;  %s9782_s2 = smov 4  }
 0xc4c   : > { %v8727_v18 = vadd.f32 %v3794_v29, %v3776_v54  ;;  %v8729_v61 = vadd.f32 %v3794_v29, %v3777_v22  ;;  %v8731_v26 = vadd.f32 %v3789_v42, %v3774_v27  ;;  %v8733_v37 = vadd.f32 %v3789_v42, %v3775_v0 }
 0xc4d   : > { %v3820_v50 = vsel %vm8091_vm1, %v8719_v31, 0.0  ;;  %v3821_v35 = vsel %vm8095_vm2, %v8721_v21, 0.0  ;;  %v3818_v55 = vsel %vm8091_vm1, %v8723_v32, 0.0  ;;  %v3819_v13 = vsel %vm8095_vm2, %v8725_v36, 0.0 }
 0xc4e   : > { %v6950_v39 = vpack.c.bf16 %v3821_v35, %v3820_v50  ;;  %v6949_v47 = vpack.c.bf16 %v3819_v13, %v3818_v55  ;;  %v3816_v41 = vsel %vm8091_vm1, %v8727_v18, 0.0  ;;  %v3817_v17 = vsel %vm8095_vm2, %v8729_v61, 0.0 }
 0xc4f   : > { %v6948_v43 = vpack.c.bf16 %v3817_v17, %v3816_v41  ;;  %v3814_v51 = vsel %vm8091_vm1, %v8731_v26, 0.0  ;;  %v3815_v25 = vsel %vm8095_vm2, %v8733_v37, 0.0  ;;  %v7446_v56 = vpack.c.bf16 %v8721_v21, %v8725_v36 }
 0xc50   : > { %3884 = vrot.lane.b32.xlu1 %v6950_v39, %s9775_s18  ;;  %3882 = vrot.lane.b32.xlu0 %v6949_v47, %s9775_s18  ;;  %v6947_v49 = vpack.c.bf16 %v3815_v25, %v3814_v51  ;;  %v7449_v58 = vpack.c.bf16 %v8719_v31, %v8723_v32  ;;  %v7453_v16 = vpack.c.bf16 %v8729_v61, %v8733_v37 }
 0xc51   : > { %7447 = vmatprep.subr.msk.bf16.mxu0 %vm8144_vm3, %v7446_v56  ;;  %v7457_v60 = vpack.c.bf16 %v8727_v18, %v8731_v26 }
 0xc52   : > { %7450 = vmatpush1.bf16.msk.msra.mxu0 %vm8155_vm4, %v7449_v58 }
 0xc53   : > { %7454 = vmatprep.subr.msk.bf16.mxu0 %vm8144_vm3, %v7453_v16 }
 0xc54   : > { %3880 = vrot.lane.b32.xlu1 %v6948_v43, %s9775_s18  ;;  %3878 = vrot.lane.b32.xlu0 %v6947_v49, %s9775_s18 }
 0xc56   : > { %7458 = vmatpush1.bf16.msk.msra.mxu0 %vm8155_vm4, %v7457_v60 }
 0xc58   : > { %3860 = vrot.lane.b32.xlu1 %v6950_v39, %s9778_s3  ;;  %3858 = vrot.lane.b32.xlu0 %v6949_v47, %s9778_s3 }
 0xc5c   : > { %3856 = vrot.lane.b32.xlu1 %v6948_v43, %s9778_s3  ;;  %3854 = vrot.lane.b32.xlu0 %v6947_v49, %s9778_s3 }
 0xc60   : > { %3947 = vperm.xlu1 %7079, %v3929_v14   ;;  %3942 = vperm.xlu0 %7078, %v3928_v15  }
 0xc64   : > { %3937 = vperm.xlu1 %7079, %v3927_v62   ;;  %3932 = vperm.xlu0 %7078, %v3926_v63  }
 0xc68   : > { %4130 = vperm.xlu1 %7079, %v4112_v10   ;;  %4125 = vperm.xlu0 %7078, %v4111_v1  }
 0xc6c   : > { %4120 = vperm.xlu1 %7079, %v4110_v3   ;;  %4115 = vperm.xlu0 %7078, %v4109_v4  }
 0xcc2   : > { %v3885_v40 = vpop.permute.xlu1 %3884  ;;  %v3883_v5 = vpop.permute.xlu0 %3882 }
 0xcc3   : > { %v3889_v53 = vrot.slane %v3885_v40, 4  ;;  %v3888_v6 = vrot.slane %v3883_v5, 4 }
 0xcc5   : > { %v3893_v44 = vsel %vm1903_vm7, %v3889_v53, %v3885_v40  ;;  %v3892_v8 = vsel %vm1903_vm7, %v3888_v6, %v3883_v5  ;;  %v7136_v40 = vld [vmem:[%s9779_s1] sm:$0xff]   ;;  %v7137_v5 = vld [vmem:[%s9779_s1 + $0x8] sm:$0xff]   ;;  %s9780_s1 = sld [smem:[#allocation32_spill]] }
 0xcc6   : > { %3901 = vst.msk [vmem:[#allocation2 + $0x38] sm:$0xff] %vm8186_vm8, %v3893_v44  ;;  %3900 = vst.msk [vmem:[#allocation2 + $0x30] sm:$0xff] %vm8186_vm8, %v3892_v8  ;;  %v3881_v28 = vpop.permute.xlu1 %3880  ;;  %v3879_v19 = vpop.permute.xlu0 %3878 }
 0xcc7   : > { %v3887_v38 = vrot.slane %v3881_v28, 4  ;;  %v3886_v20 = vrot.slane %v3879_v19, 4 }
 0xcc9   : > { %v3891_v54 = vsel %vm1903_vm7, %v3887_v38, %v3881_v28  ;;  %v3890_v22 = vsel %vm1903_vm7, %v3886_v20, %v3879_v19 }
 0xcca   : > { %3899 = vst.msk [vmem:[#allocation2 + $0x28] sm:$0xff] %vm8186_vm8, %v3891_v54  ;;  %3898 = vst.msk [vmem:[#allocation2 + $0x20] sm:$0xff] %vm8186_vm8, %v3890_v22  ;;  %v3861_v27 = vpop.permute.xlu1 %3860  ;;  %v3859_v0 = vpop.permute.xlu0 %3858 }
 0xccb   : > { %v3865_v42 = vrot.slane %v3861_v27, 4  ;;  %v3864_v29 = vrot.slane %v3859_v0, 4 }
 0xccd   : > { %v3869_v50 = vsel %vm1875_vm10, %v3865_v42, %v3861_v27  ;;  %v3868_v35 = vsel %vm1875_vm10, %v3864_v29, %v3859_v0  ;;  %v3920_v55 = vld [vmem:[#allocation2 + $0x30] sm:$0xff]  ;;  %v3921_v13 = vld [vmem:[#allocation2 + $0x38] sm:$0xff] }
 0xcce   : > { %v7128_v39 = vld [vmem:[#allocation2 + $0x34] ss:$8 sps:$4 sm:$0xff]   ;;  %3877 = vst.msk [vmem:[#allocation2 + $0x18] sm:$0xff] %vm8203_vm11, %v3869_v50  ;;  %3876 = vst.msk [vmem:[#allocation2 + $0x10] sm:$0xff] %vm8203_vm11, %v3868_v35  ;;  %v3857_v47 = vpop.permute.xlu1 %3856  ;;  %v3855_v41 = vpop.permute.xlu0 %3854  ;;  %v6793_v17 = vcombine.low %v3920_v55, %v3921_v13 }
 0xccf   : > { %4236 = vst.msk [vmem:[#allocation2 + $0x30] sm:$0xf] %vm1834_vm0, %v7689_v2  ;;  %4237 = vst.msk [vmem:[#allocation2 + $0x38] sm:$0xf] %vm1834_vm0, %v7689_v2  ;;  %v3863_v43 = vrot.slane %v3857_v47, 4  ;;  %v3862_v51 = vrot.slane %v3855_v41, 4  ;;  %4034 = vmatprep.subr.bf16.mxu0 %v7128_v39 }
 0xcd0   : > { %4035 = vmatpush1.bf16.msra.mxu0 %v6793_v17 }
 0xcd1   : > { %v3867_v25 = vsel %vm1875_vm10, %v3863_v43, %v3857_v47  ;;  %v3866_v49 = vsel %vm1875_vm10, %v3862_v51, %v3855_v41  ;;  %v3918_v56 = vld [vmem:[#allocation2 + $0x20] sm:$0xff]  ;;  %v3919_v58 = vld [vmem:[#allocation2 + $0x28] sm:$0xff] }
 0xcd2   : > { %v7130_v16 = vld [vmem:[#allocation2 + $0x24] ss:$8 sps:$4 sm:$0xff]   ;;  %3875 = vst.msk [vmem:[#allocation2 + $0x8] sm:$0xff] %vm8203_vm11, %v3867_v25  ;;  %3874 = vst.msk [vmem:[#allocation2] sm:$0xff] %vm8203_vm11, %v3866_v49  ;;  %v6791_v60 = vcombine.low %v3918_v56, %v3919_v58 }
 0xcd3   : > { %4234 = vst.msk [vmem:[#allocation2 + $0x20] sm:$0xf] %vm1834_vm0, %v7689_v2  ;;  %4235 = vst.msk [vmem:[#allocation2 + $0x28] sm:$0xf] %vm1834_vm0, %v7689_v2  ;;  %4036 = vmatprep.subr.bf16.mxu0 %v7130_v16 }
 0xcd4   : > { %4037 = vmatpush1.bf16.msra.mxu0 %v6791_v60 }
 0xcd5   : > { %v3916_v14 = vld [vmem:[#allocation2 + $0x10] sm:$0xff]  ;;  %v3917_v15 = vld [vmem:[#allocation2 + $0x18] sm:$0xff] }
 0xcd6   : > { %v7132_v62 = vld [vmem:[#allocation2 + $0x14] ss:$8 sps:$4 sm:$0xff]   ;;  %4232 = vst.msk [vmem:[#allocation2 + $0x10] sm:$0xf] %vm1834_vm0, %v7689_v2  ;;  %4233 = vst.msk [vmem:[#allocation2 + $0x18] sm:$0xf] %vm1834_vm0, %v7689_v2  ;;  %v6789_v63 = vcombine.low %v3916_v14, %v3917_v15 }
 0xcd7   : > { %4038 = vmatprep.subr.bf16.mxu0 %v7132_v62 }
 0xcd8   : > { %4039 = vmatpush1.bf16.msra.mxu0 %v6789_v63 }
 0xcd9   : > { %v3914_v10 = vld [vmem:[#allocation2] sm:$0xff]  ;;  %v3915_v1 = vld [vmem:[#allocation2 + $0x8] sm:$0xff] }
 0xcda   : > { %v7134_v3 = vld [vmem:[#allocation2 + $0x4] ss:$8 sps:$4 sm:$0xff]   ;;  %4230 = vst.msk [vmem:[#allocation2] sm:$0xf] %vm1834_vm0, %v7689_v2  ;;  %4231 = vst.msk [vmem:[#allocation2 + $0x8] sm:$0xf] %vm1834_vm0, %v7689_v2  ;;  %v6787_v4 = vcombine.low %v3914_v10, %v3915_v1 }
 0xcdb   : > { %4040 = vmatprep.subr.bf16.mxu0 %v7134_v3  ;;  %v3943_v28 = vpop.permute.xlu0 %3942  ;;  %v3948_v54 = vpop.permute.xlu1 %3947 }
 0xcdc   : > { %4041 = vmatpush1.bf16.msra.mxu0 %v6787_v4 }
 0xcdf   : > { %6799 = vmatmul.mubr.msk.bf16.vlgmr.msra.gmra.mxu0 %vm2036_vm12, %v7136_v40  ;;  %v3933_v13 = vpop.permute.xlu0 %3932  ;;  %v3938_v39 = vpop.permute.xlu1 %3937 }
 0xce0   : > { %4068 = vmatprep.mubr.bf16.mxu0 %v7689_v2 }
 0xce7   : > { %6800 = vmatmul.mubr.msk.bf16.gmra.mxu0 %vm2036_vm12, %v7137_v5 }
 0xce8   : > { %4585 = vmatprep.mubr.bf16.mxu0 %v7689_v2 }
 0xd9f   : > { %v4060_v53 = vpop.f32.mrf.mxu0 }
 0xda0   : > { %v4061_v51 = vadd.f32 %v4060_v53, %v3933_v13 }
 0xda1   : > { %v4062_v6 = vpop.f32.mrf.mxu0 }
 0xda2   : > { %v4063_v47 = vadd.f32 %v4062_v6, %v3933_v13 }
 0xda3   : > { %v4064_v44 = vpop.f32.mrf.mxu0 }
 0xda4   : > { %v4065_v17 = vadd.f32 %v4064_v44, %v3938_v39 }
 0xda5   : > { %v4066_v8 = vpop.f32.mrf.mxu0 }
 0xda6   : > { %v4067_v43 = vadd.f32 %v4066_v8, %v3938_v39 }
 0xda7   : > { %v4070_v19 = vpop.f32.mrf.mxu0 }
 0xda8   : > { %v4071_v38 = vadd.f32 %v4070_v19, %v3943_v28 }
 0xda9   : > { %v4072_v20 = vpop.f32.mrf.mxu0 }
 0xdaa   : > { %v4083_v22 = vmul.f32 0.5, %v4071_v38  ;;  %v4073_v27 = vadd.f32 %v4072_v20, %v3943_v28  ;;  %v7138_v38 = vld [vmem:[%s9780_s1] sm:$0xff]   ;;  %v7139_v20 = vld [vmem:[%s9780_s1 + $0x8] sm:$0xff]   ;;  %s9781_s1 = sld [smem:[#allocation35_spill]] }
 0xdab   : > { %v4074_v0 = vpop.f32.mrf.mxu0 }
 0xdac   : > { %v4084_v42 = vmul.f32 0.5, %v4073_v27  ;;  %v4075_v29 = vadd.f32 %v4074_v0, %v3948_v54  ;;  %7276 = vtanh.f32 %v4083_v22  ;;  %v4131_v22 = vpop.permute.xlu1 %4130 }
 0xdad   : > { %v4076_v50 = vpop.f32.mrf.mxu0 }
 0xdae   : > { %7278 = vtanh.f32 %v4084_v42  ;;  %v4085_v35 = vmul.f32 0.5, %v4075_v29  ;;  %v4077_v55 = vadd.f32 %v4076_v50, %v3948_v54  ;;  %v4126_v54 = vpop.permute.xlu0 %4125 }
 0xdb0   : > { %7280 = vtanh.f32 %v4085_v35  ;;  %v4086_v41 = vmul.f32 0.5, %v4077_v55  ;;  %v4121_v55 = vpop.permute.xlu1 %4120 }
 0xdb2   : > { %7282 = vtanh.f32 %v4086_v41  ;;  %v4116_v27 = vpop.permute.xlu0 %4115 }
 0xdb3   : > { %7284 = vtanh.f32 %v4063_v47 }
 0xdb4   : > { %7286 = vtanh.f32 %v4065_v17 }
 0xdb5   : > { %7288 = vtanh.f32 %v4067_v43 }
 0xdb6   : > { %7290 = vtanh.f32 %v4061_v51 }
 0xdb9   : > { %v7277_v25 = vpop.eup %7276 }
 0xdba   : > { %v4091_v16 = vmul.f32 0.5, %v7277_v25 }
 0xdbb   : > { %v7279_v49 = vpop.eup %7278 }
 0xdbc   : > { %v4092_v56 = vmul.f32 0.5, %v7279_v49  ;;  %v4095_v1 = vadd.f32 0.5, %v4091_v16 }
 0xdbd   : > { %v7281_v58 = vpop.eup %7280 }
 0xdbe   : > { %v4093_v60 = vmul.f32 0.5, %v7281_v58  ;;  %v4096_v15 = vadd.f32 0.5, %v4092_v56 }
 0xdbf   : > { %v7283_v14 = vpop.eup %7282 }
 0xdc0   : > { %v4097_v62 = vadd.f32 0.5, %v4093_v60  ;;  %v4094_v63 = vmul.f32 0.5, %v7283_v14  ;;  %v7285_v10 = vpop.eup %7284 }
 0xdc1   : > { %v7287_v3 = vpop.eup %7286  ;;  %v4100_v6 = vmul.f32 %v7285_v10, %v4096_v15 }
 0xdc2   : > { %v4098_v4 = vadd.f32 0.5, %v4094_v63  ;;  %v7289_v40 = vpop.eup %7288  ;;  %v4101_v5 = vmul.f32 %v7287_v3, %v4097_v62 }
 0xdc3   : > { %v7291_v53 = vpop.eup %7290 }
 0xdc4   : > { %v4102_v44 = vmul.f32 %v7289_v40, %v4098_v4  ;;  %v4099_v8 = vmul.f32 %v7291_v53, %v4095_v1 }
 0xdc6   : > { %v4104_v28 = vpack.c.bf16 %v4102_v44, %v4100_v6  ;;  %v4103_v19 = vpack.c.bf16 %v4101_v5, %v4099_v8 }
 0xdc8   : > { %4163 = vmatprep.subr.bf16.mxu1 %v4104_v28 }
 0xdc9   : > { %4164 = vmatpush1.bf16.msra.mxu1 %v4103_v19 }
 0xdcc   : > { %6803 = vmatmul.mubr.msk.bf16.vlgmr.msra.gmra.mxu1 %vm2160_vm13, %v7138_v38 }
 0xdcd   : > { %4191 = vmatprep.mubr.bf16.mxu1 %v7689_v2 }
 0xdd4   : > { %6804 = vmatmul.mubr.msk.bf16.gmra.mxu1 %vm2160_vm13, %v7139_v20 }
 0xdd5   : > { %4462 = vmatprep.mubr.bf16.mxu1 %v7689_v2 }
 0xe8c   : > { %v4183_v0 = vpop.f32.mrf.mxu1 }
 0xe8d   : > { %v4184_v42 = vadd.f32 %v4183_v0, %v4116_v27 }
 0xe8e   : > { %v4185_v29 = vpop.f32.mrf.mxu1 }
 0xe8f   : > { %v4202_v50 = vadd.f32 %v4184_v42, %v8731_v26  ;;  %v4186_v35 = vadd.f32 %v4185_v29, %v4116_v27  ;;  %v4332_v42 = vld [vmem:[%s9781_s1 + $0x10] sm:$0xff]  ;;  %v4333_v29 = vld [vmem:[%s9781_s1 + $0x18] sm:$0xff] }
 0xe90   : > { %v4187_v13 = vpop.f32.mrf.mxu1 }
 0xe91   : > { %v8844_v39 = vmul.f32 0.70710677, %v4202_v50  ;;  %v4203_v47 = vadd.f32 %v4186_v35, %v8733_v37  ;;  %v4188_v41 = vadd.f32 %v4187_v13, %v4121_v55  ;;  %v4330_v50 = vld [vmem:[%s9781_s1] sm:$0xff]  ;;  %v4331_v35 = vld [vmem:[%s9781_s1 + $0x8] sm:$0xff]  ;;  %v4516_v13 = vld [vmem:[%s9783_s5 + $0x18] sm:$0xff]  ;;  %s9788_s1 = sld [smem:[#allocation36_spill]] }
 0xe92   : > { %v4189_v17 = vpop.f32.mrf.mxu1 }
 0xe93   : > { %v8847_v43 = vmul.f32 0.70710677, %v4203_v47  ;;  %v4204_v51 = vadd.f32 %v4188_v41, %v8727_v18  ;;  %v4190_v25 = vadd.f32 %v4189_v17, %v4121_v55  ;;  %v4218_v49 = vsel %vm8091_vm1, %v8844_v39, 0.0  ;;  %v4515_v55 = vld [vmem:[%s9783_s5 + $0x10] sm:$0xff]  ;;  %v4513_v47 = vld [vmem:[%s9783_s5] sm:$0xff]  ;;  %v4514_v41 = vld [vmem:[%s9783_s5 + $0x8] sm:$0xff] }
 0xe94   : > { %v4193_v56 = vpop.f32.mrf.mxu1  ;;  %v4635_v17 = vld [vmem:[%s9784_s6] sm:$0xff]  ;;  %s9787_s6 = sld [smem:[#allocation34_spill]] }
 0xe95   : > { %v4219_v26 = vsel %vm8095_vm2, %v8847_v43, 0.0  ;;  %v8856_v58 = vmul.f32 0.70710677, %v4204_v51  ;;  %v4205_v37 = vadd.f32 %v4190_v25, %v8729_v61  ;;  %v4194_v16 = vadd.f32 %v4193_v56, %v4126_v54  ;;  %v4730_v51 = vld [vmem:[%s9785_s8 + $0x10] sm:$0xff]  ;;  %v4731_v25 = vld [vmem:[%s9785_s8 + $0x18] sm:$0xff]  ;;  %s9791_s5 = sld [smem:[#allocation45_spill]] }
 0xe96   : > { %v6951_v60 = vpack.c.bf16 %v4219_v26, %v4218_v49  ;;  %v4195_v14 = vpop.f32.mrf.mxu1  ;;  %v4773_v49 = vld [vmem:[%s9786_s9 + $0x10] sm:$0xff]  ;;  %v4774_v56 = vld [vmem:[%s9786_s9 + $0x18] sm:$0xff]  ;;  %v4728_v26 = vld [vmem:[%s9785_s8] sm:$0xff] }
 0xe97   : > { %v8859_v15 = vmul.f32 0.70710677, %v4205_v37  ;;  %v4206_v18 = vadd.f32 %v4194_v16, %v8723_v32  ;;  %v4196_v62 = vadd.f32 %v4195_v14, %v4126_v54  ;;  %v4220_v63 = vsel %vm8091_vm1, %v8856_v58, 0.0  ;;  %v4729_v37 = vld [vmem:[%s9785_s8 + $0x8] sm:$0xff]  ;;  %v4771_v16 = vld [vmem:[%s9786_s9] sm:$0xff] }
 0xe98   : > { %v4197_v10 = vpop.f32.mrf.mxu1  ;;  %v7473_v0 = vpack.c.bf16 %v8856_v58, %v8844_v39 }
 0xe99   : > { %v4221_v1 = vsel %vm8095_vm2, %v8859_v15, 0.0  ;;  %v8868_v3 = vmul.f32 0.70710677, %v4206_v18  ;;  %v4207_v61 = vadd.f32 %v4196_v62, %v8725_v36  ;;  %v4198_v4 = vadd.f32 %v4197_v10, %v4131_v22 }
 0xe9a   : > { %v6952_v40 = vpack.c.bf16 %v4221_v1, %v4220_v63  ;;  %v4199_v5 = vpop.f32.mrf.mxu1  ;;  %v7469_v27 = vpack.c.bf16 %v8859_v15, %v8847_v43 }
 0xe9b   : > { %v8871_v53 = vmul.f32 0.70710677, %v4207_v61  ;;  %v4208_v32 = vadd.f32 %v4198_v4, %v8719_v31  ;;  %v4200_v6 = vadd.f32 %v4199_v5, %v4131_v22  ;;  %v4222_v44 = vsel %vm8091_vm1, %v8868_v3, 0.0 }
 0xe9d   : > { %v4223_v8 = vsel %vm8095_vm2, %v8871_v53, 0.0  ;;  %v8880_v28 = vmul.f32 0.70710677, %v4208_v32  ;;  %v4209_v36 = vadd.f32 %v4200_v6, %v8721_v21 }
 0xe9e   : > { %v6953_v19 = vpack.c.bf16 %v4223_v8, %v4222_v44 }
 0xe9f   : > { %v8883_v38 = vmul.f32 0.70710677, %v4209_v36  ;;  %v4224_v31 = vsel %vm8091_vm1, %v8880_v28, 0.0  ;;  %v7465_v22 = vpack.c.bf16 %v8880_v28, %v8868_v3 }
 0xea0   : > { %4286 = vrot.lane.b32.xlu0 %v6953_v19, %s9778_s3 }
 0xea1   : > { %v4225_v20 = vsel %vm8095_vm2, %v8883_v38, 0.0  ;;  %v7462_v21 = vpack.c.bf16 %v8883_v38, %v8871_v53 }
 0xea2   : > { %v6954_v54 = vpack.c.bf16 %v4225_v20, %v4224_v31 }
 0xea3   : > { %7463 = vmatprep.subr.msk.bf16.mxu1 %vm8144_vm3, %v7462_v21 }
 0xea4   : > { %4288 = vrot.lane.b32.xlu1 %v6954_v54, %s9778_s3  ;;  %4282 = vrot.lane.b32.xlu0 %v6951_v60, %s9778_s3 }
 0xea5   : > { %7466 = vmatpush1.bf16.msk.msra.mxu1 %vm8155_vm4, %v7465_v22 }
 0xea6   : > { %7470 = vmatprep.subr.msk.bf16.mxu1 %vm8144_vm3, %v7469_v27 }
 0xea8   : > { %4284 = vrot.lane.b32.xlu1 %v6952_v40, %s9778_s3  ;;  %4262 = vrot.lane.b32.xlu0 %v6953_v19, %s9782_s2 }
 0xea9   : > { %7474 = vmatpush1.bf16.msk.msra.mxu1 %vm8155_vm4, %v7473_v0 }
 0xeac   : > { %4264 = vrot.lane.b32.xlu1 %v6954_v54, %s9782_s2  ;;  %4258 = vrot.lane.b32.xlu0 %v6951_v60, %s9782_s2  ;;  %v4772_v60 = vld [vmem:[%s9786_s9 + $0x8] sm:$0xff] }
 0xeb0   : > { %4260 = vrot.lane.b32.xlu1 %v6952_v40, %s9782_s2  ;;  %4346 = vperm.xlu0 %7078, %v4332_v42  }
 0xeb4   : > { %4351 = vperm.xlu1 %7079, %v4333_v29   ;;  %4336 = vperm.xlu0 %7078, %v4330_v50  }
 0xeb8   : > { %4341 = vperm.xlu1 %7079, %v4331_v35   ;;  %4529 = vperm.xlu0 %7078, %v4515_v55  }
 0xebc   : > { %4534 = vperm.xlu1 %7079, %v4516_v13   ;;  %4519 = vperm.xlu0 %7078, %v4513_v47  }
 0xec0   : > { %4524 = vperm.xlu1 %7079, %v4514_v41   ;;  %4638 = vperm.xlu0 %7078, %v4635_v17  }
 0xec4   : > { %4744 = vperm.xlu1 %7079, %v4730_v51   ;;  %4749 = vperm.xlu0 %7078, %v4731_v25  }
 0xec8   : > { %4787 = vperm.xlu1 %7079, %v4773_v49   ;;  %4792 = vperm.xlu0 %7078, %v4774_v56  }
 0xecc   : > { %4734 = vperm.xlu1 %7079, %v4728_v26   ;;  %4739 = vperm.xlu0 %7078, %v4729_v37  }
 0xed0   : > { %4777 = vperm.xlu1 %7079, %v4771_v16   ;;  %4782 = vperm.xlu0 %7078, %v4772_v60  }
 0xf12   : > { %v4287_v14 = vpop.permute.xlu0 %4286 }
 0xf13   : > { %v4292_v18 = vrot.slane %v4287_v14, 4 }
 0xf15   : > { %v4296_v62 = vsel %vm1875_vm10, %v4292_v18, %v4287_v14  ;;  %v7148_v14 = vld [vmem:[%s9787_s6] sm:$0xff]   ;;  %v7149_v18 = vld [vmem:[%s9787_s6 + $0x8] sm:$0xff]  }
 0xf16   : > { %4304 = vst.msk [vmem:[#allocation2 + $0x30] sm:$0xff] %vm8203_vm11, %v4296_v62  ;;  %v4289_v63 = vpop.permute.xlu1 %4288  ;;  %v4283_v10 = vpop.permute.xlu0 %4282 }
 0xf17   : > { %v4293_v1 = vrot.slane %v4289_v63, 4  ;;  %v4290_v61 = vrot.slane %v4283_v10, 4 }
 0xf19   : > { %v4297_v4 = vsel %vm1875_vm10, %v4293_v1, %v4289_v63  ;;  %v4294_v40 = vsel %vm1875_vm10, %v4290_v61, %v4283_v10 }
 0xf1a   : > { %4305 = vst.msk [vmem:[#allocation2 + $0x38] sm:$0xff] %vm8203_vm11, %v4297_v4  ;;  %4302 = vst.msk [vmem:[#allocation2 + $0x20] sm:$0xff] %vm8203_vm11, %v4294_v40  ;;  %v4285_v5 = vpop.permute.xlu1 %4284  ;;  %v4263_v32 = vpop.permute.xlu0 %4262 }
 0xf1b   : > { %v4291_v6 = vrot.slane %v4285_v5, 4  ;;  %v4268_v44 = vrot.slane %v4263_v32, 4 }
 0xf1d   : > { %v4295_v8 = vsel %vm1875_vm10, %v4291_v6, %v4285_v5  ;;  %v4272_v36 = vsel %vm2288_vm15, %v4268_v44, %v4263_v32  ;;  %v4324_v27 = vld [vmem:[#allocation2 + $0x30] sm:$0xff] }
 0xf1e   : > { %4303 = vst.msk [vmem:[#allocation2 + $0x28] sm:$0xff] %vm8203_vm11, %v4295_v8  ;;  %v4265_v19 = vpop.permute.xlu1 %4264  ;;  %v4259_v31 = vpop.permute.xlu0 %4258 }
 0xf1f   : > { %4280 = vst.msk [vmem:[#allocation2 + $0x10] sm:$0xff] %vm8346_vm6, %v4272_v36  ;;  %v4269_v20 = vrot.slane %v4265_v19, 4  ;;  %v4266_v54 = vrot.slane %v4259_v31, 4 }
 0xf20   : > { %4821 = vst.msk [vmem:[#allocation2 + $0x30] sm:$0xf] %vm1834_vm0, %v7689_v2 }
 0xf21   : > { %v4273_v21 = vsel %vm2288_vm15, %v4269_v20, %v4265_v19  ;;  %v4270_v22 = vsel %vm2288_vm15, %v4266_v54, %v4259_v31  ;;  %v4325_v0 = vld [vmem:[#allocation2 + $0x38] sm:$0xff]  ;;  %v4322_v13 = vld [vmem:[#allocation2 + $0x20] sm:$0xff] }
 0xf22   : > { %v7140_v42 = vld [vmem:[#allocation2 + $0x34] ss:$8 sps:$4 sm:$0xff]   ;;  %4281 = vst.msk [vmem:[#allocation2 + $0x18] sm:$0xff] %vm8346_vm6, %v4273_v21  ;;  %4278 = vst.msk [vmem:[#allocation2] sm:$0xff] %vm8346_vm6, %v4270_v22  ;;  %v4261_v29 = vpop.permute.xlu1 %4260  ;;  %v6817_v50 = vcombine.low %v4324_v27, %v4325_v0 }
 0xf23   : > { %4822 = vst.msk [vmem:[#allocation2 + $0x38] sm:$0xf] %vm1834_vm0, %v7689_v2  ;;  %v4267_v35 = vrot.slane %v4261_v29, 4  ;;  %4438 = vmatprep.subr.bf16.mxu1 %v7140_v42  ;;  %4819 = vst.msk [vmem:[#allocation2 + $0x20] sm:$0xf] %vm1834_vm0, %v7689_v2 }
 0xf24   : > { %4439 = vmatpush1.bf16.msra.mxu1 %v6817_v50 }
 0xf25   : > { %v4271_v55 = vsel %vm2288_vm15, %v4267_v35, %v4261_v29  ;;  %v4323_v47 = vld [vmem:[#allocation2 + $0x28] sm:$0xff] }
 0xf26   : > { %v7142_v41 = vld [vmem:[#allocation2 + $0x24] ss:$8 sps:$4 sm:$0xff]   ;;  %4279 = vst.msk [vmem:[#allocation2 + $0x8] sm:$0xff] %vm8346_vm6, %v4271_v55  ;;  %v6815_v17 = vcombine.low %v4322_v13, %v4323_v47  ;;  %v4320_v51 = vld [vmem:[#allocation2 + $0x10] sm:$0xff] }
 0xf27   : > { %4820 = vst.msk [vmem:[#allocation2 + $0x28] sm:$0xf] %vm1834_vm0, %v7689_v2  ;;  %4440 = vmatprep.subr.bf16.mxu1 %v7142_v41  ;;  %4817 = vst.msk [vmem:[#allocation2 + $0x10] sm:$0xf] %vm1834_vm0, %v7689_v2 }
 0xf28   : > { %4441 = vmatpush1.bf16.msra.mxu1 %v6815_v17 }
 0xf29   : > { %v4321_v25 = vld [vmem:[#allocation2 + $0x18] sm:$0xff]  ;;  %v4318_v26 = vld [vmem:[#allocation2] sm:$0xff] }
 0xf2a   : > { %v7144_v49 = vld [vmem:[#allocation2 + $0x14] ss:$8 sps:$4 sm:$0xff]   ;;  %4818 = vst.msk [vmem:[#allocation2 + $0x18] sm:$0xf] %vm1834_vm0, %v7689_v2  ;;  %v6813_v56 = vcombine.low %v4320_v51, %v4321_v25  ;;  %4815 = vst.msk [vmem:[#allocation2] sm:$0xf] %vm1834_vm0, %v7689_v2 }
 0xf2b   : > { %4442 = vmatprep.subr.bf16.mxu1 %v7144_v49  ;;  %v4347_v61 = vpop.permute.xlu0 %4346 }
 0xf2c   : > { %4443 = vmatpush1.bf16.msra.mxu1 %v6813_v56 }
 0xf2d   : > { %v4319_v37 = vld [vmem:[#allocation2 + $0x8] sm:$0xff] }
 0xf2e   : > { %v7146_v16 = vld [vmem:[#allocation2 + $0x4] ss:$8 sps:$4 sm:$0xff]   ;;  %4816 = vst.msk [vmem:[#allocation2 + $0x8] sm:$0xf] %vm1834_vm0, %v7689_v2  ;;  %v6811_v60 = vcombine.low %v4318_v26, %v4319_v37 }
 0xf2f   : > { %4444 = vmatprep.subr.bf16.mxu1 %v7146_v16  ;;  %v4352_v32 = vpop.permute.xlu1 %4351  ;;  %v4337_v21 = vpop.permute.xlu0 %4336 }
 0xf30   : > { %4445 = vmatpush1.bf16.msra.mxu1 %v6811_v60 }
 0xf33   : > { %6823 = vmatmul.mubr.msk.bf16.vlgmr.msra.gmra.mxu1 %vm2036_vm12, %v7148_v14  ;;  %v4342_v22 = vpop.permute.xlu1 %4341 }
 0xf34   : > { %4472 = vmatprep.mubr.bf16.mxu1 %v7689_v2 }
 0xf3b   : > { %6824 = vmatmul.mubr.msk.bf16.gmra.mxu1 %vm2036_vm12, %v7149_v18 }
 0xf3c   : > { %5047 = vmatprep.mubr.bf16.mxu1 %v7689_v2 }
 0xff3   : > { %v4464_v62 = vpop.f32.mrf.mxu1 }
 0xff4   : > { %v4465_v50 = vadd.f32 %v4464_v62, %v4337_v21 }
 0xff5   : > { %v4466_v63 = vpop.f32.mrf.mxu1 }
 0xff6   : > { %v4467_v27 = vadd.f32 %v4466_v63, %v4337_v21 }
 0xff7   : > { %v4468_v10 = vpop.f32.mrf.mxu1 }
 0xff8   : > { %v4469_v42 = vadd.f32 %v4468_v10, %v4342_v22 }
 0xff9   : > { %v4470_v1 = vpop.f32.mrf.mxu1 }
 0xffa   : > { %v4471_v29 = vadd.f32 %v4470_v1, %v4342_v22 }
 0xffb   : > { %v4474_v4 = vpop.f32.mrf.mxu1 }
 0xffc   : > { %v4475_v40 = vadd.f32 %v4474_v4, %v4347_v61 }
 0xffd   : > { %v4476_v5 = vpop.f32.mrf.mxu1 }
 0xffe   : > { %v4487_v6 = vmul.f32 0.5, %v4475_v40  ;;  %v4477_v44 = vadd.f32 %v4476_v5, %v4347_v61  ;;  %v7150_v40 = vld [vmem:[%s9788_s1] sm:$0xff]   ;;  %v7151_v5 = vld [vmem:[%s9788_s1 + $0x8] sm:$0xff]   ;;  %s9789_s1 = sld [smem:[#allocation38_spill]] }
 0xfff   : > { %v4478_v8 = vpop.f32.mrf.mxu1 }
0x1000   : > { %v4488_v36 = vmul.f32 0.5, %v4477_v44  ;;  %v4479_v19 = vadd.f32 %v4478_v8, %v4352_v32  ;;  %7292 = vtanh.f32 %v4487_v6  ;;  %v4535_v6 = vpop.permute.xlu1 %4534  ;;  %v4530_v8 = vpop.permute.xlu0 %4529 }
0x1001   : > { %v4480_v31 = vpop.f32.mrf.mxu1 }
0x1002   : > { %7294 = vtanh.f32 %v4488_v36  ;;  %v4489_v20 = vmul.f32 0.5, %v4479_v19  ;;  %v4481_v54 = vadd.f32 %v4480_v31, %v4352_v32 }
0x1004   : > { %7296 = vtanh.f32 %v4489_v20  ;;  %v4490_v0 = vmul.f32 0.5, %v4481_v54  ;;  %v4525_v31 = vpop.permute.xlu1 %4524  ;;  %v4520_v21 = vpop.permute.xlu0 %4519 }
0x1006   : > { %7298 = vtanh.f32 %v4490_v0 }
0x1007   : > { %7300 = vtanh.f32 %v4467_v27 }
0x1008   : > { %7302 = vtanh.f32 %v4469_v42 }
0x1009   : > { %7304 = vtanh.f32 %v4471_v29 }
0x100a   : > { %7306 = vtanh.f32 %v4465_v50 }
0x100d   : > { %v7293_v35 = vpop.eup %7292 }
0x100e   : > { %v4495_v41 = vmul.f32 0.5, %v7293_v35 }
0x100f   : > { %v7295_v55 = vpop.eup %7294 }
0x1010   : > { %v4496_v13 = vmul.f32 0.5, %v7295_v55  ;;  %v4499_v37 = vadd.f32 0.5, %v4495_v41 }
0x1011   : > { %v7297_v47 = vpop.eup %7296 }
0x1012   : > { %v4497_v17 = vmul.f32 0.5, %v7297_v47  ;;  %v4500_v25 = vadd.f32 0.5, %v4496_v13 }
0x1013   : > { %v7299_v51 = vpop.eup %7298 }
0x1014   : > { %v4501_v49 = vadd.f32 0.5, %v4497_v17  ;;  %v4498_v56 = vmul.f32 0.5, %v7299_v51  ;;  %v7301_v26 = vpop.eup %7300 }
0x1015   : > { %v7303_v16 = vpop.eup %7302  ;;  %v4504_v63 = vmul.f32 %v7301_v26, %v4500_v25 }
0x1016   : > { %v4502_v60 = vadd.f32 0.5, %v4498_v56  ;;  %v7305_v14 = vpop.eup %7304  ;;  %v4505_v18 = vmul.f32 %v7303_v16, %v4501_v49 }
0x1017   : > { %v7307_v62 = vpop.eup %7306 }
0x1018   : > { %v4506_v10 = vmul.f32 %v7305_v14, %v4502_v60  ;;  %v4503_v1 = vmul.f32 %v7307_v62, %v4499_v37 }
0x101a   : > { %v4508_v61 = vpack.c.bf16 %v4506_v10, %v4504_v63  ;;  %v4507_v4 = vpack.c.bf16 %v4505_v18, %v4503_v1 }
0x101c   : > { %4567 = vmatprep.subr.bf16.mxu0 %v4508_v61 }
0x101d   : > { %4568 = vmatpush1.bf16.msra.mxu0 %v4507_v4 }
0x1020   : > { %6827 = vmatmul.mubr.msk.bf16.vlgmr.msra.gmra.mxu0 %vm2160_vm13, %v7150_v40 }
0x1021   : > { %4595 = vmatprep.mubr.bf16.mxu0 %v7689_v2 }
0x1028   : > { %6828 = vmatmul.mubr.msk.bf16.gmra.mxu0 %vm2160_vm13, %v7151_v5 }
0x1029   : > { %4676 = vmatprep.mubr.bf16.mxu0 %v7689_v2 }
0x10e0   : > { %v4587_v32 = vpop.f32.mrf.mxu0 }
0x10e1   : > { %v4588_v13 = vadd.f32 %v4587_v32, %v4520_v21  ;;  %v4634_v32 = vld [vmem:[%s9789_s1] sm:$0xf]  ;;  %s9790_s1 = sld [smem:[#allocation43_spill]] }
0x10e2   : > { %v4589_v44 = vpop.f32.mrf.mxu0 }
0x10e3   : > { %v4590_v0 = vadd.f32 %v4589_v44, %v4520_v21 }
0x10e4   : > { %v4591_v36 = vpop.f32.mrf.mxu0 }
0x10e5   : > { %v4592_v29 = vadd.f32 %v4591_v36, %v4525_v31  ;;  %v4607_v51 = vadd.f32 %v4590_v0, %v8847_v43 }
0x10e6   : > { %v4593_v19 = vpop.f32.mrf.mxu0 }
0x10e7   : > { %v4594_v54 = vadd.f32 %v4593_v19, %v4525_v31  ;;  %v4608_v49 = vadd.f32 %v4592_v29, %v8856_v58  ;;  %v4615_v14 = vmul.f32 0.70710677, %v4607_v51 }
0x10e8   : > { %v4597_v20 = vpop.f32.mrf.mxu0 }
0x10e9   : > { %v4598_v22 = vadd.f32 %v4597_v20, %v4530_v8  ;;  %v4609_v35 = vadd.f32 %v4594_v54, %v8859_v15  ;;  %v4606_v15 = vadd.f32 %v4588_v13, %v8844_v39  ;;  %v4623_v61 = vmax.f32 %v4615_v14, 0.0 }
0x10ea   : > { %v4599_v27 = vpop.f32.mrf.mxu0 }
0x10eb   : > { %v4600_v42 = vadd.f32 %v4599_v27, %v4530_v8  ;;  %v4610_v47 = vadd.f32 %v4598_v22, %v8868_v3  ;;  %v4617_v26 = vmul.f32 0.70710677, %v4609_v35  ;;  %v4616_v3 = vmul.f32 0.70710677, %v4608_v49  ;;  %v4745_v27 = vpop.permute.xlu1 %4744 }
0x10ec   : > { %v4601_v50 = vpop.f32.mrf.mxu0  ;;  %v4614_v1 = vmul.f32 0.70710677, %v4606_v15 }
0x10ed   : > { %v4611_v55 = vadd.f32 %v4600_v42, %v8871_v53  ;;  %v4602_v41 = vadd.f32 %v4601_v50, %v4535_v6  ;;  %v4618_v60 = vmul.f32 0.70710677, %v4610_v47  ;;  %v4625_v63 = vmax.f32 %v4617_v26, 0.0 }
0x10ee   : > { %v4603_v17 = vpop.f32.mrf.mxu0  ;;  %v4624_v4 = vmax.f32 %v4616_v3, 0.0  ;;  %v4622_v5 = vmax.f32 %v4614_v1, 0.0 }
0x10ef   : > { %v4604_v25 = vadd.f32 %v4603_v17, %v4535_v6  ;;  %v4612_v56 = vadd.f32 %v4602_v41, %v8880_v28  ;;  %v4619_v37 = vmul.f32 0.70710677, %v4611_v55  ;;  %v4626_v58 = vmax.f32 %v4618_v60, 0.0  ;;  %v4639_v6 = vpop.permute.xlu0 %4638  ;;  %v4788_v55 = vpop.permute.xlu1 %4787 }
0x10f0   : > { %v4630_v39 = vpack.c.bf16 %v4624_v4, %v4622_v5 }
0x10f1   : > { %v4613_v16 = vadd.f32 %v4604_v25, %v8883_v38  ;;  %v4620_v53 = vmul.f32 0.70710677, %v4612_v56  ;;  %v4627_v43 = vmax.f32 %v4619_v37, 0.0  ;;  %v4631_v38 = vpack.c.bf16 %v4625_v63, %v4623_v61 }
0x10f3   : > { %v4621_v18 = vmul.f32 0.70710677, %v4613_v16  ;;  %v4628_v62 = vmax.f32 %v4620_v53, 0.0  ;;  %v4750_v0 = vpop.permute.xlu0 %4749  ;;  %v4735_v49 = vpop.permute.xlu1 %4734 }
0x10f5   : > { %v4629_v10 = vmax.f32 %v4621_v18, 0.0  ;;  %v4632_v40 = vpack.c.bf16 %v4628_v62, %v4626_v58 }
0x10f7   : > { %v4633_v28 = vpack.c.bf16 %v4629_v10, %v4627_v43  ;;  %v4793_v13 = vpop.permute.xlu0 %4792  ;;  %v4778_v43 = vpop.permute.xlu1 %4777 }
0x10f9   : > { %4656 = vmatprep.subr.bf16.mxu0 %v4633_v28 }
0x10fa   : > { %4657 = vmatpush1.bf16.msra.mxu0 %v4632_v40 }
0x10fb   : > { %4658 = vmatprep.subr.bf16.mxu0 %v4631_v38  ;;  %v4740_v56 = vpop.permute.xlu0 %4739 }
0x10fe   : > { %4659 = vmatpush1.bf16.msra.mxu0 %v4630_v39 }
0x10ff   : > { %v4783_v10 = vpop.permute.xlu0 %4782 }
0x1101   : > { %6829 = vmatmul.mubr.msk.bf16.vlgmr.msra.gmra.mxu0 %vm2662_vm5, %v4634_v32 }
0x1102   : > { %5170 = vmatprep.mubr.bf16.mxu0 %v7689_v2 }
0x11c1   : > { %v4678_v44 = vpop.f32.mrf.mxu0 }
0x11c2   : > { %v4679_v8 = vadd.f32 %v4678_v44, %v4639_v6 }
0x11c3   : > { %v4680_v36 = vpop.f32.mrf.mxu0 }
0x11c4   : > { %v4685_v19 = vmul.f32 1.442695, %v4679_v8  ;;  %v8995_v31 = vadd.f32 %v4680_v36, %v4639_v6 }
0x11c5   : > { %v4682_v20 = vpop.f32.mrf.mxu0 }
0x11c6   : > { %v4687_v54 = vmul.f32 1.442695, %v8995_v31  ;;  %7308 = vpow2.f32 %v4685_v19  ;;  %v4711_v50 = vcombine.low %v4679_v8, %v8995_v31 }
0x11c7   : > { %v4683_v21 = vpop.f32.mrf.mxu0 }
0x11c8   : > { %7310 = vpow2.f32 %v4687_v54  ;;  %v4718_v41 = vrot.slane %v4711_v50, %v8410_v46  ;;  %v4916_v50 = vld [vmem:[%s9790_s1 + $0x8] sm:$0xff] }
0x11ca   : > { %v4725_v25 = vrot.slane %v4718_v41, %v8410_v46  ;;  %v5098_v41 = vld [vmem:[%s9791_s5] sm:$0xff] }
0x11d3   : > { %v7309_v22 = vpop.eup %7308 }
0x11d5   : > { %v8998_v42 = vpop.eup %7310 }
0x11d6   : > { %v4691_v29 = vcombine.low %v7309_v22, %v8998_v42 }
0x11d8   : > { %v4698_v35 = vrot.slane %v4691_v29, %v8410_v46  ;;  %v4917_v29 = vld [vmem:[%s9790_s1 + $0x10] sm:$0xff] }
0x11da   : > { %v4699_v47 = vcombine.high %v4698_v35, %v4698_v35  ;;  %v4915_v35 = vld [vmem:[%s9790_s1] sm:$0xff] }
0x11dc   : > { %v4706_v17 = vrot.slane %v4699_v47, %v8410_v46  ;;  %v5099_v47 = vld [vmem:[%s9791_s5 + $0x8] sm:$0xff] }
0x11de   : > { %v4708_v51 = vmul.f32 %v4706_v17, %v8713_v7 }
0x11e0   : > { %v4727_v26 = vadd.f32 %v4725_v25, %v4708_v51 }
0x11e2   : > { %v4756_v37 = vrot.slane %v4727_v26, %v8083_v11  ;;  %v4760_v16 = vrot.slane %v4727_v26, %v8086_v12 }
0x11e4   : > { %v4769_v15 = vmul.f32 %v4756_v37, %v4750_v0  ;;  %v4770_v60 = vmul.f32 %v4760_v16, %v4750_v0  ;;  %v4767_v53 = vmul.f32 %v4756_v37, %v4745_v27  ;;  %v4768_v14 = vmul.f32 %v4760_v16, %v4745_v27  ;;  %v4918_v0 = vld [vmem:[%s9790_s1 + $0x18] sm:$0xff]  ;;  %s9792_s1 = sld [smem:[#allocation42_spill]] }
0x11e5   : > { %v4765_v18 = vmul.f32 %v4756_v37, %v4740_v56  ;;  %v4766_v3 = vmul.f32 %v4760_v16, %v4740_v56  ;;  %v4763_v62 = vmul.f32 %v4756_v37, %v4735_v49  ;;  %v4764_v63 = vmul.f32 %v4760_v16, %v4735_v49 }
0x11e6   : > { %v9009_v7 = vadd.f32 %v4793_v13, %v4769_v15  ;;  %v9011_v46 = vadd.f32 %v4793_v13, %v4770_v60  ;;  %v9013_v1 = vadd.f32 %v4788_v55, %v4767_v53  ;;  %v9015_v58 = vadd.f32 %v4788_v55, %v4768_v14  ;;  %v5101_v55 = vld [vmem:[%s9791_s5 + $0x18] sm:$0xff]  ;;  %v5100_v13 = vld [vmem:[%s9791_s5 + $0x10] sm:$0xff]  ;;  %s9795_s5 = sld [smem:[#allocation49_spill]] }
0x11e7   : > { %v9017_v11 = vadd.f32 %v4783_v10, %v4765_v18  ;;  %v9019_v12 = vadd.f32 %v4783_v10, %v4766_v3  ;;  %v9021_v61 = vadd.f32 %v4778_v43, %v4763_v62  ;;  %v9023_v28 = vadd.f32 %v4778_v43, %v4764_v63 }
0x11e8   : > { %v4809_v4 = vsel %vm8091_vm1, %v9009_v7, 0.0  ;;  %v4810_v40 = vsel %vm8095_vm2, %v9011_v46, 0.0  ;;  %v4807_v38 = vsel %vm8091_vm1, %v9013_v1, 0.0  ;;  %v4808_v5 = vsel %vm8095_vm2, %v9015_v58, 0.0 }
0x11e9   : > { %v6958_v39 = vpack.c.bf16 %v4810_v40, %v4809_v4  ;;  %v6957_v32 = vpack.c.bf16 %v4808_v5, %v4807_v38  ;;  %v4805_v6 = vsel %vm8091_vm1, %v9017_v11, 0.0  ;;  %v4806_v44 = vsel %vm8095_vm2, %v9019_v12, 0.0 }
0x11ea   : > { %v6956_v8 = vpack.c.bf16 %v4806_v44, %v4805_v6  ;;  %v4803_v36 = vsel %vm8091_vm1, %v9021_v61, 0.0  ;;  %v4804_v19 = vsel %vm8095_vm2, %v9023_v28, 0.0  ;;  %v7478_v54 = vpack.c.bf16 %v9011_v46, %v9015_v58 }
0x11eb   : > { %4873 = vrot.lane.b32.xlu0 %v6958_v39, %s9775_s18  ;;  %4871 = vrot.lane.b32.xlu1 %v6957_v32, %s9775_s18  ;;  %v6955_v20 = vpack.c.bf16 %v4804_v19, %v4803_v36  ;;  %v7481_v21 = vpack.c.bf16 %v9009_v7, %v9013_v1  ;;  %v7485_v22 = vpack.c.bf16 %v9019_v12, %v9023_v28 }
0x11ec   : > { %7479 = vmatprep.subr.msk.bf16.mxu1 %vm8144_vm3, %v7478_v54  ;;  %v7489_v27 = vpack.c.bf16 %v9017_v11, %v9021_v61 }
0x11ed   : > { %7482 = vmatpush1.bf16.msk.msra.mxu1 %vm8155_vm4, %v7481_v21 }
0x11ee   : > { %7486 = vmatprep.subr.msk.bf16.mxu1 %vm8144_vm3, %v7485_v22 }
0x11ef   : > { %4869 = vrot.lane.b32.xlu0 %v6956_v8, %s9775_s18  ;;  %4867 = vrot.lane.b32.xlu1 %v6955_v20, %s9775_s18 }
0x11f1   : > { %7490 = vmatpush1.bf16.msk.msra.mxu1 %vm8155_vm4, %v7489_v27 }
0x11f3   : > { %4849 = vrot.lane.b32.xlu0 %v6958_v39, %s9778_s3  ;;  %4847 = vrot.lane.b32.xlu1 %v6957_v32, %s9778_s3 }
0x11f7   : > { %4845 = vrot.lane.b32.xlu0 %v6956_v8, %s9778_s3  ;;  %4843 = vrot.lane.b32.xlu1 %v6955_v20, %s9778_s3 }
0x11fb   : > { %4936 = vperm.xlu0 %7078, %v4918_v0   ;;  %4931 = vperm.xlu1 %7079, %v4917_v29  }
0x11ff   : > { %4926 = vperm.xlu0 %7078, %v4916_v50   ;;  %4921 = vperm.xlu1 %7079, %v4915_v35  }
0x1203   : > { %5119 = vperm.xlu0 %7078, %v5101_v55   ;;  %5114 = vperm.xlu1 %7079, %v5100_v13  }
0x1207   : > { %5109 = vperm.xlu0 %7078, %v5099_v47   ;;  %5104 = vperm.xlu1 %7079, %v5098_v41   ;;  %v7160_v47 = vld [vmem:[%s9792_s1] sm:$0xff]   ;;  %v7161_v41 = vld [vmem:[%s9792_s1 + $0x8] sm:$0xff]   ;;  %s9793_s1 = sld [smem:[#allocation44_spill]] }
0x125d   : > { %v4874_v17 = vpop.permute.xlu0 %4873  ;;  %v4872_v51 = vpop.permute.xlu1 %4871 }
0x125e   : > { %v4878_v25 = vrot.slane %v4874_v17, 4  ;;  %v4877_v49 = vrot.slane %v4872_v51, 4 }
0x1260   : > { %v4882_v56 = vsel %vm1903_vm7, %v4878_v25, %v4874_v17  ;;  %v4881_v26 = vsel %vm1903_vm7, %v4877_v49, %v4872_v51 }
0x1261   : > { %4890 = vst.msk [vmem:[#allocation2 + $0x38] sm:$0xff] %vm8186_vm8, %v4882_v56  ;;  %4889 = vst.msk [vmem:[#allocation2 + $0x30] sm:$0xff] %vm8186_vm8, %v4881_v26  ;;  %v4870_v37 = vpop.permute.xlu0 %4869  ;;  %v4868_v16 = vpop.permute.xlu1 %4867 }
0x1262   : > { %v4876_v15 = vrot.slane %v4870_v37, 4  ;;  %v4875_v60 = vrot.slane %v4868_v16, 4 }
0x1264   : > { %v4880_v53 = vsel %vm1903_vm7, %v4876_v15, %v4870_v37  ;;  %v4879_v14 = vsel %vm1903_vm7, %v4875_v60, %v4868_v16 }
0x1265   : > { %4888 = vst.msk [vmem:[#allocation2 + $0x28] sm:$0xff] %vm8186_vm8, %v4880_v53  ;;  %4887 = vst.msk [vmem:[#allocation2 + $0x20] sm:$0xff] %vm8186_vm8, %v4879_v14  ;;  %v4850_v18 = vpop.permute.xlu0 %4849  ;;  %v4848_v3 = vpop.permute.xlu1 %4847 }
0x1266   : > { %v4854_v62 = vrot.slane %v4850_v18, 4  ;;  %v4853_v63 = vrot.slane %v4848_v3, 4 }
0x1268   : > { %v4858_v43 = vsel %vm1875_vm10, %v4854_v62, %v4850_v18  ;;  %v4857_v10 = vsel %vm1875_vm10, %v4853_v63, %v4848_v3  ;;  %v4909_v4 = vld [vmem:[#allocation2 + $0x30] sm:$0xff]  ;;  %v4910_v40 = vld [vmem:[#allocation2 + $0x38] sm:$0xff] }
0x1269   : > { %v7152_v38 = vld [vmem:[#allocation2 + $0x34] ss:$8 sps:$4 sm:$0xff]   ;;  %4866 = vst.msk [vmem:[#allocation2 + $0x18] sm:$0xff] %vm8203_vm11, %v4858_v43  ;;  %4865 = vst.msk [vmem:[#allocation2 + $0x10] sm:$0xff] %vm8203_vm11, %v4857_v10  ;;  %v4846_v5 = vpop.permute.xlu0 %4845  ;;  %v4844_v39 = vpop.permute.xlu1 %4843  ;;  %v6842_v32 = vcombine.low %v4909_v4, %v4910_v40 }
0x126a   : > { %5225 = vst.msk [vmem:[#allocation2 + $0x30] sm:$0xf] %vm1834_vm0, %v7689_v2  ;;  %5226 = vst.msk [vmem:[#allocation2 + $0x38] sm:$0xf] %vm1834_vm0, %v7689_v2  ;;  %v4852_v6 = vrot.slane %v4846_v5, 4  ;;  %v4851_v44 = vrot.slane %v4844_v39, 4  ;;  %5023 = vmatprep.subr.bf16.mxu1 %v7152_v38 }
0x126b   : > { %5024 = vmatpush1.bf16.msra.mxu1 %v6842_v32 }
0x126c   : > { %v4856_v8 = vsel %vm1875_vm10, %v4852_v6, %v4846_v5  ;;  %v4855_v36 = vsel %vm1875_vm10, %v4851_v44, %v4844_v39  ;;  %v4907_v19 = vld [vmem:[#allocation2 + $0x20] sm:$0xff]  ;;  %v4908_v20 = vld [vmem:[#allocation2 + $0x28] sm:$0xff] }
0x126d   : > { %v7154_v54 = vld [vmem:[#allocation2 + $0x24] ss:$8 sps:$4 sm:$0xff]   ;;  %4864 = vst.msk [vmem:[#allocation2 + $0x8] sm:$0xff] %vm8203_vm11, %v4856_v8  ;;  %4863 = vst.msk [vmem:[#allocation2] sm:$0xff] %vm8203_vm11, %v4855_v36  ;;  %v6840_v21 = vcombine.low %v4907_v19, %v4908_v20 }
0x126e   : > { %5223 = vst.msk [vmem:[#allocation2 + $0x20] sm:$0xf] %vm1834_vm0, %v7689_v2  ;;  %5224 = vst.msk [vmem:[#allocation2 + $0x28] sm:$0xf] %vm1834_vm0, %v7689_v2  ;;  %5025 = vmatprep.subr.bf16.mxu1 %v7154_v54 }
0x126f   : > { %5026 = vmatpush1.bf16.msra.mxu1 %v6840_v21 }
0x1270   : > { %v4905_v22 = vld [vmem:[#allocation2 + $0x10] sm:$0xff]  ;;  %v4906_v27 = vld [vmem:[#allocation2 + $0x18] sm:$0xff] }
0x1271   : > { %v7156_v0 = vld [vmem:[#allocation2 + $0x14] ss:$8 sps:$4 sm:$0xff]   ;;  %5221 = vst.msk [vmem:[#allocation2 + $0x10] sm:$0xf] %vm1834_vm0, %v7689_v2  ;;  %5222 = vst.msk [vmem:[#allocation2 + $0x18] sm:$0xf] %vm1834_vm0, %v7689_v2  ;;  %v6838_v29 = vcombine.low %v4905_v22, %v4906_v27 }
0x1272   : > { %5027 = vmatprep.subr.bf16.mxu1 %v7156_v0 }
0x1273   : > { %5028 = vmatpush1.bf16.msra.mxu1 %v6838_v29 }
0x1274   : > { %v4903_v50 = vld [vmem:[#allocation2] sm:$0xff]  ;;  %v4904_v35 = vld [vmem:[#allocation2 + $0x8] sm:$0xff] }
0x1275   : > { %v7158_v55 = vld [vmem:[#allocation2 + $0x4] ss:$8 sps:$4 sm:$0xff]   ;;  %5219 = vst.msk [vmem:[#allocation2] sm:$0xf] %vm1834_vm0, %v7689_v2  ;;  %5220 = vst.msk [vmem:[#allocation2 + $0x8] sm:$0xf] %vm1834_vm0, %v7689_v2  ;;  %v6836_v13 = vcombine.low %v4903_v50, %v4904_v35 }
0x1276   : > { %5029 = vmatprep.subr.bf16.mxu1 %v7158_v55  ;;  %v4932_v56 = vpop.permute.xlu1 %4931  ;;  %v4937_v15 = vpop.permute.xlu0 %4936 }
0x1277   : > { %5030 = vmatpush1.bf16.msra.mxu1 %v6836_v13 }
0x127a   : > { %6848 = vmatmul.mubr.msk.bf16.vlgmr.msra.gmra.mxu1 %vm2036_vm12, %v7160_v47  ;;  %v4922_v10 = vpop.permute.xlu1 %4921  ;;  %v4927_v4 = vpop.permute.xlu0 %4926 }
0x127b   : > { %5057 = vmatprep.mubr.bf16.mxu1 %v7689_v2 }
0x1282   : > { %6849 = vmatmul.mubr.msk.bf16.gmra.mxu1 %vm2036_vm12, %v7161_v41 }
0x1283   : > { %5574 = vmatprep.mubr.bf16.mxu1 %v7689_v2 }
0x133a   : > { %v5049_v17 = vpop.f32.mrf.mxu1 }
0x133b   : > { %v5050_v32 = vadd.f32 %v5049_v17, %v4922_v10 }
0x133c   : > { %v5051_v51 = vpop.f32.mrf.mxu1 }
0x133d   : > { %v5052_v40 = vadd.f32 %v5051_v51, %v4922_v10 }
0x133e   : > { %v5053_v25 = vpop.f32.mrf.mxu1 }
0x133f   : > { %v5054_v5 = vadd.f32 %v5053_v25, %v4927_v4 }
0x1340   : > { %v5055_v49 = vpop.f32.mrf.mxu1 }
0x1341   : > { %v5056_v39 = vadd.f32 %v5055_v49, %v4927_v4 }
0x1342   : > { %v5059_v26 = vpop.f32.mrf.mxu1 }
0x1343   : > { %v5060_v37 = vadd.f32 %v5059_v26, %v4932_v56  ;;  %v7163_v26 = vld [vmem:[%s9793_s1 + $0x8] sm:$0xff]  }
0x1344   : > { %v5061_v16 = vpop.f32.mrf.mxu1 }
0x1345   : > { %v5072_v60 = vmul.f32 0.5, %v5060_v37  ;;  %v5062_v53 = vadd.f32 %v5061_v16, %v4932_v56  ;;  %v7162_v56 = vld [vmem:[%s9793_s1] sm:$0xff]   ;;  %v5115_v37 = vpop.permute.xlu1 %5114  ;;  %v5120_v16 = vpop.permute.xlu0 %5119  ;;  %s9794_s1 = sld [smem:[#allocation47_spill]] }
0x1346   : > { %v5063_v14 = vpop.f32.mrf.mxu1 }
0x1347   : > { %v5073_v18 = vmul.f32 0.5, %v5062_v53  ;;  %v5064_v3 = vadd.f32 %v5063_v14, %v4937_v15  ;;  %7312 = vtanh.f32 %v5072_v60 }
0x1348   : > { %v5065_v62 = vpop.f32.mrf.mxu1 }
0x1349   : > { %7314 = vtanh.f32 %v5073_v18  ;;  %v5074_v63 = vmul.f32 0.5, %v5064_v3  ;;  %v5066_v43 = vadd.f32 %v5065_v62, %v4937_v15  ;;  %v5105_v15 = vpop.permute.xlu1 %5104  ;;  %v5110_v62 = vpop.permute.xlu0 %5109 }
0x134b   : > { %7316 = vtanh.f32 %v5074_v63  ;;  %v5075_v38 = vmul.f32 0.5, %v5066_v43 }
0x134d   : > { %7318 = vtanh.f32 %v5075_v38 }
0x134e   : > { %7320 = vtanh.f32 %v5052_v40 }
0x134f   : > { %7322 = vtanh.f32 %v5054_v5 }
0x1350   : > { %7324 = vtanh.f32 %v5056_v39 }
0x1351   : > { %7326 = vtanh.f32 %v5050_v32 }
0x1354   : > { %v7313_v6 = vpop.eup %7312 }
0x1355   : > { %v5080_v19 = vmul.f32 0.5, %v7313_v6 }
0x1356   : > { %v7315_v44 = vpop.eup %7314 }
0x1357   : > { %v5081_v8 = vmul.f32 0.5, %v7315_v44  ;;  %v5084_v29 = vadd.f32 0.5, %v5080_v19 }
0x1358   : > { %v7317_v36 = vpop.eup %7316 }
0x1359   : > { %v5082_v20 = vmul.f32 0.5, %v7317_v36  ;;  %v5085_v21 = vadd.f32 0.5, %v5081_v8 }
0x135a   : > { %v7319_v54 = vpop.eup %7318 }
0x135b   : > { %v5086_v22 = vadd.f32 0.5, %v5082_v20  ;;  %v5083_v27 = vmul.f32 0.5, %v7319_v54  ;;  %v7321_v0 = vpop.eup %7320 }
0x135c   : > { %v7323_v50 = vpop.eup %7322  ;;  %v5089_v41 = vmul.f32 %v7321_v0, %v5085_v21 }
0x135d   : > { %v5087_v35 = vadd.f32 0.5, %v5083_v27  ;;  %v7325_v55 = vpop.eup %7324  ;;  %v5090_v13 = vmul.f32 %v7323_v50, %v5086_v22 }
0x135e   : > { %v7327_v47 = vpop.eup %7326 }
0x135f   : > { %v5091_v17 = vmul.f32 %v7325_v55, %v5087_v35  ;;  %v5088_v51 = vmul.f32 %v7327_v47, %v5084_v29 }
0x1361   : > { %v5093_v25 = vpack.c.bf16 %v5091_v17, %v5089_v41  ;;  %v5092_v49 = vpack.c.bf16 %v5090_v13, %v5088_v51 }
0x1363   : > { %5152 = vmatprep.subr.bf16.mxu0 %v5093_v25 }
0x1364   : > { %5153 = vmatpush1.bf16.msra.mxu0 %v5092_v49 }
0x1367   : > { %6852 = vmatmul.mubr.msk.bf16.vlgmr.msra.gmra.mxu0 %vm2160_vm13, %v7162_v56 }
0x1368   : > { %5180 = vmatprep.mubr.bf16.mxu0 %v7689_v2 }
0x136f   : > { %6853 = vmatmul.mubr.msk.bf16.gmra.mxu0 %vm2160_vm13, %v7163_v26 }
0x1370   : > { %5451 = vmatprep.mubr.bf16.mxu0 %v7689_v2 }
0x1427   : > { %v5172_v60 = vpop.f32.mrf.mxu0 }
0x1428   : > { %v5173_v53 = vadd.f32 %v5172_v60, %v5105_v15  ;;  %v5322_v60 = vld [vmem:[%s9794_s1 + $0x18] sm:$0xff] }
0x1429   : > { %v5174_v14 = vpop.f32.mrf.mxu0 }
0x142a   : > { %v5191_v18 = vadd.f32 %v5173_v53, %v9021_v61  ;;  %v5175_v3 = vadd.f32 %v5174_v14, %v5105_v15  ;;  %v5321_v15 = vld [vmem:[%s9794_s1 + $0x10] sm:$0xff]  ;;  %v5319_v53 = vld [vmem:[%s9794_s1] sm:$0xff]  ;;  %v5320_v14 = vld [vmem:[%s9794_s1 + $0x8] sm:$0xff]  ;;  %s9796_s1 = sld [smem:[#allocation46_spill]] }
0x142b   : > { %v5176_v63 = vpop.f32.mrf.mxu0 }
0x142c   : > { %v9134_v43 = vmul.f32 0.70710677, %v5191_v18  ;;  %v5192_v10 = vadd.f32 %v5175_v3, %v9023_v28  ;;  %v5177_v4 = vadd.f32 %v5176_v63, %v5110_v62  ;;  %v5504_v18 = vld [vmem:[%s9795_s5 + $0x10] sm:$0xff]  ;;  %v5505_v3 = vld [vmem:[%s9795_s5 + $0x18] sm:$0xff]  ;;  %v5503_v63 = vld [vmem:[%s9795_s5 + $0x8] sm:$0xff] }
0x142d   : > { %v5178_v40 = vpop.f32.mrf.mxu0 }
0x142e   : > { %v9137_v38 = vmul.f32 0.70710677, %v5192_v10  ;;  %v5193_v5 = vadd.f32 %v5177_v4, %v9017_v11  ;;  %v5179_v39 = vadd.f32 %v5178_v40, %v5110_v62  ;;  %v5207_v32 = vsel %vm8091_vm1, %v9134_v43, 0.0  ;;  %v5502_v62 = vld [vmem:[%s9795_s5] sm:$0xff]  ;;  %s9799_s5 = sld [smem:[#allocation53_spill]] }
0x142f   : > { %v5182_v6 = vpop.f32.mrf.mxu0 }
0x1430   : > { %v5208_v61 = vsel %vm8095_vm2, %v9137_v38, 0.0  ;;  %v9146_v44 = vmul.f32 0.70710677, %v5193_v5  ;;  %v5194_v28 = vadd.f32 %v5179_v39, %v9019_v12  ;;  %v5183_v8 = vadd.f32 %v5182_v6, %v5115_v37 }
0x1431   : > { %v6959_v36 = vpack.c.bf16 %v5208_v61, %v5207_v32  ;;  %v5184_v19 = vpop.f32.mrf.mxu0 }
0x1432   : > { %v9149_v20 = vmul.f32 0.70710677, %v5194_v28  ;;  %v5195_v11 = vadd.f32 %v5183_v8, %v9013_v1  ;;  %v5185_v54 = vadd.f32 %v5184_v19, %v5115_v37  ;;  %v5209_v21 = vsel %vm8091_vm1, %v9146_v44, 0.0 }
0x1433   : > { %v5186_v22 = vpop.f32.mrf.mxu0 }
0x1434   : > { %v5210_v27 = vsel %vm8095_vm2, %v9149_v20, 0.0  ;;  %v9158_v0 = vmul.f32 0.70710677, %v5195_v11  ;;  %v5196_v12 = vadd.f32 %v5185_v54, %v9015_v58  ;;  %v5187_v29 = vadd.f32 %v5186_v22, %v5120_v16 }
0x1435   : > { %v6960_v50 = vpack.c.bf16 %v5210_v27, %v5209_v21  ;;  %v5188_v35 = vpop.f32.mrf.mxu0  ;;  %v7501_v37 = vpack.c.bf16 %v9149_v20, %v9137_v38 }
0x1436   : > { %v9161_v55 = vmul.f32 0.70710677, %v5196_v12  ;;  %v5197_v1 = vadd.f32 %v5187_v29, %v9009_v7  ;;  %v5189_v13 = vadd.f32 %v5188_v35, %v5120_v16  ;;  %v5211_v47 = vsel %vm8091_vm1, %v9158_v0, 0.0 }
0x1437   : > { %v7505_v16 = vpack.c.bf16 %v9146_v44, %v9134_v43 }
0x1438   : > { %v5212_v41 = vsel %vm8095_vm2, %v9161_v55, 0.0  ;;  %v9170_v17 = vmul.f32 0.70710677, %v5197_v1  ;;  %v5198_v58 = vadd.f32 %v5189_v13, %v9011_v46 }
0x1439   : > { %v6961_v51 = vpack.c.bf16 %v5212_v41, %v5211_v47 }
0x143a   : > { %v9173_v25 = vmul.f32 0.70710677, %v5198_v58  ;;  %v5213_v7 = vsel %vm8091_vm1, %v9170_v17, 0.0  ;;  %v7497_v26 = vpack.c.bf16 %v9170_v17, %v9158_v0 }
0x143b   : > { %5275 = vrot.lane.b32.xlu1 %v6961_v51, %s9778_s3 }
0x143c   : > { %v5214_v49 = vsel %vm8095_vm2, %v9173_v25, 0.0  ;;  %v7494_v46 = vpack.c.bf16 %v9173_v25, %v9161_v55 }
0x143d   : > { %v6962_v56 = vpack.c.bf16 %v5214_v49, %v5213_v7 }
0x143e   : > { %7495 = vmatprep.subr.msk.bf16.mxu0 %vm8144_vm3, %v7494_v46 }
0x143f   : > { %5277 = vrot.lane.b32.xlu0 %v6962_v56, %s9778_s3  ;;  %5271 = vrot.lane.b32.xlu1 %v6959_v36, %s9778_s3 }
0x1440   : > { %7498 = vmatpush1.bf16.msk.msra.mxu0 %vm8155_vm4, %v7497_v26 }
0x1441   : > { %7502 = vmatprep.subr.msk.bf16.mxu0 %vm8144_vm3, %v7501_v37 }
0x1443   : > { %5273 = vrot.lane.b32.xlu0 %v6960_v50, %s9778_s3  ;;  %5251 = vrot.lane.b32.xlu1 %v6961_v51, %s9782_s2 }
0x1444   : > { %7506 = vmatpush1.bf16.msk.msra.mxu0 %vm8155_vm4, %v7505_v16 }
0x1447   : > { %5253 = vrot.lane.b32.xlu0 %v6962_v56, %s9782_s2  ;;  %5247 = vrot.lane.b32.xlu1 %v6959_v36, %s9782_s2 }
0x144b   : > { %5249 = vrot.lane.b32.xlu0 %v6960_v50, %s9782_s2  ;;  %5335 = vperm.xlu1 %7079, %v5321_v15  }
0x144f   : > { %5340 = vperm.xlu0 %7078, %v5322_v60   ;;  %5325 = vperm.xlu1 %7079, %v5319_v53  }
0x1453   : > { %5330 = vperm.xlu0 %7078, %v5320_v14   ;;  %5518 = vperm.xlu1 %7079, %v5504_v18  }
0x1457   : > { %5523 = vperm.xlu0 %7078, %v5505_v3   ;;  %5508 = vperm.xlu1 %7079, %v5502_v62   ;;  %v7172_v62 = vld [vmem:[%s9796_s1] sm:$0xff]  }
0x145b   : > { %5513 = vperm.xlu0 %7078, %v5503_v63   ;;  %v7173_v63 = vld [vmem:[%s9796_s1 + $0x8] sm:$0xff]   ;;  %s9797_s1 = sld [smem:[#allocation48_spill]] }
0x14ad   : > { %v5276_v10 = vpop.permute.xlu1 %5275 }
0x14ae   : > { %v5281_v4 = vrot.slane %v5276_v10, 4 }
0x14b0   : > { %v5285_v40 = vsel %vm1875_vm10, %v5281_v4, %v5276_v10 }
0x14b1   : > { %5293 = vst.msk [vmem:[#allocation2 + $0x30] sm:$0xff] %vm8203_vm11, %v5285_v40  ;;  %v5278_v5 = vpop.permute.xlu0 %5277  ;;  %v5272_v39 = vpop.permute.xlu1 %5271 }
0x14b2   : > { %v5282_v32 = vrot.slane %v5278_v5, 4  ;;  %v5279_v6 = vrot.slane %v5272_v39, 4 }
0x14b4   : > { %v5286_v61 = vsel %vm1875_vm10, %v5282_v32, %v5278_v5  ;;  %v5283_v28 = vsel %vm1875_vm10, %v5279_v6, %v5272_v39 }
0x14b5   : > { %5294 = vst.msk [vmem:[#allocation2 + $0x38] sm:$0xff] %vm8203_vm11, %v5286_v61  ;;  %5291 = vst.msk [vmem:[#allocation2 + $0x20] sm:$0xff] %vm8203_vm11, %v5283_v28  ;;  %v5274_v8 = vpop.permute.xlu0 %5273  ;;  %v5252_v36 = vpop.permute.xlu1 %5251 }
0x14b6   : > { %v5280_v19 = vrot.slane %v5274_v8, 4  ;;  %v5257_v11 = vrot.slane %v5252_v36, 4 }
0x14b8   : > { %v5284_v54 = vsel %vm1875_vm10, %v5280_v19, %v5274_v8  ;;  %v5261_v21 = vsel %vm2288_vm15, %v5257_v11, %v5252_v36  ;;  %v5313_v1 = vld [vmem:[#allocation2 + $0x30] sm:$0xff] }
0x14b9   : > { %5292 = vst.msk [vmem:[#allocation2 + $0x28] sm:$0xff] %vm8203_vm11, %v5284_v54  ;;  %v5254_v22 = vpop.permute.xlu0 %5253  ;;  %v5248_v27 = vpop.permute.xlu1 %5247 }
0x14ba   : > { %5269 = vst.msk [vmem:[#allocation2 + $0x10] sm:$0xff] %vm8346_vm6, %v5261_v21  ;;  %v5258_v12 = vrot.slane %v5254_v22, 4  ;;  %v5255_v29 = vrot.slane %v5248_v27, 4 }
0x14bb   : > { %5629 = vst.msk [vmem:[#allocation2 + $0x30] sm:$0xf] %vm1834_vm0, %v7689_v2 }
0x14bc   : > { %v5262_v50 = vsel %vm2288_vm15, %v5258_v12, %v5254_v22  ;;  %v5259_v35 = vsel %vm2288_vm15, %v5255_v29, %v5248_v27  ;;  %v5314_v13 = vld [vmem:[#allocation2 + $0x38] sm:$0xff]  ;;  %v5311_v49 = vld [vmem:[#allocation2 + $0x20] sm:$0xff] }
0x14bd   : > { %v7164_v47 = vld [vmem:[#allocation2 + $0x34] ss:$8 sps:$4 sm:$0xff]   ;;  %5270 = vst.msk [vmem:[#allocation2 + $0x18] sm:$0xff] %vm8346_vm6, %v5262_v50  ;;  %5267 = vst.msk [vmem:[#allocation2] sm:$0xff] %vm8346_vm6, %v5259_v35  ;;  %v5250_v41 = vpop.permute.xlu0 %5249  ;;  %v6866_v58 = vcombine.low %v5313_v1, %v5314_v13 }
0x14be   : > { %5630 = vst.msk [vmem:[#allocation2 + $0x38] sm:$0xf] %vm1834_vm0, %v7689_v2  ;;  %v5256_v51 = vrot.slane %v5250_v41, 4  ;;  %5427 = vmatprep.subr.bf16.mxu0 %v7164_v47  ;;  %5627 = vst.msk [vmem:[#allocation2 + $0x20] sm:$0xf] %vm1834_vm0, %v7689_v2 }
0x14bf   : > { %5428 = vmatpush1.bf16.msra.mxu0 %v6866_v58 }
0x14c0   : > { %v5260_v7 = vsel %vm2288_vm15, %v5256_v51, %v5250_v41  ;;  %v5312_v56 = vld [vmem:[#allocation2 + $0x28] sm:$0xff] }
0x14c1   : > { %v7166_v46 = vld [vmem:[#allocation2 + $0x24] ss:$8 sps:$4 sm:$0xff]   ;;  %5268 = vst.msk [vmem:[#allocation2 + $0x8] sm:$0xff] %vm8346_vm6, %v5260_v7  ;;  %v6864_v26 = vcombine.low %v5311_v49, %v5312_v56  ;;  %v5309_v37 = vld [vmem:[#allocation2 + $0x10] sm:$0xff] }
0x14c2   : > { %5628 = vst.msk [vmem:[#allocation2 + $0x28] sm:$0xf] %vm1834_vm0, %v7689_v2  ;;  %5429 = vmatprep.subr.bf16.mxu0 %v7166_v46  ;;  %5625 = vst.msk [vmem:[#allocation2 + $0x10] sm:$0xf] %vm1834_vm0, %v7689_v2 }
0x14c3   : > { %5430 = vmatpush1.bf16.msra.mxu0 %v6864_v26 }
0x14c4   : > { %v5310_v16 = vld [vmem:[#allocation2 + $0x18] sm:$0xff]  ;;  %v5307_v53 = vld [vmem:[#allocation2] sm:$0xff] }
0x14c5   : > { %v7168_v15 = vld [vmem:[#allocation2 + $0x14] ss:$8 sps:$4 sm:$0xff]   ;;  %5626 = vst.msk [vmem:[#allocation2 + $0x18] sm:$0xf] %vm1834_vm0, %v7689_v2  ;;  %v6862_v60 = vcombine.low %v5309_v37, %v5310_v16  ;;  %5623 = vst.msk [vmem:[#allocation2] sm:$0xf] %vm1834_vm0, %v7689_v2 }
0x14c6   : > { %5431 = vmatprep.subr.bf16.mxu0 %v7168_v15  ;;  %v5336_v39 = vpop.permute.xlu1 %5335 }
0x14c7   : > { %5432 = vmatpush1.bf16.msra.mxu0 %v6862_v60 }
0x14c8   : > { %v5308_v14 = vld [vmem:[#allocation2 + $0x8] sm:$0xff] }
0x14c9   : > { %v7170_v18 = vld [vmem:[#allocation2 + $0x4] ss:$8 sps:$4 sm:$0xff]   ;;  %5624 = vst.msk [vmem:[#allocation2 + $0x8] sm:$0xf] %vm1834_vm0, %v7689_v2  ;;  %v6860_v3 = vcombine.low %v5307_v53, %v5308_v14 }
0x14ca   : > { %5433 = vmatprep.subr.bf16.mxu0 %v7170_v18  ;;  %v5341_v28 = vpop.permute.xlu0 %5340  ;;  %v5326_v12 = vpop.permute.xlu1 %5325 }
0x14cb   : > { %5434 = vmatpush1.bf16.msra.mxu0 %v6860_v3 }
0x14ce   : > { %6872 = vmatmul.mubr.msk.bf16.vlgmr.msra.gmra.mxu0 %vm2036_vm12, %v7172_v62  ;;  %v5331_v29 = vpop.permute.xlu0 %5330 }
0x14cf   : > { %5461 = vmatprep.mubr.bf16.mxu0 %v7689_v2 }
0x14d6   : > { %6873 = vmatmul.mubr.msk.bf16.gmra.mxu0 %vm2036_vm12, %v7173_v63 }
0x14d7   : > { %5978 = vmatprep.mubr.bf16.mxu0 %v7689_v2 }
0x158e   : > { %v5453_v10 = vpop.f32.mrf.mxu0 }
0x158f   : > { %v5454_v47 = vadd.f32 %v5453_v10, %v5326_v12 }
0x1590   : > { %v5455_v4 = vpop.f32.mrf.mxu0 }
0x1591   : > { %v5456_v50 = vadd.f32 %v5455_v4, %v5326_v12 }
0x1592   : > { %v5457_v40 = vpop.f32.mrf.mxu0 }
0x1593   : > { %v5458_v1 = vadd.f32 %v5457_v40, %v5331_v29 }
0x1594   : > { %v5459_v5 = vpop.f32.mrf.mxu0 }
0x1595   : > { %v5460_v13 = vadd.f32 %v5459_v5, %v5331_v29 }
0x1596   : > { %v5463_v32 = vpop.f32.mrf.mxu0 }
0x1597   : > { %v5464_v6 = vadd.f32 %v5463_v32, %v5336_v39  ;;  %v7175_v32 = vld [vmem:[%s9797_s1 + $0x8] sm:$0xff]  }
0x1598   : > { %v5465_v61 = vpop.f32.mrf.mxu0 }
0x1599   : > { %v5476_v8 = vmul.f32 0.5, %v5464_v6  ;;  %v5466_v36 = vadd.f32 %v5465_v61, %v5336_v39  ;;  %v7174_v39 = vld [vmem:[%s9797_s1] sm:$0xff]   ;;  %v5519_v6 = vpop.permute.xlu1 %5518  ;;  %v5524_v61 = vpop.permute.xlu0 %5523  ;;  %s9798_s1 = sld [smem:[#allocation51_spill]] }
0x159a   : > { %v5467_v19 = vpop.f32.mrf.mxu0 }
0x159b   : > { %v5477_v11 = vmul.f32 0.5, %v5466_v36  ;;  %v5468_v54 = vadd.f32 %v5467_v19, %v5341_v28  ;;  %7328 = vtanh.f32 %v5476_v8 }
0x159c   : > { %v5469_v21 = vpop.f32.mrf.mxu0 }
0x159d   : > { %7330 = vtanh.f32 %v5477_v11  ;;  %v5478_v22 = vmul.f32 0.5, %v5468_v54  ;;  %v5470_v27 = vadd.f32 %v5469_v21, %v5341_v28  ;;  %v5509_v28 = vpop.permute.xlu1 %5508  ;;  %v5514_v21 = vpop.permute.xlu0 %5513 }
0x159f   : > { %7332 = vtanh.f32 %v5478_v22  ;;  %v5479_v35 = vmul.f32 0.5, %v5470_v27 }
0x15a1   : > { %7334 = vtanh.f32 %v5479_v35 }
0x15a2   : > { %7336 = vtanh.f32 %v5456_v50 }
0x15a3   : > { %7338 = vtanh.f32 %v5458_v1 }
0x15a4   : > { %7340 = vtanh.f32 %v5460_v13 }
0x15a5   : > { %7342 = vtanh.f32 %v5454_v47 }
0x15a8   : > { %v7329_v41 = vpop.eup %7328 }
0x15a9   : > { %v5484_v49 = vmul.f32 0.5, %v7329_v41 }
0x15aa   : > { %v7331_v58 = vpop.eup %7330 }
0x15ab   : > { %v5485_v51 = vmul.f32 0.5, %v7331_v58  ;;  %v5488_v60 = vadd.f32 0.5, %v5484_v49 }
0x15ac   : > { %v7333_v7 = vpop.eup %7332 }
0x15ad   : > { %v5486_v56 = vmul.f32 0.5, %v7333_v7  ;;  %v5489_v26 = vadd.f32 0.5, %v5485_v51 }
0x15ae   : > { %v7335_v46 = vpop.eup %7334 }
0x15af   : > { %v5490_v37 = vadd.f32 0.5, %v5486_v56  ;;  %v5487_v16 = vmul.f32 0.5, %v7335_v46  ;;  %v7337_v15 = vpop.eup %7336 }
0x15b0   : > { %v7339_v53 = vpop.eup %7338  ;;  %v5493_v63 = vmul.f32 %v7337_v15, %v5489_v26 }
0x15b1   : > { %v5491_v14 = vadd.f32 0.5, %v5487_v16  ;;  %v7341_v18 = vpop.eup %7340  ;;  %v5494_v3 = vmul.f32 %v7339_v53, %v5490_v37 }
0x15b2   : > { %v7343_v62 = vpop.eup %7342 }
0x15b3   : > { %v5495_v10 = vmul.f32 %v7341_v18, %v5491_v14  ;;  %v5492_v4 = vmul.f32 %v7343_v62, %v5488_v60 }
0x15b5   : > { %v5497_v40 = vpack.c.bf16 %v5495_v10, %v5493_v63  ;;  %v5496_v5 = vpack.c.bf16 %v5494_v3, %v5492_v4 }
0x15b7   : > { %5556 = vmatprep.subr.bf16.mxu1 %v5497_v40 }
0x15b8   : > { %5557 = vmatpush1.bf16.msra.mxu1 %v5496_v5 }
0x15bb   : > { %6876 = vmatmul.mubr.msk.bf16.vlgmr.msra.gmra.mxu1 %vm2160_vm13, %v7174_v39 }
0x15bc   : > { %5584 = vmatprep.mubr.bf16.mxu1 %v7689_v2 }
0x15c3   : > { %6877 = vmatmul.mubr.msk.bf16.gmra.mxu1 %vm2160_vm13, %v7175_v32 }
0x15c4   : > { %5855 = vmatprep.mubr.bf16.mxu1 %v7689_v2 }
0x167b   : > { %v5576_v8 = vpop.f32.mrf.mxu1 }
0x167c   : > { %v5577_v36 = vadd.f32 %v5576_v8, %v5509_v28  ;;  %v5726_v8 = vld [vmem:[%s9798_s1 + $0x18] sm:$0xff] }
0x167d   : > { %v5578_v19 = vpop.f32.mrf.mxu1 }
0x167e   : > { %v5595_v11 = vadd.f32 %v5577_v36, %v9134_v43  ;;  %v5579_v54 = vadd.f32 %v5578_v19, %v5509_v28  ;;  %v5725_v28 = vld [vmem:[%s9798_s1 + $0x10] sm:$0xff]  ;;  %v5723_v36 = vld [vmem:[%s9798_s1] sm:$0xff]  ;;  %v5724_v19 = vld [vmem:[%s9798_s1 + $0x8] sm:$0xff] }
0x167f   : > { %v5580_v22 = vpop.f32.mrf.mxu1 }
0x1680   : > { %v9266_v27 = vmul.f32 0.70710677, %v5595_v11  ;;  %v5596_v12 = vadd.f32 %v5579_v54, %v9137_v38  ;;  %v5581_v29 = vadd.f32 %v5580_v22, %v5514_v21  ;;  %v5908_v11 = vld [vmem:[%s9799_s5 + $0x10] sm:$0xff]  ;;  %v5909_v54 = vld [vmem:[%s9799_s5 + $0x18] sm:$0xff]  ;;  %v5907_v22 = vld [vmem:[%s9799_s5 + $0x8] sm:$0xff] }
0x1681   : > { %v5582_v50 = vpop.f32.mrf.mxu1 }
0x1682   : > { %v9269_v35 = vmul.f32 0.70710677, %v5596_v12  ;;  %v5597_v1 = vadd.f32 %v5581_v29, %v9146_v44  ;;  %v5583_v13 = vadd.f32 %v5582_v50, %v5514_v21  ;;  %v5611_v47 = vsel %vm8091_vm1, %v9266_v27, 0.0  ;;  %v5906_v21 = vld [vmem:[%s9799_s5] sm:$0xff]  ;;  %s9806_s5 = sld [smem:[#allocation57_spill]] }
0x1683   : > { %v5586_v41 = vpop.f32.mrf.mxu1 }
0x1684   : > { %v5612_v43 = vsel %vm8095_vm2, %v9269_v35, 0.0  ;;  %v9278_v58 = vmul.f32 0.70710677, %v5597_v1  ;;  %v5598_v38 = vadd.f32 %v5583_v13, %v9149_v20  ;;  %v5587_v51 = vadd.f32 %v5586_v41, %v5519_v6 }
0x1685   : > { %v6963_v7 = vpack.c.bf16 %v5612_v43, %v5611_v47  ;;  %v5588_v49 = vpop.f32.mrf.mxu1 }
0x1686   : > { %v9281_v56 = vmul.f32 0.70710677, %v5598_v38  ;;  %v5599_v44 = vadd.f32 %v5587_v51, %v9158_v0  ;;  %v5589_v46 = vadd.f32 %v5588_v49, %v5519_v6  ;;  %v5613_v26 = vsel %vm8091_vm1, %v9278_v58, 0.0 }
0x1687   : > { %v5590_v37 = vpop.f32.mrf.mxu1 }
0x1688   : > { %v5614_v16 = vsel %vm8095_vm2, %v9281_v56, 0.0  ;;  %v9290_v15 = vmul.f32 0.70710677, %v5599_v44  ;;  %v5600_v20 = vadd.f32 %v5589_v46, %v9161_v55  ;;  %v5591_v60 = vadd.f32 %v5590_v37, %v5524_v61  ;;  %v6313_v59 = vld [vmem:[%s9806_s5 + $0x18] sm:$0xff] }
0x1689   : > { %v6964_v53 = vpack.c.bf16 %v5614_v16, %v5613_v26  ;;  %v5592_v14 = vpop.f32.mrf.mxu1  ;;  %v7517_v6 = vpack.c.bf16 %v9281_v56, %v9269_v35 }
0x168a   : > { %v9293_v18 = vmul.f32 0.70710677, %v5600_v20  ;;  %v5601_v0 = vadd.f32 %v5591_v60, %v9170_v17  ;;  %v5593_v3 = vadd.f32 %v5592_v14, %v5524_v61  ;;  %v5615_v62 = vsel %vm8091_vm1, %v9290_v15, 0.0 }
0x168b   : > { %v7521_v61 = vpack.c.bf16 %v9278_v58, %v9266_v27 }
0x168c   : > { %v5616_v63 = vsel %vm8095_vm2, %v9293_v18, 0.0  ;;  %v9302_v10 = vmul.f32 0.70710677, %v5601_v0  ;;  %v5602_v55 = vadd.f32 %v5593_v3, %v9173_v25 }
0x168d   : > { %v6965_v4 = vpack.c.bf16 %v5616_v63, %v5615_v62 }
0x168e   : > { %v9305_v40 = vmul.f32 0.70710677, %v5602_v55  ;;  %v5617_v17 = vsel %vm8091_vm1, %v9302_v10, 0.0  ;;  %v7513_v32 = vpack.c.bf16 %v9302_v10, %v9290_v15 }
0x168f   : > { %5679 = vrot.lane.b32.xlu1 %v6965_v4, %s9775_s18 }
0x1690   : > { %v5618_v5 = vsel %vm8095_vm2, %v9305_v40, 0.0  ;;  %v7510_v25 = vpack.c.bf16 %v9305_v40, %v9293_v18 }
0x1691   : > { %v6966_v39 = vpack.c.bf16 %v5618_v5, %v5617_v17 }
0x1692   : > { %7511 = vmatprep.subr.msk.bf16.mxu1 %vm8144_vm3, %v7510_v25 }
0x1693   : > { %5681 = vrot.lane.b32.xlu0 %v6966_v39, %s9775_s18  ;;  %5675 = vrot.lane.b32.xlu1 %v6963_v7, %s9775_s18 }
0x1694   : > { %7514 = vmatpush1.bf16.msk.msra.mxu1 %vm8155_vm4, %v7513_v32 }
0x1695   : > { %7518 = vmatprep.subr.msk.bf16.mxu1 %vm8144_vm3, %v7517_v6 }
0x1697   : > { %5677 = vrot.lane.b32.xlu0 %v6964_v53, %s9775_s18  ;;  %5655 = vrot.lane.b32.xlu1 %v6965_v4, %s9778_s3  ;;  %s9800_s18 = sld [smem:[#allocation50_spill]] }
0x1698   : > { %7522 = vmatpush1.bf16.msk.msra.mxu1 %vm8155_vm4, %v7521_v61 }
0x169b   : > { %5657 = vrot.lane.b32.xlu0 %v6966_v39, %s9778_s3  ;;  %5651 = vrot.lane.b32.xlu1 %v6963_v7, %s9778_s3 }
0x169d   : > { %s9801_s1 = smov %s9800_s18 }
0x169f   : > { %5653 = vrot.lane.b32.xlu0 %v6964_v53, %s9778_s3  ;;  %5739 = vperm.xlu1 %7079, %v5725_v28  }
0x16a3   : > { %5744 = vperm.xlu0 %7078, %v5726_v8   ;;  %5729 = vperm.xlu1 %7079, %v5723_v36  }
0x16a7   : > { %5734 = vperm.xlu0 %7078, %v5724_v19   ;;  %5922 = vperm.xlu1 %7079, %v5908_v11  }
0x16ab   : > { %5927 = vperm.xlu0 %7078, %v5909_v54   ;;  %5912 = vperm.xlu1 %7079, %v5906_v21   ;;  %v7184_v54 = vld [vmem:[%s9800_s18] sm:$0xff]   ;;  %v7185_v21 = vld [vmem:[%s9801_s1 + $0x8] sm:$0xff]   ;;  %s9802_s18 = sld [smem:[#allocation52_spill]] }
0x16af   : > { %5917 = vperm.xlu0 %7078, %v5907_v22  }
0x16b1   : > { %s9803_s1 = smov %s9802_s18 }
0x1701   : > { %v5680_v12 = vpop.permute.xlu1 %5679 }
0x1702   : > { %v5685_v29 = vrot.slane %v5680_v12, 4 }
0x1704   : > { %v5689_v50 = vsel %vm1903_vm7, %v5685_v29, %v5680_v12 }
0x1705   : > { %5697 = vst.msk [vmem:[#allocation2 + $0x30] sm:$0xff] %vm8186_vm8, %v5689_v50  ;;  %v5682_v1 = vpop.permute.xlu0 %5681  ;;  %v5676_v13 = vpop.permute.xlu1 %5675 }
0x1706   : > { %v5686_v47 = vrot.slane %v5682_v1, 4  ;;  %v5683_v41 = vrot.slane %v5676_v13, 4 }
0x1708   : > { %v5690_v43 = vsel %vm1903_vm7, %v5686_v47, %v5682_v1  ;;  %v5687_v38 = vsel %vm1903_vm7, %v5683_v41, %v5676_v13 }
0x1709   : > { %5698 = vst.msk [vmem:[#allocation2 + $0x38] sm:$0xff] %vm8186_vm8, %v5690_v43  ;;  %5695 = vst.msk [vmem:[#allocation2 + $0x20] sm:$0xff] %vm8186_vm8, %v5687_v38  ;;  %v5678_v51 = vpop.permute.xlu0 %5677  ;;  %v5656_v7 = vpop.permute.xlu1 %5655 }
0x170a   : > { %v5684_v49 = vrot.slane %v5678_v51, 4  ;;  %v5661_v44 = vrot.slane %v5656_v7, 4 }
0x170c   : > { %v5688_v46 = vsel %vm1903_vm7, %v5684_v49, %v5678_v51  ;;  %v5665_v26 = vsel %vm1875_vm10, %v5661_v44, %v5656_v7  ;;  %v5717_v0 = vld [vmem:[#allocation2 + $0x30] sm:$0xff] }
0x170d   : > { %5696 = vst.msk [vmem:[#allocation2 + $0x28] sm:$0xff] %vm8186_vm8, %v5688_v46  ;;  %v5658_v37 = vpop.permute.xlu0 %5657  ;;  %v5652_v16 = vpop.permute.xlu1 %5651 }
0x170e   : > { %5673 = vst.msk [vmem:[#allocation2 + $0x10] sm:$0xff] %vm8203_vm11, %v5665_v26  ;;  %v5662_v20 = vrot.slane %v5658_v37, 4  ;;  %v5659_v60 = vrot.slane %v5652_v16, 4 }
0x170f   : > { %6033 = vst.msk [vmem:[#allocation2 + $0x30] sm:$0xf] %vm1834_vm0, %v7689_v2 }
0x1710   : > { %v5666_v53 = vsel %vm1875_vm10, %v5662_v20, %v5658_v37  ;;  %v5663_v14 = vsel %vm1875_vm10, %v5659_v60, %v5652_v16  ;;  %v5718_v3 = vld [vmem:[#allocation2 + $0x38] sm:$0xff]  ;;  %v5715_v17 = vld [vmem:[#allocation2 + $0x20] sm:$0xff] }
0x1711   : > { %v7176_v62 = vld [vmem:[#allocation2 + $0x34] ss:$8 sps:$4 sm:$0xff]   ;;  %5674 = vst.msk [vmem:[#allocation2 + $0x18] sm:$0xff] %vm8203_vm11, %v5666_v53  ;;  %5671 = vst.msk [vmem:[#allocation2] sm:$0xff] %vm8203_vm11, %v5663_v14  ;;  %v5654_v9 = vpop.permute.xlu0 %5653  ;;  %v6890_v63 = vcombine.low %v5717_v0, %v5718_v3 }
0x1712   : > { %6034 = vst.msk [vmem:[#allocation2 + $0x38] sm:$0xf] %vm1834_vm0, %v7689_v2  ;;  %v5660_v55 = vrot.slane %v5654_v9, 4  ;;  %5831 = vmatprep.subr.bf16.mxu1 %v7176_v62  ;;  %6031 = vst.msk [vmem:[#allocation2 + $0x20] sm:$0xf] %vm1834_vm0, %v7689_v2 }
0x1713   : > { %5832 = vmatpush1.bf16.msra.mxu1 %v6890_v63 }
0x1714   : > { %v5664_v4 = vsel %vm1875_vm10, %v5660_v55, %v5654_v9  ;;  %v5716_v5 = vld [vmem:[#allocation2 + $0x28] sm:$0xff] }
0x1715   : > { %v7178_v39 = vld [vmem:[#allocation2 + $0x24] ss:$8 sps:$4 sm:$0xff]   ;;  %5672 = vst.msk [vmem:[#allocation2 + $0x8] sm:$0xff] %vm8203_vm11, %v5664_v4  ;;  %v6888_v25 = vcombine.low %v5715_v17, %v5716_v5  ;;  %v5713_v32 = vld [vmem:[#allocation2 + $0x10] sm:$0xff] }
0x1716   : > { %6032 = vst.msk [vmem:[#allocation2 + $0x28] sm:$0xf] %vm1834_vm0, %v7689_v2  ;;  %5833 = vmatprep.subr.bf16.mxu1 %v7178_v39  ;;  %6029 = vst.msk [vmem:[#allocation2 + $0x10] sm:$0xf] %vm1834_vm0, %v7689_v2 }
0x1717   : > { %5834 = vmatpush1.bf16.msra.mxu1 %v6888_v25 }
0x1718   : > { %v5714_v6 = vld [vmem:[#allocation2 + $0x18] sm:$0xff]  ;;  %v5711_v8 = vld [vmem:[#allocation2] sm:$0xff] }
0x1719   : > { %v7180_v61 = vld [vmem:[#allocation2 + $0x14] ss:$8 sps:$4 sm:$0xff]   ;;  %6030 = vst.msk [vmem:[#allocation2 + $0x18] sm:$0xf] %vm1834_vm0, %v7689_v2  ;;  %v6886_v28 = vcombine.low %v5713_v32, %v5714_v6  ;;  %6027 = vst.msk [vmem:[#allocation2] sm:$0xf] %vm1834_vm0, %v7689_v2 }
0x171a   : > { %5835 = vmatprep.subr.bf16.mxu1 %v7180_v61  ;;  %v5740_v1 = vpop.permute.xlu1 %5739 }
0x171b   : > { %5836 = vmatpush1.bf16.msra.mxu1 %v6886_v28 }
0x171c   : > { %v5712_v36 = vld [vmem:[#allocation2 + $0x8] sm:$0xff] }
0x171d   : > { %v7182_v19 = vld [vmem:[#allocation2 + $0x4] ss:$8 sps:$4 sm:$0xff]   ;;  %6028 = vst.msk [vmem:[#allocation2 + $0x8] sm:$0xf] %vm1834_vm0, %v7689_v2  ;;  %v6884_v11 = vcombine.low %v5711_v8, %v5712_v36 }
0x171e   : > { %5837 = vmatprep.subr.bf16.mxu1 %v7182_v19  ;;  %v5745_v43 = vpop.permute.xlu0 %5744  ;;  %v5730_v16 = vpop.permute.xlu1 %5729 }
0x171f   : > { %5838 = vmatpush1.bf16.msra.mxu1 %v6884_v11 }
0x1722   : > { %6896 = vmatmul.mubr.msk.bf16.vlgmr.msra.gmra.mxu1 %vm2036_vm12, %v7184_v54  ;;  %v5735_v20 = vpop.permute.xlu0 %5734 }
0x1723   : > { %5865 = vmatprep.mubr.bf16.mxu1 %v7689_v2 }
0x172a   : > { %6897 = vmatmul.mubr.msk.bf16.gmra.mxu1 %vm2036_vm12, %v7185_v21 }
0x172b   : > { %6382 = vmatprep.mubr.bf16.mxu1 %v7689_v2 }
0x17e2   : > { %v5857_v22 = vpop.f32.mrf.mxu1 }
0x17e3   : > { %v5858_v3 = vadd.f32 %v5857_v22, %v5730_v16 }
0x17e4   : > { %v5859_v12 = vpop.f32.mrf.mxu1 }
0x17e5   : > { %v5860_v60 = vadd.f32 %v5859_v12, %v5730_v16 }
0x17e6   : > { %v5861_v29 = vpop.f32.mrf.mxu1 }
0x17e7   : > { %v5862_v14 = vadd.f32 %v5861_v29, %v5735_v20 }
0x17e8   : > { %v5863_v50 = vpop.f32.mrf.mxu1 }
0x17e9   : > { %v5864_v0 = vadd.f32 %v5863_v50, %v5735_v20  ;;  %v7186_v50 = vld [vmem:[%s9802_s18] sm:$0xff]   ;;  %s9804_s18 = sld [smem:[#allocation55_spill]] }
0x17ea   : > { %v5867_v13 = vpop.f32.mrf.mxu1 }
0x17eb   : > { %v5868_v47 = vadd.f32 %v5867_v13, %v5740_v1  ;;  %v5923_v13 = vpop.permute.xlu1 %5922 }
0x17ec   : > { %v5869_v41 = vpop.f32.mrf.mxu1 }
0x17ed   : > { %v5880_v38 = vmul.f32 0.5, %v5868_v47  ;;  %v5870_v51 = vadd.f32 %v5869_v41, %v5740_v1  ;;  %v7187_v1 = vld [vmem:[%s9803_s1 + $0x8] sm:$0xff]   ;;  %v5928_v47 = vpop.permute.xlu0 %5927 }
0x17ee   : > { %v5871_v7 = vpop.f32.mrf.mxu1 }
0x17ef   : > { %v5881_v49 = vmul.f32 0.5, %v5870_v51  ;;  %v5872_v44 = vadd.f32 %v5871_v7, %v5745_v43  ;;  %7344 = vtanh.f32 %v5880_v38  ;;  %v5913_v41 = vpop.permute.xlu1 %5912  ;;  %s9805_s1 = smov %s9804_s18 }
0x17f0   : > { %v5873_v46 = vpop.f32.mrf.mxu1  ;;  %v6130_v57 = vld [vmem:[%s9805_s1 + $0x18] sm:$0xff] }
0x17f1   : > { %7346 = vtanh.f32 %v5881_v49  ;;  %v5882_v26 = vmul.f32 0.5, %v5872_v44  ;;  %v5874_v37 = vadd.f32 %v5873_v46, %v5745_v43  ;;  %v5918_v44 = vpop.permute.xlu0 %5917 }
0x17f3   : > { %7348 = vtanh.f32 %v5882_v26  ;;  %v5883_v53 = vmul.f32 0.5, %v5874_v37 }
0x17f5   : > { %7350 = vtanh.f32 %v5883_v53 }
0x17f6   : > { %7352 = vtanh.f32 %v5860_v60 }
0x17f7   : > { %7354 = vtanh.f32 %v5862_v14 }
0x17f8   : > { %7356 = vtanh.f32 %v5864_v0 }
0x17f9   : > { %7358 = vtanh.f32 %v5858_v3 }
0x17fc   : > { %v7345_v62 = vpop.eup %7344 }
0x17fd   : > { %v5888_v4 = vmul.f32 0.5, %v7345_v62 }
0x17fe   : > { %v7347_v9 = vpop.eup %7346 }
0x17ff   : > { %v5889_v63 = vmul.f32 0.5, %v7347_v9  ;;  %v5892_v61 = vadd.f32 0.5, %v5888_v4 }
0x1800   : > { %v7349_v55 = vpop.eup %7348 }
0x1801   : > { %v5890_v17 = vmul.f32 0.5, %v7349_v55  ;;  %v5893_v39 = vadd.f32 0.5, %v5889_v63 }
0x1802   : > { %v7351_v5 = vpop.eup %7350 }
0x1803   : > { %v5894_v25 = vadd.f32 0.5, %v5890_v17  ;;  %v5891_v32 = vmul.f32 0.5, %v7351_v5  ;;  %v7353_v6 = vpop.eup %7352 }
0x1804   : > { %v7355_v28 = vpop.eup %7354  ;;  %v5897_v54 = vmul.f32 %v7353_v6, %v5893_v39 }
0x1805   : > { %v5895_v8 = vadd.f32 0.5, %v5891_v32  ;;  %v7357_v36 = vpop.eup %7356  ;;  %v5898_v19 = vmul.f32 %v7355_v28, %v5894_v25 }
0x1806   : > { %v7359_v11 = vpop.eup %7358 }
0x1807   : > { %v5899_v21 = vmul.f32 %v7357_v36, %v5895_v8  ;;  %v5896_v22 = vmul.f32 %v7359_v11, %v5892_v61 }
0x1809   : > { %v5901_v12 = vpack.c.bf16 %v5899_v21, %v5897_v54  ;;  %v5900_v29 = vpack.c.bf16 %v5898_v19, %v5896_v22 }
0x180b   : > { %5960 = vmatprep.subr.bf16.mxu0 %v5901_v12 }
0x180c   : > { %5961 = vmatpush1.bf16.msra.mxu0 %v5900_v29 }
0x180f   : > { %6900 = vmatmul.mubr.msk.bf16.vlgmr.msra.gmra.mxu0 %vm2160_vm13, %v7186_v50 }
0x1810   : > { %5988 = vmatprep.mubr.bf16.mxu0 %v7689_v2 }
0x1817   : > { %6901 = vmatmul.mubr.msk.bf16.gmra.mxu0 %vm2160_vm13, %v7187_v1  ;;  %v6129_v1 = vld [vmem:[%s9804_s18 + $0x10] sm:$0xff]  ;;  %s9524_s18 = sand.u32 1, %s7621_s16  }
0x1818   : > { %6259 = vmatprep.mubr.bf16.mxu0 %v7689_v2  ;;  %s9681_s6 = scalar_lea.vmem [#allocation3], %s9524_s18  ;;  %s6508_s9 = scalar_lea.sflag [#allocation6], %s9524_s18 }
0x1819   : > { %s9543_s8 = sshll.u32 %s9681_s6, 4  ;;  %s6521_s8 = int_to_ptr.vmem [resolvable:$true] %s9543_s8 }
0x18cf   : > { %v5980_v43 = vpop.f32.mrf.mxu0 }
0x18d0   : > { %v5981_v38 = vadd.f32 %v5980_v43, %v5913_v41  ;;  %v6310_v43 = vld [vmem:[%s9806_s5] sm:$0xff] }
0x18d1   : > { %v5982_v51 = vpop.f32.mrf.mxu0 }
0x18d2   : > { %v5999_v7 = vadd.f32 %v5981_v38, %v9266_v27  ;;  %v5983_v49 = vadd.f32 %v5982_v51, %v5913_v41  ;;  %v6312_v41 = vld [vmem:[%s9806_s5 + $0x10] sm:$0xff]  ;;  %v6311_v38 = vld [vmem:[%s9806_s5 + $0x8] sm:$0xff]  ;;  %v6432_v51 = vld [vmem:[%s7984_s27] sm:$0xff] }
0x18d3   : > { %v5984_v46 = vpop.f32.mrf.mxu0 }
0x18d4   : > { %v9398_v26 = vmul.f32 0.70710677, %v5999_v7  ;;  %v6000_v37 = vadd.f32 %v5983_v49, %v9269_v35  ;;  %v5985_v16 = vadd.f32 %v5984_v46, %v5918_v44 }
0x18d5   : > { %v5986_v20 = vpop.f32.mrf.mxu0 }
0x18d6   : > { %v9401_v60 = vmul.f32 0.70710677, %v6000_v37  ;;  %v6001_v53 = vadd.f32 %v5985_v16, %v9278_v58  ;;  %v5987_v14 = vadd.f32 %v5986_v20, %v5918_v44  ;;  %v6015_v0 = vsel %vm8091_vm1, %v9398_v26, 0.0 }
0x18d7   : > { %v5990_v3 = vpop.f32.mrf.mxu0 }
0x18d8   : > { %v6016_v27 = vsel %vm8095_vm2, %v9401_v60, 0.0  ;;  %v9410_v62 = vmul.f32 0.70710677, %v6001_v53  ;;  %v6002_v35 = vadd.f32 %v5987_v14, %v9281_v56  ;;  %v5991_v9 = vadd.f32 %v5990_v3, %v5923_v13 }
0x18d9   : > { %v6967_v63 = vpack.c.bf16 %v6016_v27, %v6015_v0  ;;  %v5992_v55 = vpop.f32.mrf.mxu0 }
0x18da   : > { %v9413_v4 = vmul.f32 0.70710677, %v6002_v35  ;;  %v6003_v58 = vadd.f32 %v5991_v9, %v9290_v15  ;;  %v5993_v17 = vadd.f32 %v5992_v55, %v5923_v13  ;;  %v6017_v5 = vsel %vm8091_vm1, %v9410_v62, 0.0  ;;  %v6127_v13 = vld [vmem:[%s9805_s1] sm:$0xff] }
0x18db   : > { %v5994_v39 = vpop.f32.mrf.mxu0  ;;  %v7537_v50 = vpack.c.bf16 %v9410_v62, %v9398_v26 }
0x18dc   : > { %v6018_v25 = vsel %vm8095_vm2, %v9413_v4, 0.0  ;;  %v9422_v32 = vmul.f32 0.70710677, %v6003_v58  ;;  %v6004_v56 = vadd.f32 %v5993_v17, %v9293_v18  ;;  %v5995_v6 = vadd.f32 %v5994_v39, %v5928_v47 }
0x18dd   : > { %v6968_v61 = vpack.c.bf16 %v6018_v25, %v6017_v5  ;;  %v5996_v28 = vpop.f32.mrf.mxu0  ;;  %v7534_v24 = vpack.c.bf16 %v9413_v4, %v9401_v60 }
0x18de   : > { %v9425_v8 = vmul.f32 0.70710677, %v6004_v56  ;;  %v6005_v15 = vadd.f32 %v5995_v6, %v9302_v10  ;;  %v5997_v36 = vadd.f32 %v5996_v28, %v5928_v47  ;;  %v6019_v19 = vsel %vm8091_vm1, %v9422_v32, 0.0  ;;  %v6128_v47 = vld [vmem:[%s9805_s1 + $0x8] sm:$0xff]  ;;  %s9678_s1 = sshll.u32 %s8017_s0, 4 }
0x18df   : > { %s9536_s5 = scalar_lea.hbm %s7994_s24, %s9678_s1  ;;  %s7694_s1 = smov [#allocation5]  }
0x18e0   : > { %v6020_v11 = vsel %vm8095_vm2, %v9425_v8, 0.0  ;;  %v9434_v54 = vmul.f32 0.70710677, %v6005_v15  ;;  %v6006_v18 = vadd.f32 %v5997_v36, %v9305_v40  ;;  %s7543_s11 = sshll.u32 %s7694_s1, 4  ;;  %s7544_s11 = int_to_ptr.vmem [resolvable:$false] %s7543_s11 }
0x18e1   : > { %v6969_v21 = vpack.c.bf16 %v6020_v11, %v6019_v19  ;;  %s7545_s12 = scalar_lea.vmem %s7544_s11, 32 }
0x18e2   : > { %v9437_v22 = vmul.f32 0.70710677, %v6006_v18  ;;  %v6021_v10 = vsel %vm8091_vm1, %v9434_v54, 0.0  ;;  %v7529_v23 = vpack.c.bf16 %v9434_v54, %v9422_v32 }
0x18e3   : > { %6083 = vrot.lane.b32.xlu1 %v6969_v21, %s9778_s3 }
0x18e4   : > { %v6022_v12 = vsel %vm8095_vm2, %v9437_v22, 0.0  ;;  %v7526_v40 = vpack.c.bf16 %v9437_v22, %v9425_v8 }
0x18e5   : > { %v6970_v29 = vpack.c.bf16 %v6022_v12, %v6021_v10 }
0x18e6   : > { %7527 = vmatprep.subr.msk.bf16.mxu0 %vm8144_vm3, %v7526_v40 }
0x18e7   : > { %6085 = vrot.lane.b32.xlu0 %v6970_v29, %s9778_s3  ;;  %6079 = vrot.lane.b32.xlu1 %v6967_v63, %s9778_s3 }
0x18e8   : > { %7530 = vmatpush1.bf16.msk.msra.mxu0 %vm8155_vm4, %v7529_v23 }
0x18e9   : > { %7535 = vmatprep.subr.msk.bf16.mxu0 %vm8144_vm3, %v7534_v24 }
0x18eb   : > { %6081 = vrot.lane.b32.xlu0 %v6968_v61, %s9778_s3  ;;  %6059 = vrot.lane.b32.xlu1 %v6969_v21, %s9782_s2  ;;  %s9807_s3 = sld [smem:[#allocation54_spill]] }
0x18ec   : > { %7538 = vmatpush1.bf16.msk.msra.mxu0 %vm8155_vm4, %v7537_v50 }
0x18ef   : > { %6061 = vrot.lane.b32.xlu0 %v6970_v29, %s9782_s2  ;;  %6055 = vrot.lane.b32.xlu1 %v6967_v63, %s9782_s2 }
0x18f1   : > { %v7200_v10 = vld [vmem:[%s9807_s3] sm:$0xff]   ;;  %v7201_v12 = vld [vmem:[%s9807_s3 + $0x8] sm:$0xff]  }
0x18f3   : > { %6057 = vrot.lane.b32.xlu0 %v6968_v61, %s9782_s2  ;;  %6143 = vperm.xlu1 %7079, %v6129_v1   ;;  %s9808_s2 = sld [smem:[#allocation56_spill]] }
0x18f7   : > { %6148 = vperm.xlu0 %7078, %v6130_v57   ;;  %6133 = vperm.xlu1 %7079, %v6127_v13  }
0x18fb   : > { %6138 = vperm.xlu0 %7078, %v6128_v47   ;;  %6326 = vperm.xlu1 %7079, %v6312_v41  }
0x18ff   : > { %6331 = vperm.xlu0 %7078, %v6313_v59   ;;  %6316 = vperm.xlu1 %7079, %v6310_v43  }
0x1903   : > { %6321 = vperm.xlu0 %7078, %v6311_v38   ;;  %6435 = vperm.xlu1 %7079, %v6432_v51  }
0x1955   : > { %v6084_v7 = vpop.permute.xlu1 %6083 }
0x1956   : > { %v6089_v49 = vrot.slane %v6084_v7, 4 }
0x1958   : > { %v6093_v44 = vsel %vm1875_vm10, %v6089_v49, %v6084_v7 }
0x1959   : > { %6101 = vst.msk [vmem:[#allocation2 + $0x30] sm:$0xff] %vm8203_vm11, %v6093_v44  ;;  %v6086_v46 = vpop.permute.xlu0 %6085  ;;  %v6080_v37 = vpop.permute.xlu1 %6079 }
0x195a   : > { %v6090_v16 = vrot.slane %v6086_v46, 4  ;;  %v6087_v20 = vrot.slane %v6080_v37, 4 }
0x195c   : > { %v6094_v53 = vsel %vm1875_vm10, %v6090_v16, %v6086_v46  ;;  %v6091_v14 = vsel %vm1875_vm10, %v6087_v20, %v6080_v37 }
0x195d   : > { %6102 = vst.msk [vmem:[#allocation2 + $0x38] sm:$0xff] %vm8203_vm11, %v6094_v53  ;;  %6099 = vst.msk [vmem:[#allocation2 + $0x20] sm:$0xff] %vm8203_vm11, %v6091_v14  ;;  %v6082_v0 = vpop.permute.xlu0 %6081  ;;  %v6060_v3 = vpop.permute.xlu1 %6059 }
0x195e   : > { %v6088_v27 = vrot.slane %v6082_v0, 4  ;;  %v6065_v35 = vrot.slane %v6060_v3, 4 }
0x1960   : > { %v6092_v9 = vsel %vm1875_vm10, %v6088_v27, %v6082_v0  ;;  %v6069_v63 = vsel %vm2288_vm15, %v6065_v35, %v6060_v3 }
0x1961   : > { %6100 = vst.msk [vmem:[#allocation2 + $0x28] sm:$0xff] %vm8203_vm11, %v6092_v9  ;;  %v6062_v55 = vpop.permute.xlu0 %6061  ;;  %v6056_v58 = vpop.permute.xlu1 %6055 }
0x1962   : > { %6077 = vst.msk [vmem:[#allocation2 + $0x10] sm:$0xff] %vm8346_vm6, %v6069_v63  ;;  %v6066_v17 = vrot.slane %v6062_v55, 4  ;;  %v6063_v5 = vrot.slane %v6056_v58, 4 }
0x1964   : > { %v6070_v39 = vsel %vm2288_vm15, %v6066_v17, %v6062_v55  ;;  %v6067_v25 = vsel %vm2288_vm15, %v6063_v5, %v6056_v58  ;;  %v7188_v56 = vld [vmem:[#allocation2 + $0x30] ss:$8 sps:$4 sm:$0xff]   ;;  %v7190_v6 = vld [vmem:[#allocation2 + $0x34] ss:$8 sps:$4 sm:$0xff]  }
0x1965   : > { %6078 = vst.msk [vmem:[#allocation2 + $0x18] sm:$0xff] %vm8346_vm6, %v6070_v39  ;;  %6075 = vst.msk [vmem:[#allocation2] sm:$0xff] %vm8346_vm6, %v6067_v25  ;;  %v6058_v30 = vpop.permute.xlu0 %6057  ;;  %6235 = vmatprep.subr.bf16.mxu0 %v7190_v6 }
0x1966   : > { %v6064_v61 = vrot.slane %v6058_v30, 4  ;;  %6236 = vmatpush1.bf16.msra.mxu0 %v7188_v56 }
0x1968   : > { %v6068_v28 = vsel %vm2288_vm15, %v6064_v61, %v6058_v30  ;;  %v7191_v15 = vld [vmem:[#allocation2 + $0x20] ss:$8 sps:$4 sm:$0xff]   ;;  %v7193_v36 = vld [vmem:[#allocation2 + $0x24] ss:$8 sps:$4 sm:$0xff]  }
0x1969   : > { %6076 = vst.msk [vmem:[#allocation2 + $0x8] sm:$0xff] %vm8346_vm6, %v6068_v28  ;;  %6237 = vmatprep.subr.bf16.mxu0 %v7193_v36 }
0x196a   : > { %6238 = vmatpush1.bf16.msra.mxu0 %v7191_v15 }
0x196c   : > { %v7194_v19 = vld [vmem:[#allocation2 + $0x10] ss:$8 sps:$4 sm:$0xff]   ;;  %v7196_v11 = vld [vmem:[#allocation2 + $0x14] ss:$8 sps:$4 sm:$0xff]  }
0x196d   : > { %6239 = vmatprep.subr.bf16.mxu0 %v7196_v11 }
0x196e   : > { %6240 = vmatpush1.bf16.msra.mxu0 %v7194_v19  ;;  %v6144_v24 = vpop.permute.xlu1 %6143 }
0x1970   : > { %v7197_v18 = vld [vmem:[#allocation2] ss:$8 sps:$4 sm:$0xff]   ;;  %v7199_v21 = vld [vmem:[#allocation2 + $0x4] ss:$8 sps:$4 sm:$0xff]  }
0x1971   : > { %6241 = vmatprep.subr.bf16.mxu0 %v7199_v21  ;;  %v7202_v21 = vld [vmem:[%s9808_s2] sm:$0xff]  }
0x1972   : > { %6242 = vmatpush1.bf16.msra.mxu0 %v7197_v18  ;;  %v6149_v13 = vpop.permute.xlu0 %6148  ;;  %v6134_v44 = vpop.permute.xlu1 %6133 }
0x1975   : > { %6920 = vmatmul.mubr.msk.bf16.vlgmr.msra.gmra.mxu0 %vm2036_vm12, %v7200_v10  ;;  %v7203_v10 = vld [vmem:[%s9808_s2 + $0x8] sm:$0xff]   ;;  %s1714_s2 = scalar_lea.vmem [#allocation5], %s9524_s18 }
0x1976   : > { %6269 = vmatprep.mubr.bf16.mxu0 %v7689_v2  ;;  %v6139_v46 = vpop.permute.xlu0 %6138  ;;  %s6533_s3 = sshll.u32 %s1714_s2, 4  ;;  %s9538_s3 = int_to_ptr.vmem [resolvable:$true] %s6533_s3 }
0x1977   : > { %s7539_s10 = scalar_lea.vmem %s9538_s3, 16  ;;  %p7546_p3 = scmp.lt.s32.totalorder %s9538_s3, %s7544_s11 }
0x1978   : > { %p7540_p0 = scmp.ne.s32.totalorder %s9538_s3, %s7539_s10  ;;  %p7547_p4 = scmp.lt.s32.totalorder %s7545_s12, %s7539_s10 }
0x197a   : > { %p7541_p1 = pnand %p7540_p0, %p8034_p5  ;;  %p7548_p7 = por %p7547_p4, %p7546_p3 }
0x197c   : > { %p7542_p2 = pneg %p7541_p1 }
0x197d   : > { %6921 = vmatmul.mubr.msk.bf16.gmra.mxu0 %vm2036_vm12, %v7201_v12 }
0x197e   : > { %p7549_p8 = pnand %p7548_p7, %p7542_p2 }
0x1a35   : > { %v6261_v45 = vpop.f32.mrf.mxu0 }
0x1a36   : > { %v6262_v14 = vadd.f32 %v6261_v45, %v6134_v44  ;;  %v6332_v45 = vpop.permute.xlu0 %6331 }
0x1a37   : > { %v6263_v29 = vpop.f32.mrf.mxu0 }
0x1a38   : > { %v6264_v37 = vadd.f32 %v6263_v29, %v6134_v44 }
0x1a39   : > { %v6265_v40 = vpop.f32.mrf.mxu0 }
0x1a3a   : > { %v6266_v20 = vadd.f32 %v6265_v40, %v6139_v46  ;;  %v6327_v40 = vpop.permute.xlu1 %6326 }
0x1a3b   : > { %v6267_v23 = vpop.f32.mrf.mxu0 }
0x1a3c   : > { %v6268_v53 = vadd.f32 %v6267_v23, %v6139_v46 }
0x1a3d   : > { %v6271_v50 = vpop.f32.mrf.mxu0 }
0x1a3e   : > { %v6272_v1 = vadd.f32 %v6271_v50, %v6144_v24  ;;  %v6322_v50 = vpop.permute.xlu0 %6321 }
0x1a3f   : > { %v6273_v57 = vpop.f32.mrf.mxu0 }
0x1a40   : > { %v6284_v47 = vmul.f32 0.5, %v6272_v1  ;;  %v6274_v41 = vadd.f32 %v6273_v57, %v6144_v24 }
0x1a41   : > { %v6275_v59 = vpop.f32.mrf.mxu0 }
0x1a42   : > { %v6285_v43 = vmul.f32 0.5, %v6274_v41  ;;  %v6276_v38 = vadd.f32 %v6275_v59, %v6149_v13  ;;  %7360 = vtanh.f32 %v6284_v47 }
0x1a43   : > { %v6277_v51 = vpop.f32.mrf.mxu0 }
0x1a44   : > { %7362 = vtanh.f32 %v6285_v43  ;;  %v6286_v7 = vmul.f32 0.5, %v6276_v38  ;;  %v6278_v49 = vadd.f32 %v6277_v51, %v6149_v13  ;;  %v6317_v13 = vpop.permute.xlu1 %6316 }
0x1a46   : > { %7364 = vtanh.f32 %v6286_v7  ;;  %v6287_v16 = vmul.f32 0.5, %v6278_v49 }
0x1a48   : > { %7366 = vtanh.f32 %v6287_v16 }
0x1a49   : > { %7368 = vtanh.f32 %v6264_v37 }
0x1a4a   : > { %7370 = vtanh.f32 %v6266_v20 }
0x1a4b   : > { %7372 = vtanh.f32 %v6268_v53 }
0x1a4c   : > { %7374 = vtanh.f32 %v6262_v14 }
0x1a4f   : > { %v7361_v0 = vpop.eup %7360 }
0x1a50   : > { %v6292_v9 = vmul.f32 0.5, %v7361_v0 }
0x1a51   : > { %v7363_v3 = vpop.eup %7362 }
0x1a52   : > { %v6293_v27 = vmul.f32 0.5, %v7363_v3  ;;  %v6296_v25 = vadd.f32 0.5, %v6292_v9 }
0x1a53   : > { %v7365_v35 = vpop.eup %7364 }
0x1a54   : > { %v6294_v63 = vmul.f32 0.5, %v7365_v35  ;;  %v6297_v58 = vadd.f32 0.5, %v6293_v27 }
0x1a55   : > { %v7367_v55 = vpop.eup %7366 }
0x1a56   : > { %v6298_v17 = vadd.f32 0.5, %v6294_v63  ;;  %v6295_v5 = vmul.f32 0.5, %v7367_v55  ;;  %v7369_v39 = vpop.eup %7368 }
0x1a57   : > { %v7371_v56 = vpop.eup %7370  ;;  %v6301_v15 = vmul.f32 %v7369_v39, %v6297_v58 }
0x1a58   : > { %v6299_v6 = vadd.f32 0.5, %v6295_v5  ;;  %v7373_v30 = vpop.eup %7372  ;;  %v6302_v61 = vmul.f32 %v7371_v56, %v6298_v17 }
0x1a59   : > { %v7375_v28 = vpop.eup %7374 }
0x1a5a   : > { %v6303_v36 = vmul.f32 %v7373_v30, %v6299_v6  ;;  %v6300_v19 = vmul.f32 %v7375_v28, %v6296_v25  ;;  %v6431_v30 = vld [vmem:[%s7979_s20] sm:$0xf]  ;;  %v6436_v28 = vpop.permute.xlu1 %6435 }
0x1a5c   : > { %v6305_v11 = vpack.c.bf16 %v6303_v36, %v6301_v15  ;;  %v6304_v18 = vpack.c.bf16 %v6302_v61, %v6300_v19 }
0x1a5e   : > { %6364 = vmatprep.subr.bf16.mxu1 %v6305_v11 }
0x1a5f   : > { %6365 = vmatpush1.bf16.msra.mxu1 %v6304_v18 }
0x1a62   : > { %6924 = vmatmul.mubr.msk.bf16.vlgmr.msra.gmra.mxu1 %vm2160_vm13, %v7202_v21 }
0x1a63   : > { %6392 = vmatprep.mubr.bf16.mxu1 %v7689_v2 }
0x1a6a   : > { %6925 = vmatmul.mubr.msk.bf16.gmra.mxu1 %vm2160_vm13, %v7203_v10 }
0x1a6b   : > { %6473 = vmatprep.mubr.bf16.mxu1 %v7689_v2 }
0x1b22   : > { %v6384_v12 = vpop.f32.mrf.mxu1 }
0x1b23   : > { %v6385_v49 = vadd.f32 %v6384_v12, %v6317_v13 }
0x1b24   : > { %v6386_v29 = vpop.f32.mrf.mxu1 }
0x1b25   : > { %v6387_v59 = vadd.f32 %v6386_v29, %v6317_v13 }
0x1b26   : > { %v6388_v23 = vpop.f32.mrf.mxu1 }
0x1b27   : > { %v6389_v38 = vadd.f32 %v6388_v23, %v6322_v50  ;;  %v6404_v16 = vadd.f32 %v6387_v59, %v9401_v60 }
0x1b28   : > { %v6390_v24 = vpop.f32.mrf.mxu1 }
0x1b29   : > { %v6391_v57 = vadd.f32 %v6390_v24, %v6322_v50  ;;  %v6405_v53 = vadd.f32 %v6389_v38, %v9410_v62  ;;  %v6412_v9 = vmul.f32 0.70710677, %v6404_v16 }
0x1b2a   : > { %v6394_v1 = vpop.f32.mrf.mxu1 }
0x1b2b   : > { %v6395_v47 = vadd.f32 %v6394_v1, %v6327_v40  ;;  %v6406_v7 = vadd.f32 %v6391_v57, %v9413_v4  ;;  %v6403_v4 = vadd.f32 %v6385_v49, %v9398_v26  ;;  %v6420_v39 = vmax.f32 %v6412_v9, 0.0 }
0x1b2c   : > { %v6396_v41 = vpop.f32.mrf.mxu1 }
0x1b2d   : > { %v6397_v43 = vadd.f32 %v6396_v41, %v6327_v40  ;;  %v6407_v44 = vadd.f32 %v6395_v47, %v9422_v32  ;;  %v6414_v0 = vmul.f32 0.70710677, %v6406_v7  ;;  %v6413_v32 = vmul.f32 0.70710677, %v6405_v53 }
0x1b2e   : > { %v6398_v51 = vpop.f32.mrf.mxu1  ;;  %v6411_v5 = vmul.f32 0.70710677, %v6403_v4 }
0x1b2f   : > { %v6408_v2 = vadd.f32 %v6397_v43, %v9425_v8  ;;  %v6399_v46 = vadd.f32 %v6398_v51, %v6332_v45  ;;  %v6415_v35 = vmul.f32 0.70710677, %v6407_v44  ;;  %v6422_v58 = vmax.f32 %v6414_v0, 0.0 }
0x1b30   : > { %v6400_v37 = vpop.f32.mrf.mxu1  ;;  %v6421_v25 = vmax.f32 %v6413_v32, 0.0  ;;  %v6419_v26 = vmax.f32 %v6411_v5, 0.0 }
0x1b31   : > { %v6401_v20 = vadd.f32 %v6400_v37, %v6332_v45  ;;  %v6409_v14 = vadd.f32 %v6399_v46, %v9434_v54  ;;  %v6416_v3 = vmul.f32 0.70710677, %v6408_v2  ;;  %v6423_v62 = vmax.f32 %v6415_v35, 0.0 }
0x1b32   : > { %v6427_v6 = vpack.c.bf16 %v6421_v25, %v6419_v26 }
0x1b33   : > { %v6410_v27 = vadd.f32 %v6401_v20, %v9437_v22  ;;  %v6417_v8 = vmul.f32 0.70710677, %v6409_v14  ;;  %v6424_v60 = vmax.f32 %v6416_v3, 0.0  ;;  %v6428_v22 = vpack.c.bf16 %v6422_v58, %v6420_v39 }
0x1b35   : > { %v6418_v63 = vmul.f32 0.70710677, %v6410_v27  ;;  %v6425_v55 = vmax.f32 %v6417_v8, 0.0 }
0x1b37   : > { %v6426_v17 = vmax.f32 %v6418_v63, 0.0  ;;  %v6429_v56 = vpack.c.bf16 %v6425_v55, %v6423_v62 }
0x1b39   : > { %v6430_v54 = vpack.c.bf16 %v6426_v17, %v6424_v60 }
0x1b3b   : > { %6453 = vmatprep.subr.bf16.mxu1 %v6430_v54 }
0x1b3c   : > { %6454 = vmatpush1.bf16.msra.mxu1 %v6429_v56 }
0x1b3d   : > { %6455 = vmatprep.subr.bf16.mxu1 %v6428_v22 }
0x1b40   : > { %6456 = vmatpush1.bf16.msra.mxu1 %v6427_v6 }
0x1b43   : > { %6926 = vmatmul.mubr.msk.bf16.vlgmr.msra.gmra.mxu1 %vm2662_vm5, %v6431_v30 }
0x1c03   : > { %v6475_v61 = vpop.f32.mrf.mxu1 }
0x1c05   : > { %v6476_v15 = vpop.f32.mrf.mxu1 }
0x1c06   : > { %v6477_v36 = vadd.f32 %v6476_v15, %v6436_v28 }
0x1c07   : > { %v6478_v19 = vpop.f32.mrf.mxu1 }
0x1c08   : > { %v6481_v11 = vmul.f32 1.442695, %v6477_v36 }
0x1c09   : > { %v6479_v18 = vpop.f32.mrf.mxu1 }
0x1c0a   : > { %7376 = vpow2.f32 %v6481_v11 }
0x1c17   : > { %v7377_v21 = vpop.eup %7376 }
0x1c18   : > { %v6484_v10 = vrot.slane %v7377_v21, 1  ;;  %v6488_v12 = vmul.f32 %v7377_v21, %v8998_v42 }
0x1c1a   : > { %v6486_v45 = vmul.f32 %v6484_v10, %v8995_v31  ;;  %v6490_v29 = vrot.slane %v6488_v12, 1  ;;  %v6494_v40 = vmul.f32 %v8704_v34, %v6488_v12 }
0x1c1c   : > { %v6487_v23 = vadd.f32 %v6486_v45, %v6477_v36  ;;  %v6492_v24 = vmul.f32 %v6490_v29, %v8701_v52  ;;  %v6496_v50 = vrot.slane %v6494_v40, 1  ;;  %v6500_v1 = vmul.f32 %v8407_v48, %v6494_v40 }
0x1c1e   : > { %v6493_v31 = vadd.f32 %v6492_v24, %v6487_v23  ;;  %v6498_v34 = vmul.f32 %v6496_v50, %v8404_v33  ;;  %6502 = vst [vmem:[%s1714_s2 - $0x1] sm:$0x2] %v6500_v1 }
0x1c1f   : > { %7552 = shalt.err (!%p7549_p8)
}
0x1c20   : > { %s7553_s2 = scalar_lea.hbm %s9536_s5, 16  ;;  %s7557_s6 = scalar_lea.hbm %s7994_s24, 64 }
0x1c21   : > { %p7554_p9 = scmp.ne.s32.totalorder %s9536_s5, %s7553_s2  ;;  %p7558_p12 = scmp.lt.s32.totalorder %s9536_s5, %s7994_s24 }
0x1c22   : > { %p7559_p13 = scmp.lt.s32.totalorder %s7557_s6, %s7553_s2 }
0x1c23   : > { %p7555_p10 = pnand %p7554_p9, %p8034_p5 }
0x1c24   : > { %p7560_p0 = por %p7559_p13, %p7558_p12 }
0x1c25   : > { %p7556_p11 = pneg %p7555_p10 }
0x1c27   : > { %p7561_p1 = pnand %p7560_p0, %p7556_p11 }
0x1c29   : > { %7564 = shalt.err (!%p7561_p1)
}
0x1c2a   : > { %6972 = dma.vmem_to_hbm [thread:$0]  (%p8034_p5), %s9538_s3, 16, %s9536_s5, %s6508_s9   ;;  %v6499_v33 = vadd.f32 %v6498_v34, %v6493_v31 }
0x1c2b   : > { %s9809_s12 = sshll.u32 %s8017_s0, 4  ;;  %s9810_s11 = scalar_lea.vmem [#allocation3], %s9524_s18 }
0x1c2c   : > { %s6518_s10 = scalar_lea.hbm %s7989_s4, %s9809_s12  ;;  %6501 = vst [vmem:[%s9810_s11] sm:$0x1] %v6499_v33  ;;  %s6504_s6 = scalar_lea.sflag [#allocation4], %s9524_s18 }
0x1c2d   : > { %s7565_s1 = scalar_lea.vmem %s6521_s8, 16  ;;  %s7695_s2 = smov [#allocation3]  }
0x1c2e   : > { %p7566_p2 = scmp.ne.s32.totalorder %s6521_s8, %s7565_s1  ;;  %s7569_s13 = sshll.u32 %s7695_s2, 4  ;;  %s7570_s13 = int_to_ptr.vmem [resolvable:$false] %s7569_s13 }
0x1c2f   : > { %s7571_s14 = scalar_lea.vmem %s7570_s13, 32  ;;  %p7572_p7 = scmp.lt.s32.totalorder %s6521_s8, %s7570_s13 }
0x1c30   : > { %p7567_p3 = pnand %p7566_p2, %p8034_p5  ;;  %p7573_p8 = scmp.lt.s32.totalorder %s7571_s14, %s7565_s1 }
0x1c32   : > { %p7568_p4 = pneg %p7567_p3  ;;  %p7574_p9 = por %p7573_p8, %p7572_p7 }
0x1c34   : > { %p7575_p10 = pnand %p7574_p9, %p7568_p4 }
0x1c36   : > { %7578 = shalt.err (!%p7575_p10)
}
0x1c37   : > { %s7579_s5 = scalar_lea.hbm %s6518_s10, 16  ;;  %s7583_s0 = scalar_lea.hbm %s7989_s4, 64 }
0x1c38   : > { %p7580_p11 = scmp.ne.s32.totalorder %s6518_s10, %s7579_s5  ;;  %p7584_p0 = scmp.lt.s32.totalorder %s6518_s10, %s7989_s4 }
0x1c39   : > { %p7585_p1 = scmp.lt.s32.totalorder %s7583_s0, %s7579_s5 }
0x1c3a   : > { %p7581_p12 = pnand %p7580_p11, %p8034_p5 }
0x1c3b   : > { %p7586_p2 = por %p7585_p1, %p7584_p0 }
0x1c3c   : > { %p7582_p13 = pneg %p7581_p12 }
0x1c3e   : > { %p7587_p3 = pnand %p7586_p2, %p7582_p13 }
0x1c40   : > { %7590 = shalt.err (!%p7587_p3)
}
0x1c41   : > { %6971 = dma.vmem_to_hbm [thread:$0]  (%p8034_p5), %s6521_s8, 16, %s6518_s10, %s6504_s6  }
0x1c42 PF: > { %p6982_p4 = scmp.ge.s32.totalorder %s7629_s22, 2  ;;  %s6545_s9 = sand.u32 1, %s7617_s15  }
0x1c43   : > { %s6546_s13 = scalar_lea.sflag [#allocation4], %s6545_s9 }
0x1c44   : > { %p6976_p7 = pnand %p6982_p4, %p8038_p6 }
0x1c46   : > { %p6977_p8 = pneg %p6976_p7 }
0x1c48   : > { %7608 = dma.done.wait (%p6977_p8), %s6546_s13, 16  }
0x1c49   : > { %7610 = vsyncadd (%p6977_p8), %s6546_s13, 4294967280  ;;  %s6554_s3 = scalar_lea.sflag [#allocation6], %s6545_s9 }
0x1c4a   : > { %7612 = dma.done.wait (%p6977_p8), %s6554_s3, 16  }
0x1c4b   : > { %7614 = vsyncadd (%p6977_p8), %s6554_s3, 4294967280  ;;  %s9812_s22 = sld [smem:[#allocation59_spill]]  ;;  %s9815_s15 = smov %s7621_s16 }
0x1c4c   : > { %s9813_s18 = sld [smem:[#allocation58_spill]] }
0x1c4d   : > { %s9814_s7 = sld [smem:[#allocation60_spill]] }
0x1c51   : > { %p131_p5 = scmp.ge.s32.totalorder %s9812_s22, 6  }
0x1c52   : > { %s9816_s16 = smov %s9813_s18 }
0x1c53   : > { %s9817_s18 = smov %s9814_s7  ;;  %133 = sbr.rel (!%p131_p5) target bundleno = 122 (0x7a), region = 358 }
0x1c58   :  { %6558 = vsyncpa [#allocation4], 1 }
0x1c59   :  { %6560 = vsyncpa [#allocation4 + $0x1], 1 }
0x1c5a   :  { %6561 = vsyncpa [#allocation6], 1 }
0x1c5b   :  { %6563 = vsyncpa [#allocation6 + $0x1], 1 }

</bundles_post_ra>
